<compile_context>
chip_gen: v7x
topology: tpu7x:2x2x1
jax: 0.10.0
libtpu: 0.0.40
codegen_flags: <defaults>
</compile_context>

<pallas_src>
import jax
import jax.numpy as jnp
import numpy as np
from jax.experimental import pallas as pl
from jax.experimental.pallas import tpu as pltpu

INPUT_DIM = 43
SEQ_LEN = 5
FEAT = INPUT_DIM // SEQ_LEN          # 8
HID = 64
GATES = 4 * HID                      # 256
MAX_B_TILE = 2048                    # per review: ~14 MB live VMEM at this tile
_LANE = 128


def lstm_kernel(xT_ref, wblk_ref, whh_ref, b_ref, wout_ref, bout_ref, o_ref):
    """LSTM (batch-on-lanes) + linear + sigmoid for one batch tile.

    xT_ref   : (S*F, Bt)      bf16   inputs, transposed (timestep t = rows t*F:(t+1)*F)
    wblk_ref : (S*4H, S*F)    bf16   block-diagonal input->gates weight
    whh_ref  : (4H, H)        bf16   hidden->gates weight (native PyTorch layout)
    b_ref    : (S*4H, 1)      f32    combined bias (b_ih + b_hh), tiled per step
    wout_ref : (1, H)         bf16   final linear weight
    bout_ref : (1, 1)         f32    final linear bias
    o_ref    : (1, Bt)        f32    sigmoid output, batch on the lane axis
    """
    Bt = xT_ref.shape[1]

    # Fused input projection: one K=40 matmul replaces five K=8 matmuls; bias
    # added once in the prologue (off the serial h-dependency chain).
    xg_all = jnp.dot(wblk_ref[...], xT_ref[...],
                     preferred_element_type=jnp.float32) + b_ref[...]   # (S*4H, Bt)

    whh = whh_ref[...]
    h = jnp.zeros((HID, Bt), jnp.float32)
    c = jnp.zeros((HID, Bt), jnp.float32)

    # Register-resident recurrence, fully unrolled (SEQ_LEN = 5).  All slices
    # below are sublane slices (multiples of 8 rows) over full-width lanes.
    for t in range(SEQ_LEN):
        gates = jnp.dot(whh, h.astype(whh.dtype),
                        preferred_element_type=jnp.float32) \
                + xg_all[t * GATES:(t + 1) * GATES, :]                  # (4H, Bt)
        # PyTorch gate ordering: i, f, g, o
        i_g = jax.nn.sigmoid(gates[0 * HID:1 * HID, :])
        f_g = jax.nn.sigmoid(gates[1 * HID:2 * HID, :])
        g_g = jnp.tanh(gates[2 * HID:3 * HID, :])
        o_g = jax.nn.sigmoid(gates[3 * HID:4 * HID, :])
        c = f_g * c + i_g * g_g
        h = o_g * jnp.tanh(c)

    # Epilogue: no transpose needed — h is already (H, Bt), so w_out @ h = (1, Bt).
    logit = jnp.dot(wout_ref[...], h.astype(wout_ref.dtype),
                    preferred_element_type=jnp.float32) + bout_ref[...]
    o_ref[...] = jax.nn.sigmoid(logit).astype(o_ref.dtype)


def init_params(key):
    """Deterministic parameter init, PyTorch-like shapes (U[-k, k], k=1/sqrt(H))."""
    ks = jax.random.split(key, 6)
    k = 1.0 / np.sqrt(HID)
    w_ih = jax.random.uniform(ks[0], (4 * HID, FEAT), jnp.float32, -k, k)
    w_hh = jax.random.uniform(ks[1], (4 * HID, HID), jnp.float32, -k, k)
    b_ih = jax.random.uniform(ks[2], (4 * HID,), jnp.float32, -k, k)
    b_hh = jax.random.uniform(ks[3], (4 * HID,), jnp.float32, -k, k)
    w_out = jax.random.uniform(ks[4], (1, HID), jnp.float32, -k, k)
    b_out = jax.random.uniform(ks[5], (1,), jnp.float32, -k, k)
    return dict(w_ih=w_ih, w_hh=w_hh, b_ih=b_ih, b_hh=b_hh,
                w_out=w_out, b_out=b_out)


def _choose_tiling(B):
    """Pick (b_tile, b_pad): >=2 lane-aligned tiles once B is large enough so the
    parallel grid feeds both v7x TensorCores; single tile for small B."""
    if B <= 256:
        return B, B
    b_tile = min(MAX_B_TILE, ((pl.cdiv(B, 2) + _LANE - 1) // _LANE) * _LANE)
    b_pad = pl.cdiv(B, b_tile) * b_tile
    return b_tile, b_pad


def lstm_forward(x, params):
    """Mirrors LSTM.forward: 2D input -> truncate -> LSTM -> linear -> sigmoid."""
    if x.ndim == 3:                                   # already (B, S, F)
        x = x.reshape(x.shape[0], -1)
    x2d = x[:, :SEQ_LEN * FEAT]                       # (B, S*F)
    B = x2d.shape[0]

    b_tile, b_pad = _choose_tiling(B)
    if b_pad > B:
        x2d = jnp.pad(x2d, ((0, b_pad - B), (0, 0)))

    # Batch-on-lanes input: x^T (S*F, b_pad), bf16 for the MXU.
    xT = jnp.transpose(x2d).astype(jnp.bfloat16)

    # Block-diagonal input->gates weight: (S*4H, S*F) with w_ih on the diagonal.
    w_blk = jnp.kron(jnp.eye(SEQ_LEN, dtype=jnp.float32),
                     params["w_ih"].astype(jnp.float32)).astype(jnp.bfloat16)
    w_hh = params["w_hh"].astype(jnp.bfloat16)                      # (4H, H), native layout
    b_tiled = jnp.tile((params["b_ih"] + params["b_hh"]).astype(jnp.float32),
                       SEQ_LEN).reshape(SEQ_LEN * GATES, 1)         # (S*4H, 1)
    w_out = params["w_out"].astype(jnp.bfloat16)                    # (1, H)
    b_out = params["b_out"].reshape(1, 1).astype(jnp.float32)

    out = pl.pallas_call(
        lstm_kernel,
        out_shape=jax.ShapeDtypeStruct((1, b_pad), jnp.float32),
        grid_spec=pltpu.PrefetchScalarGridSpec(
            num_scalar_prefetch=0,
            grid=(b_pad // b_tile,),
            in_specs=[
                pl.BlockSpec((SEQ_LEN * FEAT, b_tile), lambda i: (0, i)),
                pl.BlockSpec((SEQ_LEN * GATES, SEQ_LEN * FEAT), lambda i: (0, 0)),
                pl.BlockSpec((GATES, HID), lambda i: (0, 0)),
                pl.BlockSpec((SEQ_LEN * GATES, 1), lambda i: (0, 0)),
                pl.BlockSpec((1, HID), lambda i: (0, 0)),
                pl.BlockSpec((1, 1), lambda i: (0, 0)),
            ],
            out_specs=pl.BlockSpec((1, b_tile), lambda i: (0, i)),
        ),
        compiler_params=pltpu.CompilerParams(
            dimension_semantics=("parallel",),        # megacore-shard batch tiles
            vmem_limit_bytes=48 * 1024 * 1024,        # headroom for Bt=2048 (v5e default is 16 MiB)
        ),
    )(xT, w_blk, w_hh, b_tiled, w_out, b_out)
    return out[0, :B].reshape(B, 1)


def ref_forward(x, params):
    """Pure-JAX f32 reference matching PyTorch nn.LSTM + Linear + Sigmoid."""
    B = x.shape[0]
    x3 = x[:, :SEQ_LEN * FEAT].reshape(B, SEQ_LEN, FEAT).astype(jnp.float32)
    h = jnp.zeros((B, HID), jnp.float32)
    c = jnp.zeros((B, HID), jnp.float32)
    for t in range(SEQ_LEN):
        gates = (x3[:, t, :] @ params["w_ih"].T + params["b_ih"]
                 + h @ params["w_hh"].T + params["b_hh"])
        i_g = jax.nn.sigmoid(gates[:, 0 * HID:1 * HID])
        f_g = jax.nn.sigmoid(gates[:, 1 * HID:2 * HID])
        g_g = jnp.tanh(gates[:, 2 * HID:3 * HID])
        o_g = jax.nn.sigmoid(gates[:, 3 * HID:4 * HID])
        c = f_g * c + i_g * g_g
        h = o_g * jnp.tanh(c)
    logit = h @ params["w_out"].T + params["b_out"]
    return jax.nn.sigmoid(logit)


if __name__ == "__main__":
    key = jax.random.PRNGKey(0)
    k_param, k_x = jax.random.split(key)
    params = init_params(k_param)

    batch = 2
    x = jax.random.normal(k_x, (batch, INPUT_DIM), jnp.float32)

    out = jax.block_until_ready(lstm_forward(x, params))
    ref = ref_forward(x, params)

    assert out.shape == (batch, 1)
    # bf16 matmul operands -> compare against the f32 reference with a bf16-scale tolerance.
    np.testing.assert_allclose(np.asarray(out), np.asarray(ref), rtol=0.0, atol=2e-2)
    print("KERNEL_OK")
</pallas_src>

<mosaic_0001>
module attributes {stable_mosaic.version = 11 : i64} {
  func.func @lstm_kernel(%arg0: i32, %arg1: memref<40x2xbf16, #tpu.memory_space<vmem>>, %arg2: memref<1280x40xbf16, #tpu.memory_space<vmem>>, %arg3: memref<256x64xbf16, #tpu.memory_space<vmem>>, %arg4: memref<1280x1xf32, #tpu.memory_space<vmem>>, %arg5: memref<1x64xbf16, #tpu.memory_space<vmem>>, %arg6: memref<1x1xf32, #tpu.memory_space<vmem>>, %arg7: memref<1x2xf32, #tpu.memory_space<vmem>>) attributes {dimension_semantics = [#tpu.dimension_semantics<parallel>], iteration_bounds = array<i64: 1>, scalar_prefetch = 0 : i64, scratch_operands = 0 : i64, tpu.core_type = #tpu.core_type<tc>, window_params = [{transform_indices = @transform_0, window_bounds = array<i64: 40, 2>}, {pipeline_mode = #tpu.pipeline_mode<synchronous>, transform_indices = @transform_1, window_bounds = array<i64: 1280, 40>}, {pipeline_mode = #tpu.pipeline_mode<synchronous>, transform_indices = @transform_2, window_bounds = array<i64: 256, 64>}, {pipeline_mode = #tpu.pipeline_mode<synchronous>, transform_indices = @transform_3, window_bounds = array<i64: 1280, 1>}, {pipeline_mode = #tpu.pipeline_mode<synchronous>, transform_indices = @transform_4, window_bounds = array<i64: 1, 64>}, {pipeline_mode = #tpu.pipeline_mode<synchronous>, transform_indices = @transform_5, window_bounds = array<i64: 1, 1>}, {transform_indices = @transform_6, window_bounds = array<i64: 1, 2>}]} {
    %c0 = arith.constant 0 : index
    %c0_0 = arith.constant 0 : index
    %0 = vector.load %arg2[%c0, %c0_0] : memref<1280x40xbf16, #tpu.memory_space<vmem>>, vector<1280x40xbf16>
    %c0_1 = arith.constant 0 : index
    %c0_2 = arith.constant 0 : index
    %1 = vector.load %arg1[%c0_1, %c0_2] : memref<40x2xbf16, #tpu.memory_space<vmem>>, vector<40x2xbf16>
    %cst = arith.constant dense<0.000000e+00> : vector<1280x2xf32>
    %2 = tpu.matmul %0, %1, %cst {dimension_numbers = #tpu.dot_dimension_numbers<[1], [0], [0], [1], [0, 0, 1, 1], [], []>} : vector<1280x40xbf16>, vector<40x2xbf16>, vector<1280x2xf32> -> vector<1280x2xf32>
    %c0_3 = arith.constant 0 : index
    %c0_4 = arith.constant 0 : index
    %3 = vector.load %arg4[%c0_3, %c0_4] : memref<1280x1xf32, #tpu.memory_space<vmem>>, vector<1280x1xf32>
    %4 = vector.broadcast %3 : vector<1280x1xf32> to vector<1280x2xf32>
    %5 = arith.addf %2, %4 : vector<1280x2xf32>
    %c0_5 = arith.constant 0 : index
    %c0_6 = arith.constant 0 : index
    %6 = vector.load %arg3[%c0_5, %c0_6] : memref<256x64xbf16, #tpu.memory_space<vmem>>, vector<256x64xbf16>
    %cst_7 = arith.constant 0.000000e+00 : f32
    %7 = vector.broadcast %cst_7 : f32 to vector<64x2xf32>
    %cst_8 = arith.constant 0.000000e+00 : f32
    %8 = vector.broadcast %cst_8 : f32 to vector<64x2xf32>
    %9 = arith.truncf %7 : vector<64x2xf32> to vector<64x2xbf16>
    %cst_9 = arith.constant dense<0.000000e+00> : vector<256x2xf32>
    %10 = tpu.matmul %6, %9, %cst_9 {dimension_numbers = #tpu.dot_dimension_numbers<[1], [0], [0], [1], [0, 0, 1, 1], [], []>} : vector<256x64xbf16>, vector<64x2xbf16>, vector<256x2xf32> -> vector<256x2xf32>
    %11 = vector.extract_strided_slice %5 {offsets = [0, 0], sizes = [256, 2], strides = [1, 1]} : vector<1280x2xf32> to vector<256x2xf32>
    %12 = arith.addf %10, %11 : vector<256x2xf32>
    %13 = vector.extract_strided_slice %12 {offsets = [0, 0], sizes = [64, 2], strides = [1, 1]} : vector<256x2xf32> to vector<64x2xf32>
    %14 = arith.negf %13 : vector<64x2xf32>
    %15 = math.exp %14 : vector<64x2xf32>
    %cst_10 = arith.constant 1.000000e+00 : f32
    %16 = vector.broadcast %cst_10 : f32 to vector<64x2xf32>
    %17 = arith.addf %16, %15 : vector<64x2xf32>
    %18 = arith.divf %16, %17 : vector<64x2xf32>
    %19 = vector.extract_strided_slice %12 {offsets = [64, 0], sizes = [64, 2], strides = [1, 1]} : vector<256x2xf32> to vector<64x2xf32>
    %20 = arith.negf %19 : vector<64x2xf32>
    %21 = math.exp %20 : vector<64x2xf32>
    %cst_11 = arith.constant 1.000000e+00 : f32
    %22 = vector.broadcast %cst_11 : f32 to vector<64x2xf32>
    %23 = arith.addf %22, %21 : vector<64x2xf32>
    %24 = arith.divf %22, %23 : vector<64x2xf32>
    %25 = vector.extract_strided_slice %12 {offsets = [128, 0], sizes = [64, 2], strides = [1, 1]} : vector<256x2xf32> to vector<64x2xf32>
    %26 = math.tanh %25 : vector<64x2xf32>
    %27 = vector.extract_strided_slice %12 {offsets = [192, 0], sizes = [64, 2], strides = [1, 1]} : vector<256x2xf32> to vector<64x2xf32>
    %28 = arith.negf %27 : vector<64x2xf32>
    %29 = math.exp %28 : vector<64x2xf32>
    %cst_12 = arith.constant 1.000000e+00 : f32
    %30 = vector.broadcast %cst_12 : f32 to vector<64x2xf32>
    %31 = arith.addf %30, %29 : vector<64x2xf32>
    %32 = arith.divf %30, %31 : vector<64x2xf32>
    %33 = arith.mulf %24, %8 : vector<64x2xf32>
    %34 = arith.mulf %18, %26 : vector<64x2xf32>
    %35 = arith.addf %33, %34 : vector<64x2xf32>
    %36 = math.tanh %35 : vector<64x2xf32>
    %37 = arith.mulf %32, %36 : vector<64x2xf32>
    %38 = arith.truncf %37 : vector<64x2xf32> to vector<64x2xbf16>
    %cst_13 = arith.constant dense<0.000000e+00> : vector<256x2xf32>
    %39 = tpu.matmul %6, %38, %cst_13 {dimension_numbers = #tpu.dot_dimension_numbers<[1], [0], [0], [1], [0, 0, 1, 1], [], []>} : vector<256x64xbf16>, vector<64x2xbf16>, vector<256x2xf32> -> vector<256x2xf32>
    %40 = vector.extract_strided_slice %5 {offsets = [256, 0], sizes = [256, 2], strides = [1, 1]} : vector<1280x2xf32> to vector<256x2xf32>
    %41 = arith.addf %39, %40 : vector<256x2xf32>
    %42 = vector.extract_strided_slice %41 {offsets = [0, 0], sizes = [64, 2], strides = [1, 1]} : vector<256x2xf32> to vector<64x2xf32>
    %43 = arith.negf %42 : vector<64x2xf32>
    %44 = math.exp %43 : vector<64x2xf32>
    %cst_14 = arith.constant 1.000000e+00 : f32
    %45 = vector.broadcast %cst_14 : f32 to vector<64x2xf32>
    %46 = arith.addf %45, %44 : vector<64x2xf32>
    %47 = arith.divf %45, %46 : vector<64x2xf32>
    %48 = vector.extract_strided_slice %41 {offsets = [64, 0], sizes = [64, 2], strides = [1, 1]} : vector<256x2xf32> to vector<64x2xf32>
    %49 = arith.negf %48 : vector<64x2xf32>
    %50 = math.exp %49 : vector<64x2xf32>
    %cst_15 = arith.constant 1.000000e+00 : f32
    %51 = vector.broadcast %cst_15 : f32 to vector<64x2xf32>
    %52 = arith.addf %51, %50 : vector<64x2xf32>
    %53 = arith.divf %51, %52 : vector<64x2xf32>
    %54 = vector.extract_strided_slice %41 {offsets = [128, 0], sizes = [64, 2], strides = [1, 1]} : vector<256x2xf32> to vector<64x2xf32>
    %55 = math.tanh %54 : vector<64x2xf32>
    %56 = vector.extract_strided_slice %41 {offsets = [192, 0], sizes = [64, 2], strides = [1, 1]} : vector<256x2xf32> to vector<64x2xf32>
    %57 = arith.negf %56 : vector<64x2xf32>
    %58 = math.exp %57 : vector<64x2xf32>
    %cst_16 = arith.constant 1.000000e+00 : f32
    %59 = vector.broadcast %cst_16 : f32 to vector<64x2xf32>
    %60 = arith.addf %59, %58 : vector<64x2xf32>
    %61 = arith.divf %59, %60 : vector<64x2xf32>
    %62 = arith.mulf %53, %35 : vector<64x2xf32>
    %63 = arith.mulf %47, %55 : vector<64x2xf32>
    %64 = arith.addf %62, %63 : vector<64x2xf32>
    %65 = math.tanh %64 : vector<64x2xf32>
    %66 = arith.mulf %61, %65 : vector<64x2xf32>
    %67 = arith.truncf %66 : vector<64x2xf32> to vector<64x2xbf16>
    %cst_17 = arith.constant dense<0.000000e+00> : vector<256x2xf32>
    %68 = tpu.matmul %6, %67, %cst_17 {dimension_numbers = #tpu.dot_dimension_numbers<[1], [0], [0], [1], [0, 0, 1, 1], [], []>} : vector<256x64xbf16>, vector<64x2xbf16>, vector<256x2xf32> -> vector<256x2xf32>
    %69 = vector.extract_strided_slice %5 {offsets = [512, 0], sizes = [256, 2], strides = [1, 1]} : vector<1280x2xf32> to vector<256x2xf32>
    %70 = arith.addf %68, %69 : vector<256x2xf32>
    %71 = vector.extract_strided_slice %70 {offsets = [0, 0], sizes = [64, 2], strides = [1, 1]} : vector<256x2xf32> to vector<64x2xf32>
    %72 = arith.negf %71 : vector<64x2xf32>
    %73 = math.exp %72 : vector<64x2xf32>
    %cst_18 = arith.constant 1.000000e+00 : f32
    %74 = vector.broadcast %cst_18 : f32 to vector<64x2xf32>
    %75 = arith.addf %74, %73 : vector<64x2xf32>
    %76 = arith.divf %74, %75 : vector<64x2xf32>
    %77 = vector.extract_strided_slice %70 {offsets = [64, 0], sizes = [64, 2], strides = [1, 1]} : vector<256x2xf32> to vector<64x2xf32>
    %78 = arith.negf %77 : vector<64x2xf32>
    %79 = math.exp %78 : vector<64x2xf32>
    %cst_19 = arith.constant 1.000000e+00 : f32
    %80 = vector.broadcast %cst_19 : f32 to vector<64x2xf32>
    %81 = arith.addf %80, %79 : vector<64x2xf32>
    %82 = arith.divf %80, %81 : vector<64x2xf32>
    %83 = vector.extract_strided_slice %70 {offsets = [128, 0], sizes = [64, 2], strides = [1, 1]} : vector<256x2xf32> to vector<64x2xf32>
    %84 = math.tanh %83 : vector<64x2xf32>
    %85 = vector.extract_strided_slice %70 {offsets = [192, 0], sizes = [64, 2], strides = [1, 1]} : vector<256x2xf32> to vector<64x2xf32>
    %86 = arith.negf %85 : vector<64x2xf32>
    %87 = math.exp %86 : vector<64x2xf32>
    %cst_20 = arith.constant 1.000000e+00 : f32
    %88 = vector.broadcast %cst_20 : f32 to vector<64x2xf32>
    %89 = arith.addf %88, %87 : vector<64x2xf32>
    %90 = arith.divf %88, %89 : vector<64x2xf32>
    %91 = arith.mulf %82, %64 : vector<64x2xf32>
    %92 = arith.mulf %76, %84 : vector<64x2xf32>
    %93 = arith.addf %91, %92 : vector<64x2xf32>
    %94 = math.tanh %93 : vector<64x2xf32>
    %95 = arith.mulf %90, %94 : vector<64x2xf32>
    %96 = arith.truncf %95 : vector<64x2xf32> to vector<64x2xbf16>
    %cst_21 = arith.constant dense<0.000000e+00> : vector<256x2xf32>
    %97 = tpu.matmul %6, %96, %cst_21 {dimension_numbers = #tpu.dot_dimension_numbers<[1], [0], [0], [1], [0, 0, 1, 1], [], []>} : vector<256x64xbf16>, vector<64x2xbf16>, vector<256x2xf32> -> vector<256x2xf32>
    %98 = vector.extract_strided_slice %5 {offsets = [768, 0], sizes = [256, 2], strides = [1, 1]} : vector<1280x2xf32> to vector<256x2xf32>
    %99 = arith.addf %97, %98 : vector<256x2xf32>
    %100 = vector.extract_strided_slice %99 {offsets = [0, 0], sizes = [64, 2], strides = [1, 1]} : vector<256x2xf32> to vector<64x2xf32>
    %101 = arith.negf %100 : vector<64x2xf32>
    %102 = math.exp %101 : vector<64x2xf32>
    %cst_22 = arith.constant 1.000000e+00 : f32
    %103 = vector.broadcast %cst_22 : f32 to vector<64x2xf32>
    %104 = arith.addf %103, %102 : vector<64x2xf32>
    %105 = arith.divf %103, %104 : vector<64x2xf32>
    %106 = vector.extract_strided_slice %99 {offsets = [64, 0], sizes = [64, 2], strides = [1, 1]} : vector<256x2xf32> to vector<64x2xf32>
    %107 = arith.negf %106 : vector<64x2xf32>
    %108 = math.exp %107 : vector<64x2xf32>
    %cst_23 = arith.constant 1.000000e+00 : f32
    %109 = vector.broadcast %cst_23 : f32 to vector<64x2xf32>
    %110 = arith.addf %109, %108 : vector<64x2xf32>
    %111 = arith.divf %109, %110 : vector<64x2xf32>
    %112 = vector.extract_strided_slice %99 {offsets = [128, 0], sizes = [64, 2], strides = [1, 1]} : vector<256x2xf32> to vector<64x2xf32>
    %113 = math.tanh %112 : vector<64x2xf32>
    %114 = vector.extract_strided_slice %99 {offsets = [192, 0], sizes = [64, 2], strides = [1, 1]} : vector<256x2xf32> to vector<64x2xf32>
    %115 = arith.negf %114 : vector<64x2xf32>
    %116 = math.exp %115 : vector<64x2xf32>
    %cst_24 = arith.constant 1.000000e+00 : f32
    %117 = vector.broadcast %cst_24 : f32 to vector<64x2xf32>
    %118 = arith.addf %117, %116 : vector<64x2xf32>
    %119 = arith.divf %117, %118 : vector<64x2xf32>
    %120 = arith.mulf %111, %93 : vector<64x2xf32>
    %121 = arith.mulf %105, %113 : vector<64x2xf32>
    %122 = arith.addf %120, %121 : vector<64x2xf32>
    %123 = math.tanh %122 : vector<64x2xf32>
    %124 = arith.mulf %119, %123 : vector<64x2xf32>
    %125 = arith.truncf %124 : vector<64x2xf32> to vector<64x2xbf16>
    %cst_25 = arith.constant dense<0.000000e+00> : vector<256x2xf32>
    %126 = tpu.matmul %6, %125, %cst_25 {dimension_numbers = #tpu.dot_dimension_numbers<[1], [0], [0], [1], [0, 0, 1, 1], [], []>} : vector<256x64xbf16>, vector<64x2xbf16>, vector<256x2xf32> -> vector<256x2xf32>
    %127 = vector.extract_strided_slice %5 {offsets = [1024, 0], sizes = [256, 2], strides = [1, 1]} : vector<1280x2xf32> to vector<256x2xf32>
    %128 = arith.addf %126, %127 : vector<256x2xf32>
    %129 = vector.extract_strided_slice %128 {offsets = [0, 0], sizes = [64, 2], strides = [1, 1]} : vector<256x2xf32> to vector<64x2xf32>
    %130 = arith.negf %129 : vector<64x2xf32>
    %131 = math.exp %130 : vector<64x2xf32>
    %cst_26 = arith.constant 1.000000e+00 : f32
    %132 = vector.broadcast %cst_26 : f32 to vector<64x2xf32>
    %133 = arith.addf %132, %131 : vector<64x2xf32>
    %134 = arith.divf %132, %133 : vector<64x2xf32>
    %135 = vector.extract_strided_slice %128 {offsets = [64, 0], sizes = [64, 2], strides = [1, 1]} : vector<256x2xf32> to vector<64x2xf32>
    %136 = arith.negf %135 : vector<64x2xf32>
    %137 = math.exp %136 : vector<64x2xf32>
    %cst_27 = arith.constant 1.000000e+00 : f32
    %138 = vector.broadcast %cst_27 : f32 to vector<64x2xf32>
    %139 = arith.addf %138, %137 : vector<64x2xf32>
    %140 = arith.divf %138, %139 : vector<64x2xf32>
    %141 = vector.extract_strided_slice %128 {offsets = [128, 0], sizes = [64, 2], strides = [1, 1]} : vector<256x2xf32> to vector<64x2xf32>
    %142 = math.tanh %141 : vector<64x2xf32>
    %143 = vector.extract_strided_slice %128 {offsets = [192, 0], sizes = [64, 2], strides = [1, 1]} : vector<256x2xf32> to vector<64x2xf32>
    %144 = arith.negf %143 : vector<64x2xf32>
    %145 = math.exp %144 : vector<64x2xf32>
    %cst_28 = arith.constant 1.000000e+00 : f32
    %146 = vector.broadcast %cst_28 : f32 to vector<64x2xf32>
    %147 = arith.addf %146, %145 : vector<64x2xf32>
    %148 = arith.divf %146, %147 : vector<64x2xf32>
    %149 = arith.mulf %140, %122 : vector<64x2xf32>
    %150 = arith.mulf %134, %142 : vector<64x2xf32>
    %151 = arith.addf %149, %150 : vector<64x2xf32>
    %152 = math.tanh %151 : vector<64x2xf32>
    %153 = arith.mulf %148, %152 : vector<64x2xf32>
    %c0_29 = arith.constant 0 : index
    %c0_30 = arith.constant 0 : index
    %154 = vector.load %arg5[%c0_29, %c0_30] : memref<1x64xbf16, #tpu.memory_space<vmem>>, vector<1x64xbf16>
    %155 = arith.truncf %153 : vector<64x2xf32> to vector<64x2xbf16>
    %cst_31 = arith.constant dense<0.000000e+00> : vector<1x2xf32>
    %156 = tpu.matmul %154, %155, %cst_31 {dimension_numbers = #tpu.dot_dimension_numbers<[1], [0], [0], [1], [0, 0, 1, 1], [], []>} : vector<1x64xbf16>, vector<64x2xbf16>, vector<1x2xf32> -> vector<1x2xf32>
    %c0_32 = arith.constant 0 : index
    %c0_33 = arith.constant 0 : index
    %157 = vector.load %arg6[%c0_32, %c0_33] : memref<1x1xf32, #tpu.memory_space<vmem>>, vector<1x1xf32>
    %158 = vector.broadcast %157 : vector<1x1xf32> to vector<1x2xf32>
    %159 = arith.addf %156, %158 : vector<1x2xf32>
    %160 = arith.negf %159 : vector<1x2xf32>
    %161 = math.exp %160 : vector<1x2xf32>
    %cst_34 = arith.constant 1.000000e+00 : f32
    %162 = vector.broadcast %cst_34 : f32 to vector<1x2xf32>
    %163 = arith.addf %162, %161 : vector<1x2xf32>
    %164 = arith.divf %162, %163 : vector<1x2xf32>
    %c0_35 = arith.constant 0 : index
    %c0_36 = arith.constant 0 : index
    %165 = vector.load %arg7[%c0_35, %c0_36] : memref<1x2xf32, #tpu.memory_space<vmem>>, vector<1x2xf32>
    tpu.vector_store %arg7[%c0_35, %c0_36], %164 {strides = array<i32>} : memref<1x2xf32, #tpu.memory_space<vmem>>, vector<1x2xf32>,
    return
  }
  func.func @transform_0(%arg0: i32) -> (i32, i32) {
    %c0_i32 = arith.constant 0 : i32
    %c0_i32_0 = arith.constant 0 : i32
    return %c0_i32, %arg0 : i32, i32
  }
  func.func @transform_1(%arg0: i32) -> (i32, i32) {
    %c0_i32 = arith.constant 0 : i32
    %c0_i32_0 = arith.constant 0 : i32
    %c0_i32_1 = arith.constant 0 : i32
    return %c0_i32, %c0_i32_0 : i32, i32
  }
  func.func @transform_2(%arg0: i32) -> (i32, i32) {
    %c0_i32 = arith.constant 0 : i32
    %c0_i32_0 = arith.constant 0 : i32
    %c0_i32_1 = arith.constant 0 : i32
    return %c0_i32, %c0_i32_0 : i32, i32
  }
  func.func @transform_3(%arg0: i32) -> (i32, i32) {
    %c0_i32 = arith.constant 0 : i32
    %c0_i32_0 = arith.constant 0 : i32
    %c0_i32_1 = arith.constant 0 : i32
    return %c0_i32, %c0_i32_0 : i32, i32
  }
  func.func @transform_4(%arg0: i32) -> (i32, i32) {
    %c0_i32 = arith.constant 0 : i32
    %c0_i32_0 = arith.constant 0 : i32
    %c0_i32_1 = arith.constant 0 : i32
    return %c0_i32, %c0_i32_0 : i32, i32
  }
  func.func @transform_5(%arg0: i32) -> (i32, i32) {
    %c0_i32 = arith.constant 0 : i32
    %c0_i32_0 = arith.constant 0 : i32
    %c0_i32_1 = arith.constant 0 : i32
    return %c0_i32, %c0_i32_0 : i32, i32
  }
  func.func @transform_6(%arg0: i32) -> (i32, i32) {
    %c0_i32 = arith.constant 0 : i32
    %c0_i32_0 = arith.constant 0 : i32
    return %c0_i32, %arg0 : i32, i32
  }
}

</mosaic_0001>

<bundles_post_ra>
// kernel: tpu_custom_call.1
= control target key start
LH: loop header
LB: loop body
LE: loop exit
PB: predicated region body
PF: predicated region fallthrough
CT: control target
= control target key end

     0   :  { %s8778_s0 = inlined_call_operand.vmem [shape: bf16[40,2], index: 0, kind: input, shape index: {}]   ;;  %s8779_s1 = inlined_call_operand.vmem [shape: bf16[1280,40], index: 1, kind: input, shape index: {}]   ;;  %s8780_s2 = inlined_call_operand.vmem [shape: bf16[256,64], index: 2, kind: input, shape index: {}]   ;;  %s8781_s3 = inlined_call_operand.vmem [shape: f32[1280,1], index: 3, kind: input, shape index: {}]   ;;  %s8782_s4 = inlined_call_operand.vmem [shape: bf16[1,64], index: 4, kind: input, shape index: {}]   ;;  %s8783_s5 = inlined_call_operand.<no memory space> [shape: f32[1,1], index: 5, kind: input, shape index: {}]   ;;  %s8784_s6 = inlined_call_operand.hbm [shape: f32[1,2], index: 6, kind: output, shape index: {}]  }
   0x1   :  { %v11_v0 = vstv %s8783_s5 }
   0x2   :  { %12 = vst [vmem:[#allocation2] sm:$0x1] %v11_v0 }
   0x3   :  { %v200_v1 = vld [vmem:[%s8781_s3 + $0x40] sm:$0xff]  ;;  %v6571_v3 = vmov 0   ;;  %v201_v5 = vld [vmem:[%s8781_s3 + $0x48] sm:$0xff]  ;;  %vm2597_vm0 = vcmask 523264   ;;  %v5774_v8 = vld [vmem:[%s8778_s0 + $0x10] ss:$0 sps:$4 sm:$0xff]  }
   0x4   :  { %v192_v2 = vld [vmem:[%s8781_s3] sm:$0xff]  ;;  %5771 = vset.pattern.permute.xlu1 %v6571_v3  ;;  %5770 = vset.pattern.permute.xlu0 %v6571_v3  ;;  %v193_v6 = vld [vmem:[%s8781_s3 + $0x8] sm:$0xff]  ;;  %v195_v10 = vld [vmem:[%s8781_s3 + $0x18] sm:$0xff]  ;;  %vm1808_vm1 = vcmask 1043456   ;;  %vm1567_vm2 = vcmask 326656  }
   0x5   :  { %v5772_v4 = vld [vmem:[%s8778_s0] sm:$0xff]   ;;  %394 = vperm.xlu1 %5771, %v200_v1   ;;  %354 = vperm.xlu0 %5770, %v192_v2   ;;  %v5773_v7 = vld [vmem:[%s8778_s0 + $0x8] sm:$0xff]   ;;  %v194_v12 = vld [vmem:[%s8781_s3 + $0x10] sm:$0xff]  ;;  %v1810_v14 = vsel %vm1808_vm1, %v5774_v8, 0 }
   0x6   :  { %5073 = vmatprep.subr.bf16.mxu1 %v5772_v4  ;;  %5239 = vmatprep.subr.bf16.mxu0 %v6571_v3  ;;  %v6637_v9 = vld [vmem:[%s8780_s2] sm:$0xff]   ;;  %v5776_v11 = vld [vmem:[%s8780_s2 + $0x8] sm:$0xff]   ;;  %v203_v15 = vld [vmem:[%s8781_s3 + $0x58] sm:$0xff] }
   0x7   :  { %5074 = vmatpush3.bf16.msra.mxu1 %v5772_v4  ;;  %5240 = vmatpush3.bf16.msra.mxu0 %v6571_v3  ;;  %v5777_v13 = vld [vmem:[%s8779_s1] sm:$0xff]   ;;  %v202_v16 = vld [vmem:[%s8781_s3 + $0x50] sm:$0xff]  ;;  %v5778_v18 = vld [vmem:[%s8779_s1 + $0x8] sm:$0xff]  }
   0x8   :  { %5075 = vmatprep.subr.bf16.mxu1 %v5773_v7  ;;  %5241 = vmatprep.mubr.msk.bf16.mxu0 %vm2597_vm0, %v6637_v9  ;;  %v5779_v17 = vld [vmem:[%s8780_s2 + $0x10] sm:$0xff]   ;;  %v5780_v19 = vld [vmem:[%s8780_s2 + $0x18] sm:$0xff]   ;;  %v197_v21 = vld [vmem:[%s8781_s3 + $0x28] sm:$0xff] }
   0x9   :  { %399 = vperm.xlu1 %5771, %v201_v5   ;;  %359 = vperm.xlu0 %5770, %v193_v6   ;;  %v5781_v20 = vld [vmem:[%s8779_s1 + $0x10] sm:$0xff]   ;;  %v196_v22 = vld [vmem:[%s8781_s3 + $0x20] sm:$0xff]  ;;  %v205_v24 = vld [vmem:[%s8781_s3 + $0x68] sm:$0xff] }
   0xa   :  { %5242 = vmatmul.mubr.msk.bf16.vlgmr.msra.gmra.mrb[0].mxu0 %vm2597_vm0, %v5776_v11  ;;  %5079 = vmatprep.mubr.msk.bf16.mxu1 %vm1567_vm2, %v5777_v13  ;;  %v5783_v23 = vld [vmem:[%s8780_s2 + $0x20] sm:$0xff]   ;;  %v5782_v26 = vld [vmem:[%s8779_s1 + $0x18] sm:$0xff]   ;;  %v5784_v27 = vld [vmem:[%s8780_s2 + $0x28] sm:$0xff]  }
   0xb   :  { %5076 = vmatpush3.bf16.msra.mxu1 %v5773_v7  ;;  %5245 = vmatprep.mubr.msk.bf16.mxu0 %vm2597_vm0, %v5779_v17  ;;  %v204_v25 = vld [vmem:[%s8781_s3 + $0x60] sm:$0xff]  ;;  %v5787_v29 = vld [vmem:[%s8780_s2 + $0x30] sm:$0xff]   ;;  %v199_v30 = vld [vmem:[%s8781_s3 + $0x38] sm:$0xff] }
   0xc   :  { %5765 = vmatprep.subr.msk.bf16.mxu1 %vm1808_vm1, %v5774_v8  ;;  %v5785_v28 = vld [vmem:[%s8779_s1 + $0x20] sm:$0xff]   ;;  %v198_v31 = vld [vmem:[%s8781_s3 + $0x30] sm:$0xff]  ;;  %v207_v32 = vld [vmem:[%s8781_s3 + $0x78] sm:$0xff] }
   0xd   :  { %369 = vperm.xlu1 %5771, %v195_v10   ;;  %364 = vperm.xlu0 %5770, %v194_v12   ;;  %v206_v33 = vld [vmem:[%s8781_s3 + $0x70] sm:$0xff]  ;;  %v5786_v34 = vld [vmem:[%s8779_s1 + $0x28] sm:$0xff]   ;;  %v5788_v35 = vld [vmem:[%s8780_s2 + $0x38] sm:$0xff]  }
   0xe   :  { %v5789_v36 = vld [vmem:[%s8779_s1 + $0x30] sm:$0xff]   ;;  %v5791_v37 = vld [vmem:[%s8780_s2 + $0x40] sm:$0xff]   ;;  %v209_v38 = vld [vmem:[%s8781_s3 + $0x88] sm:$0xff] }
   0xf   :  { %5078 = vmatpush3.bf16.msra.mxu1 %v1810_v14  ;;  %v208_v39 = vld [vmem:[%s8781_s3 + $0x80] sm:$0xff]  ;;  %v217_v40 = vld [vmem:[%s8781_s3 + $0xc8] sm:$0xff]  ;;  %v5790_v42 = vld [vmem:[%s8779_s1 + $0x38] sm:$0xff]  }
  0x10   :  { %v216_v41 = vld [vmem:[%s8781_s3 + $0xc0] sm:$0xff]  ;;  %v5792_v43 = vld [vmem:[%s8780_s2 + $0x48] sm:$0xff]   ;;  %v5795_v45 = vld [vmem:[%s8780_s2 + $0x50] sm:$0xff]  }
  0x11   :  { %409 = vperm.xlu1 %5771, %v203_v15   ;;  %404 = vperm.xlu0 %5770, %v202_v16   ;;  %v5793_v44 = vld [vmem:[%s8779_s1 + $0x40] sm:$0xff]   ;;  %v211_v46 = vld [vmem:[%s8781_s3 + $0x98] sm:$0xff]  ;;  %v210_v47 = vld [vmem:[%s8781_s3 + $0x90] sm:$0xff] }
  0x12   :  { %5080 = vmatmul.mubr.msk.bf16.vlgmr.msra.gmra.mrb[0].mxu1 %vm1567_vm2, %v5778_v18  ;;  %5246 = vmatmul.mubr.msk.bf16.gmra.mrb[4].mxu0 %vm2597_vm0, %v5780_v19  ;;  %v219_v48 = vld [vmem:[%s8781_s3 + $0xd8] sm:$0xff]  ;;  %v218_v49 = vld [vmem:[%s8781_s3 + $0xd0] sm:$0xff]  ;;  %v5794_v50 = vld [vmem:[%s8779_s1 + $0x48] sm:$0xff]  }
  0x13   :  { %5083 = vmatprep.mubr.msk.bf16.mxu1 %vm1567_vm2, %v5781_v20  ;;  %5249 = vmatprep.mubr.msk.bf16.mxu0 %vm2597_vm0, %v5783_v23  ;;  %v5796_v51 = vld [vmem:[%s8780_s2 + $0x58] sm:$0xff]   ;;  %v5797_v52 = vld [vmem:[%s8779_s1 + $0x50] sm:$0xff]   ;;  %v5799_v53 = vld [vmem:[%s8780_s2 + $0x60] sm:$0xff]  }
  0x14   :  { %v213_v54 = vld [vmem:[%s8781_s3 + $0xa8] sm:$0xff]  ;;  %v212_v55 = vld [vmem:[%s8781_s3 + $0xa0] sm:$0xff]  ;;  %v5798_v58 = vld [vmem:[%s8779_s1 + $0x58] sm:$0xff]  }
  0x15   :  { %379 = vperm.xlu1 %5771, %v197_v21   ;;  %374 = vperm.xlu0 %5770, %v196_v22   ;;  %v221_v56 = vld [vmem:[%s8781_s3 + $0xe8] sm:$0xff]  ;;  %v220_v57 = vld [vmem:[%s8781_s3 + $0xe0] sm:$0xff]  ;;  %v5803_v61 = vld [vmem:[%s8780_s2 + $0x70] sm:$0xff]  }
  0x16   :  { %v5800_v59 = vld [vmem:[%s8780_s2 + $0x68] sm:$0xff]   ;;  %v5801_v60 = vld [vmem:[%s8779_s1 + $0x60] sm:$0xff]   ;;  %v215_v62 = vld [vmem:[%s8781_s3 + $0xb8] sm:$0xff] }
  0x17   :  { %v214_v63 = vld [vmem:[%s8781_s3 + $0xb0] sm:$0xff]  ;;  %v223_v0 = vld [vmem:[%s8781_s3 + $0xf8] sm:$0xff]  ;;  %v5802_v2 = vld [vmem:[%s8779_s1 + $0x68] sm:$0xff]  }
  0x18   :  { %v222_v1 = vld [vmem:[%s8781_s3 + $0xf0] sm:$0xff]  ;;  %v5804_v3 = vld [vmem:[%s8780_s2 + $0x78] sm:$0xff]   ;;  %v225_v5 = vld [vmem:[%s8781_s3 + $0x108] sm:$0xff] }
  0x19   :  { %419 = vperm.xlu1 %5771, %v205_v24   ;;  %414 = vperm.xlu0 %5770, %v204_v25   ;;  %v5805_v4 = vld [vmem:[%s8779_s1 + $0x70] sm:$0xff]   ;;  %v224_v6 = vld [vmem:[%s8781_s3 + $0x100] sm:$0xff]  ;;  %v233_v7 = vld [vmem:[%s8781_s3 + $0x148] sm:$0xff] }
  0x1a   :  { %5084 = vmatmul.mubr.msk.bf16.gmra.mrb[4].mxu1 %vm1567_vm2, %v5782_v26  ;;  %5250 = vmatmul.mubr.msk.bf16.gmra.mrb[8].mxu0 %vm2597_vm0, %v5784_v27  ;;  %v232_v8 = vld [vmem:[%s8781_s3 + $0x140] sm:$0xff]  ;;  %v5806_v10 = vld [vmem:[%s8779_s1 + $0x78] sm:$0xff]   ;;  %v226_v12 = vld [vmem:[%s8781_s3 + $0x110] sm:$0xff] }
  0x1b   :  { %5087 = vmatprep.mubr.msk.bf16.mxu1 %vm1567_vm2, %v5785_v28  ;;  %5253 = vmatprep.mubr.msk.bf16.mxu0 %vm2597_vm0, %v5787_v29  ;;  %v5807_v11 = vld [vmem:[%s8779_s1 + $0x80] sm:$0xff]   ;;  %v235_v13 = vld [vmem:[%s8781_s3 + $0x158] sm:$0xff]  ;;  %v234_v14 = vld [vmem:[%s8781_s3 + $0x150] sm:$0xff] }
  0x1c   :  { %v5808_v15 = vld [vmem:[%s8779_s1 + $0x88] sm:$0xff]   ;;  %v5809_v16 = vld [vmem:[%s8779_s1 + $0x90] sm:$0xff]   ;;  %v228_v18 = vld [vmem:[%s8781_s3 + $0x120] sm:$0xff] }
  0x1d   :  { %389 = vperm.xlu1 %5771, %v199_v30   ;;  %384 = vperm.xlu0 %5770, %v198_v31   ;;  %v229_v17 = vld [vmem:[%s8781_s3 + $0x128] sm:$0xff]  ;;  %v236_v20 = vld [vmem:[%s8781_s3 + $0x160] sm:$0xff]  ;;  %v5810_v21 = vld [vmem:[%s8779_s1 + $0x98] sm:$0xff]  }
  0x1e   :  { %v237_v19 = vld [vmem:[%s8781_s3 + $0x168] sm:$0xff]  ;;  %v5811_v22 = vld [vmem:[%s8779_s1 + $0xa0] sm:$0xff]   ;;  %v231_v23 = vld [vmem:[%s8781_s3 + $0x138] sm:$0xff] }
  0x1f   :  { %v230_v24 = vld [vmem:[%s8781_s3 + $0x130] sm:$0xff]  ;;  %v239_v25 = vld [vmem:[%s8781_s3 + $0x178] sm:$0xff]  ;;  %v5812_v27 = vld [vmem:[%s8779_s1 + $0xa8] sm:$0xff]  }
  0x20   :  { %v238_v26 = vld [vmem:[%s8781_s3 + $0x170] sm:$0xff]  ;;  %v241_v29 = vld [vmem:[%s8781_s3 + $0x188] sm:$0xff]  ;;  %v240_v30 = vld [vmem:[%s8781_s3 + $0x180] sm:$0xff] }
  0x21   :  { %429 = vperm.xlu1 %5771, %v207_v32   ;;  %424 = vperm.xlu0 %5770, %v206_v33   ;;  %v5813_v28 = vld [vmem:[%s8779_s1 + $0xb0] sm:$0xff]   ;;  %v249_v31 = vld [vmem:[%s8781_s3 + $0x1c8] sm:$0xff]  ;;  %v248_v32 = vld [vmem:[%s8781_s3 + $0x1c0] sm:$0xff] }
  0x22   :  { %5088 = vmatmul.mubr.msk.bf16.gmra.mrb[8].mxu1 %vm1567_vm2, %v5786_v34  ;;  %5254 = vmatmul.mubr.msk.bf16.gmra.mrb[12].mxu0 %vm2597_vm0, %v5788_v35  ;;  %v5814_v33 = vld [vmem:[%s8779_s1 + $0xb8] sm:$0xff]   ;;  %v5815_v34 = vld [vmem:[%s8779_s1 + $0xc0] sm:$0xff]  }
  0x23   :  { %5091 = vmatprep.mubr.msk.bf16.mxu1 %vm1567_vm2, %v5789_v36  ;;  %5257 = vmatprep.mubr.msk.bf16.mxu0 %vm2597_vm0, %v5791_v37  ;;  %v243_v35 = vld [vmem:[%s8781_s3 + $0x198] sm:$0xff]  ;;  %v242_v36 = vld [vmem:[%s8781_s3 + $0x190] sm:$0xff] }
  0x24   :  { %v251_v37 = vld [vmem:[%s8781_s3 + $0x1d8] sm:$0xff] }
  0x25   :  { %439 = vperm.xlu1 %5771, %v209_v38   ;;  %434 = vperm.xlu0 %5770, %v208_v39   ;;  %v250_v38 = vld [vmem:[%s8781_s3 + $0x1d0] sm:$0xff]  ;;  %v5816_v39 = vld [vmem:[%s8779_s1 + $0xc8] sm:$0xff]  }
  0x29   :  { %479 = vperm.xlu1 %5771, %v217_v40   ;;  %474 = vperm.xlu0 %5770, %v216_v41   ;;  %v5817_v40 = vld [vmem:[%s8779_s1 + $0xd0] sm:$0xff]   ;;  %v245_v41 = vld [vmem:[%s8781_s3 + $0x1a8] sm:$0xff] }
  0x2a   :  { %5092 = vmatmul.mubr.msk.bf16.gmra.mrb[12].mxu1 %vm1567_vm2, %v5790_v42  ;;  %5258 = vmatmul.mubr.msk.bf16.gmra.mrb[16].mxu0 %vm2597_vm0, %v5792_v43  ;;  %v244_v42 = vld [vmem:[%s8781_s3 + $0x1a0] sm:$0xff]  ;;  %v253_v43 = vld [vmem:[%s8781_s3 + $0x1e8] sm:$0xff] }
  0x2b   :  { %5095 = vmatprep.mubr.msk.bf16.mxu1 %vm1567_vm2, %v5793_v44  ;;  %5261 = vmatprep.mubr.msk.bf16.mxu0 %vm2597_vm0, %v5795_v45  ;;  %v252_v44 = vld [vmem:[%s8781_s3 + $0x1e0] sm:$0xff]  ;;  %v5818_v45 = vld [vmem:[%s8779_s1 + $0xd8] sm:$0xff]  }
  0x2d   :  { %449 = vperm.xlu1 %5771, %v211_v46   ;;  %444 = vperm.xlu0 %5770, %v210_v47   ;;  %v5819_v46 = vld [vmem:[%s8779_s1 + $0xe0] sm:$0xff]   ;;  %v247_v47 = vld [vmem:[%s8781_s3 + $0x1b8] sm:$0xff] }
  0x31   :  { %489 = vperm.xlu1 %5771, %v219_v48   ;;  %484 = vperm.xlu0 %5770, %v218_v49   ;;  %v246_v48 = vld [vmem:[%s8781_s3 + $0x1b0] sm:$0xff]  ;;  %v255_v49 = vld [vmem:[%s8781_s3 + $0x1f8] sm:$0xff] }
  0x32   :  { %5096 = vmatmul.mubr.msk.bf16.gmra.mrb[16].mxu1 %vm1567_vm2, %v5794_v50  ;;  %5262 = vmatmul.mubr.msk.bf16.gmra.mrb[20].mxu0 %vm2597_vm0, %v5796_v51  ;;  %v254_v50 = vld [vmem:[%s8781_s3 + $0x1f0] sm:$0xff]  ;;  %v5820_v51 = vld [vmem:[%s8779_s1 + $0xe8] sm:$0xff]  }
  0x33   :  { %5099 = vmatprep.mubr.msk.bf16.mxu1 %vm1567_vm2, %v5797_v52  ;;  %5265 = vmatprep.mubr.msk.bf16.mxu0 %vm2597_vm0, %v5799_v53  ;;  %v5821_v52 = vld [vmem:[%s8779_s1 + $0xf0] sm:$0xff]   ;;  %v257_v53 = vld [vmem:[%s8781_s3 + $0x208] sm:$0xff] }
  0x35   :  { %459 = vperm.xlu1 %5771, %v213_v54   ;;  %454 = vperm.xlu0 %5770, %v212_v55   ;;  %v256_v54 = vld [vmem:[%s8781_s3 + $0x200] sm:$0xff] }
  0x39   :  { %499 = vperm.xlu1 %5771, %v221_v56   ;;  %494 = vperm.xlu0 %5770, %v220_v57   ;;  %v265_v57 = vld [vmem:[%s8781_s3 + $0x248] sm:$0xff] }
  0x3a   :  { %5100 = vmatmul.mubr.msk.bf16.gmra.mrb[20].mxu1 %vm1567_vm2, %v5798_v58  ;;  %5266 = vmatmul.mubr.msk.bf16.gmra.mrb[24].mxu0 %vm2597_vm0, %v5800_v59  ;;  %v264_v58 = vld [vmem:[%s8781_s3 + $0x240] sm:$0xff]  ;;  %v5822_v59 = vld [vmem:[%s8779_s1 + $0xf8] sm:$0xff]  }
  0x3b   :  { %5103 = vmatprep.mubr.msk.bf16.mxu1 %vm1567_vm2, %v5801_v60  ;;  %5269 = vmatprep.mubr.msk.bf16.mxu0 %vm2597_vm0, %v5803_v61  ;;  %v5823_v60 = vld [vmem:[%s8779_s1 + $0x100] sm:$0xff]  }
  0x3d   :  { %469 = vperm.xlu1 %5771, %v215_v62   ;;  %464 = vperm.xlu0 %5770, %v214_v63   ;;  %v259_v63 = vld [vmem:[%s8781_s3 + $0x218] sm:$0xff] }
  0x41   :  { %509 = vperm.xlu1 %5771, %v223_v0   ;;  %504 = vperm.xlu0 %5770, %v222_v1   ;;  %v258_v0 = vld [vmem:[%s8781_s3 + $0x210] sm:$0xff] }
  0x42   :  { %5104 = vmatmul.mubr.msk.bf16.gmra.mrb[24].mxu1 %vm1567_vm2, %v5802_v2  ;;  %5270 = vmatmul.mubr.msk.bf16.gmra.mrb[28].mxu0 %vm2597_vm0, %v5804_v3 }
  0x43   :  { %5107 = vmatprep.mubr.msk.bf16.mxu1 %vm1567_vm2, %v5805_v4  ;;  %5281 = vmatprep.mubr.msk.bf16.mxu0 %vm2597_vm0, %v6637_v9  ;;  %v227_v9 = vld [vmem:[%s8781_s3 + $0x118] sm:$0xff] }
  0x45   :  { %519 = vperm.xlu1 %5771, %v225_v5   ;;  %514 = vperm.xlu0 %5770, %v224_v6  }
  0x49   :  { %559 = vperm.xlu1 %5771, %v233_v7   ;;  %554 = vperm.xlu0 %5770, %v232_v8  }
  0x4a   :  { %5108 = vmatmul.mubr.msk.bf16.gmra.mrb[28].mxu1 %vm1567_vm2, %v5806_v10 }
  0x4b   :  { %5111 = vmatprep.mubr.msk.bf16.mxu1 %vm1567_vm2, %v5807_v11 }
  0x4d   :  { %529 = vperm.xlu1 %5771, %v227_v9   ;;  %524 = vperm.xlu0 %5770, %v226_v12  }
  0x51   :  { %569 = vperm.xlu1 %5771, %v235_v13   ;;  %564 = vperm.xlu0 %5770, %v234_v14  }
  0x52   :  { %5112 = vmatmul.mubr.msk.bf16.gmra.mrb[32].mxu1 %vm1567_vm2, %v5808_v15 }
  0x53   :  { %5115 = vmatprep.mubr.msk.bf16.mxu1 %vm1567_vm2, %v5809_v16 }
  0x55   :  { %539 = vperm.xlu1 %5771, %v229_v17   ;;  %534 = vperm.xlu0 %5770, %v228_v18  }
  0x59   :  { %579 = vperm.xlu1 %5771, %v237_v19   ;;  %574 = vperm.xlu0 %5770, %v236_v20  }
  0x5a   :  { %5116 = vmatmul.mubr.msk.bf16.gmra.mrb[36].mxu1 %vm1567_vm2, %v5810_v21 }
  0x5b   :  { %5119 = vmatprep.mubr.msk.bf16.mxu1 %vm1567_vm2, %v5811_v22 }
  0x5d   :  { %549 = vperm.xlu1 %5771, %v231_v23   ;;  %544 = vperm.xlu0 %5770, %v230_v24  }
  0x61   :  { %589 = vperm.xlu1 %5771, %v239_v25   ;;  %584 = vperm.xlu0 %5770, %v238_v26  }
  0x62   :  { %5120 = vmatmul.mubr.msk.bf16.gmra.mrb[40].mxu1 %vm1567_vm2, %v5812_v27 }
  0x63   :  { %5123 = vmatprep.mubr.msk.bf16.mxu1 %vm1567_vm2, %v5813_v28 }
  0x65   :  { %599 = vperm.xlu1 %5771, %v241_v29   ;;  %594 = vperm.xlu0 %5770, %v240_v30  }
  0x69   :  { %639 = vperm.xlu1 %5771, %v249_v31   ;;  %634 = vperm.xlu0 %5770, %v248_v32  }
  0x6a   :  { %5124 = vmatmul.mubr.msk.bf16.gmra.mrb[44].mxu1 %vm1567_vm2, %v5814_v33 }
  0x6b   :  { %5127 = vmatprep.mubr.msk.bf16.mxu1 %vm1567_vm2, %v5815_v34 }
  0x6d   :  { %609 = vperm.xlu1 %5771, %v243_v35   ;;  %604 = vperm.xlu0 %5770, %v242_v36  }
  0x71   :  { %649 = vperm.xlu1 %5771, %v251_v37   ;;  %644 = vperm.xlu0 %5770, %v250_v38  }
  0x72   :  { %5128 = vmatmul.mubr.msk.bf16.gmra.mrb[48].mxu1 %vm1567_vm2, %v5816_v39 }
  0x73   :  { %5131 = vmatprep.mubr.msk.bf16.mxu1 %vm1567_vm2, %v5817_v40 }
  0x75   :  { %619 = vperm.xlu1 %5771, %v245_v41   ;;  %614 = vperm.xlu0 %5770, %v244_v42  }
  0x79   :  { %659 = vperm.xlu1 %5771, %v253_v43   ;;  %654 = vperm.xlu0 %5770, %v252_v44  }
  0x7a   :  { %5132 = vmatmul.mubr.msk.bf16.gmra.mrb[52].mxu1 %vm1567_vm2, %v5818_v45 }
  0x7b   :  { %5135 = vmatprep.mubr.msk.bf16.mxu1 %vm1567_vm2, %v5819_v46 }
  0x7d   :  { %629 = vperm.xlu1 %5771, %v247_v47   ;;  %624 = vperm.xlu0 %5770, %v246_v48  }
  0x81   :  { %669 = vperm.xlu1 %5771, %v255_v49   ;;  %664 = vperm.xlu0 %5770, %v254_v50  }
  0x82   :  { %5136 = vmatmul.mubr.msk.bf16.gmra.mrb[56].mxu1 %vm1567_vm2, %v5820_v51 }
  0x83   :  { %5139 = vmatprep.mubr.msk.bf16.mxu1 %vm1567_vm2, %v5821_v52 }
  0x84   :  { %v7013_v55 = vpop.permute.xlu1 %394  ;;  %v7015_v56 = vpop.permute.xlu0 %354 }
  0x85   :  { %679 = vperm.xlu1 %5771, %v257_v53   ;;  %674 = vperm.xlu0 %5770, %v256_v54  }
  0x88   :  { %v7029_v61 = vpop.permute.xlu1 %399  ;;  %v7031_v62 = vpop.permute.xlu0 %359 }
  0x89   :  { %719 = vperm.xlu1 %5771, %v265_v57   ;;  %714 = vperm.xlu0 %5770, %v264_v58  }
  0x8a   :  { %5140 = vmatmul.mubr.msk.bf16.gmra.mrb[60].mxu1 %vm1567_vm2, %v5822_v59 }
  0x8b   :  { %5143 = vmatprep.mubr.msk.bf16.mxu1 %vm1567_vm2, %v5823_v60 }
  0x8c   :  { %13 = vsyncpa [#allocation4], 0  ;;  %v7041_v1 = vpop.permute.xlu1 %369  ;;  %v7043_v2 = vpop.permute.xlu0 %364  ;;  %v267_v3 = vld [vmem:[%s8781_s3 + $0x258] sm:$0xff]  ;;  %v266_v4 = vld [vmem:[%s8781_s3 + $0x250] sm:$0xff]  ;;  %vm6573_vm3 = vmmov 0   ;;  %s6574_s28 = smov [#allocation3]  }
  0x8d   :  { %689 = vperm.xlu1 %5771, %v259_v63   ;;  %684 = vperm.xlu0 %5770, %v258_v0   ;;  %v5824_v5 = vld [vmem:[%s8779_s1 + $0x108] sm:$0xff]   ;;  %v5825_v6 = vld [vmem:[%s8779_s1 + $0x110] sm:$0xff]   ;;  %v260_v11 = vld [vmem:[%s8781_s3 + $0x220] sm:$0xff]  ;;  %s4499_s5 = sshll.u32 %s6574_s28, 4  ;;  %vm4491_vm4 = vcmask 8192   ;;  %s4500_s5 = int_to_ptr.vmem [resolvable:$true] %s4499_s5 }
  0x8e   :  { %v261_v10 = vld [vmem:[%s8781_s3 + $0x228] sm:$0xff]  ;;  %v268_v13 = vld [vmem:[%s8781_s3 + $0x260] sm:$0xff]  ;;  %v5826_v14 = vld [vmem:[%s8779_s1 + $0x118] sm:$0xff]   ;;  %s6551_s29 = scalar_lea.vmem %s4500_s5, 32  ;;  %p6552_p1 = scmp.lt.s32.totalorder %s4500_s5, %s4500_s5 }
  0x8f   :  { %v269_v12 = vld [vmem:[%s8781_s3 + $0x268] sm:$0xff]  ;;  %v5827_v16 = vld [vmem:[%s8779_s1 + $0x120] sm:$0xff]   ;;  %v263_v17 = vld [vmem:[%s8781_s3 + $0x238] sm:$0xff] }
  0x90   :  { %v7057_v7 = vpop.permute.xlu1 %409  ;;  %v7059_v8 = vpop.permute.xlu0 %404  ;;  %v262_v18 = vld [vmem:[%s8781_s3 + $0x230] sm:$0xff]  ;;  %v271_v21 = vld [vmem:[%s8781_s3 + $0x278] sm:$0xff]  ;;  %v5828_v23 = vld [vmem:[%s8779_s1 + $0x128] sm:$0xff]  }
  0x91   :  { %729 = vperm.xlu1 %5771, %v267_v3   ;;  %724 = vperm.xlu0 %5770, %v266_v4   ;;  %v270_v22 = vld [vmem:[%s8781_s3 + $0x270] sm:$0xff]  ;;  %v273_v26 = vld [vmem:[%s8781_s3 + $0x288] sm:$0xff]  ;;  %v272_v27 = vld [vmem:[%s8781_s3 + $0x280] sm:$0xff] }
  0x92   :  { %5144 = vmatmul.mubr.msk.bf16.gmra.mrb[64].mxu1 %vm1567_vm2, %v5824_v5  ;;  %v5829_v24 = vld [vmem:[%s8779_s1 + $0x130] sm:$0xff]   ;;  %v281_v29 = vld [vmem:[%s8781_s3 + $0x2c8] sm:$0xff]  ;;  %v280_v30 = vld [vmem:[%s8781_s3 + $0x2c0] sm:$0xff] }
  0x93   :  { %5147 = vmatprep.mubr.msk.bf16.mxu1 %vm1567_vm2, %v5825_v6  ;;  %v5830_v31 = vld [vmem:[%s8779_s1 + $0x138] sm:$0xff]   ;;  %v5831_v32 = vld [vmem:[%s8779_s1 + $0x140] sm:$0xff]   ;;  %v274_v36 = vld [vmem:[%s8781_s3 + $0x290] sm:$0xff] }
  0x94   :  { %v7069_v9 = vpop.permute.xlu1 %379  ;;  %v7080_v15 = vpop.permute.xlu0 %374  ;;  %v275_v35 = vld [vmem:[%s8781_s3 + $0x298] sm:$0xff]  ;;  %v282_v39 = vld [vmem:[%s8781_s3 + $0x2d0] sm:$0xff]  ;;  %v5832_v40 = vld [vmem:[%s8779_s1 + $0x148] sm:$0xff]  }
  0x95   :  { %699 = vperm.xlu1 %5771, %v261_v10   ;;  %694 = vperm.xlu0 %5770, %v260_v11   ;;  %v283_v38 = vld [vmem:[%s8781_s3 + $0x2d8] sm:$0xff]  ;;  %v5833_v42 = vld [vmem:[%s8779_s1 + $0x150] sm:$0xff]   ;;  %v277_v43 = vld [vmem:[%s8781_s3 + $0x2a8] sm:$0xff] }
  0x96   :  { %v276_v44 = vld [vmem:[%s8781_s3 + $0x2a0] sm:$0xff]  ;;  %v285_v47 = vld [vmem:[%s8781_s3 + $0x2e8] sm:$0xff]  ;;  %v5834_v49 = vld [vmem:[%s8779_s1 + $0x158] sm:$0xff]  }
  0x97   :  { %v284_v48 = vld [vmem:[%s8781_s3 + $0x2e0] sm:$0xff]  ;;  %v279_v52 = vld [vmem:[%s8781_s3 + $0x2b8] sm:$0xff]  ;;  %v278_v53 = vld [vmem:[%s8781_s3 + $0x2b0] sm:$0xff] }
  0x98   :  { %v7093_v19 = vpop.permute.xlu1 %419  ;;  %v7095_v20 = vpop.permute.xlu0 %414  ;;  %v5835_v50 = vld [vmem:[%s8779_s1 + $0x160] sm:$0xff]   ;;  %v287_v57 = vld [vmem:[%s8781_s3 + $0x2f8] sm:$0xff]  ;;  %v286_v58 = vld [vmem:[%s8781_s3 + $0x2f0] sm:$0xff] }
  0x99   :  { %739 = vperm.xlu1 %5771, %v269_v12   ;;  %734 = vperm.xlu0 %5770, %v268_v13   ;;  %v5836_v59 = vld [vmem:[%s8779_s1 + $0x168] sm:$0xff]   ;;  %v5837_v60 = vld [vmem:[%s8779_s1 + $0x170] sm:$0xff]   ;;  %v288_v4 = vld [vmem:[%s8781_s3 + $0x300] sm:$0xff] }
  0x9a   :  { %5148 = vmatmul.mubr.msk.bf16.gmra.mrb[68].mxu1 %vm1567_vm2, %v5826_v14  ;;  %v289_v3 = vld [vmem:[%s8781_s3 + $0x308] sm:$0xff]  ;;  %v296_v10 = vld [vmem:[%s8781_s3 + $0x340] sm:$0xff]  ;;  %v5838_v11 = vld [vmem:[%s8779_s1 + $0x178] sm:$0xff]  }
  0x9b   :  { %5151 = vmatprep.mubr.msk.bf16.mxu1 %vm1567_vm2, %v5827_v16  ;;  %v297_v6 = vld [vmem:[%s8781_s3 + $0x348] sm:$0xff]  ;;  %v5839_v13 = vld [vmem:[%s8779_s1 + $0x180] sm:$0xff]   ;;  %v291_v14 = vld [vmem:[%s8781_s3 + $0x318] sm:$0xff] }
  0x9c   :  { %v7109_v25 = vpop.permute.xlu1 %389  ;;  %v7118_v28 = vpop.permute.xlu0 %384  ;;  %v290_v16 = vld [vmem:[%s8781_s3 + $0x310] sm:$0xff] }
  0x9d   :  { %709 = vperm.xlu1 %5771, %v263_v17   ;;  %704 = vperm.xlu0 %5770, %v262_v18  }
  0xa0   :  { %v7133_v33 = vpop.permute.xlu1 %429  ;;  %v7135_v34 = vpop.permute.xlu0 %424 }
  0xa1   :  { %749 = vperm.xlu1 %5771, %v271_v21   ;;  %744 = vperm.xlu0 %5770, %v270_v22   ;;  %v299_v21 = vld [vmem:[%s8781_s3 + $0x358] sm:$0xff]  ;;  %v298_v22 = vld [vmem:[%s8781_s3 + $0x350] sm:$0xff] }
  0xa2   :  { %5152 = vmatmul.mubr.msk.bf16.gmra.mrb[72].mxu1 %vm1567_vm2, %v5828_v23  ;;  %v5840_v23 = vld [vmem:[%s8779_s1 + $0x188] sm:$0xff]  }
  0xa3   :  { %5155 = vmatprep.mubr.msk.bf16.mxu1 %vm1567_vm2, %v5829_v24  ;;  %v5841_v24 = vld [vmem:[%s8779_s1 + $0x190] sm:$0xff]  }
  0xa4   :  { %v7145_v37 = vpop.permute.xlu1 %439  ;;  %v7156_v41 = vpop.permute.xlu0 %434 }
  0xa5   :  { %759 = vperm.xlu1 %5771, %v273_v26   ;;  %754 = vperm.xlu0 %5770, %v272_v27   ;;  %v293_v27 = vld [vmem:[%s8781_s3 + $0x328] sm:$0xff] }
  0xa8   :  { %v7169_v45 = vpop.permute.xlu1 %479  ;;  %v7171_v46 = vpop.permute.xlu0 %474 }
  0xa9   :  { %799 = vperm.xlu1 %5771, %v281_v29   ;;  %794 = vperm.xlu0 %5770, %v280_v30   ;;  %v292_v29 = vld [vmem:[%s8781_s3 + $0x320] sm:$0xff] }
  0xaa   :  { %5156 = vmatmul.mubr.msk.bf16.gmra.mrb[76].mxu1 %vm1567_vm2, %v5830_v31  ;;  %v301_v31 = vld [vmem:[%s8781_s3 + $0x368] sm:$0xff] }
  0xab   :  { %5159 = vmatprep.mubr.msk.bf16.mxu1 %vm1567_vm2, %v5831_v32  ;;  %v300_v32 = vld [vmem:[%s8781_s3 + $0x360] sm:$0xff] }
  0xac   :  { %v7185_v51 = vpop.permute.xlu1 %449  ;;  %v7194_v54 = vpop.permute.xlu0 %444 }
  0xad   :  { %769 = vperm.xlu1 %5771, %v275_v35   ;;  %764 = vperm.xlu0 %5770, %v274_v36   ;;  %v5842_v35 = vld [vmem:[%s8779_s1 + $0x198] sm:$0xff]   ;;  %v5843_v36 = vld [vmem:[%s8779_s1 + $0x1a0] sm:$0xff]  }
  0xb0   :  { %v7209_v63 = vpop.permute.xlu1 %489  ;;  %v7211_v0 = vpop.permute.xlu0 %484 }
  0xb1   :  { %809 = vperm.xlu1 %5771, %v283_v38   ;;  %804 = vperm.xlu0 %5770, %v282_v39  }
  0xb2   :  { %5160 = vmatmul.mubr.msk.bf16.gmra.mrb[80].mxu1 %vm1567_vm2, %v5832_v40  ;;  %v295_v40 = vld [vmem:[%s8781_s3 + $0x338] sm:$0xff] }
  0xb3   :  { %5163 = vmatprep.mubr.msk.bf16.mxu1 %vm1567_vm2, %v5833_v42  ;;  %v294_v42 = vld [vmem:[%s8781_s3 + $0x330] sm:$0xff] }
  0xb4   :  { %v7221_v5 = vpop.permute.xlu1 %459  ;;  %v7232_v12 = vpop.permute.xlu0 %454 }
  0xb5   :  { %779 = vperm.xlu1 %5771, %v277_v43   ;;  %774 = vperm.xlu0 %5770, %v276_v44   ;;  %v303_v44 = vld [vmem:[%s8781_s3 + $0x378] sm:$0xff] }
  0xb8   :  { %v7245_v17 = vpop.permute.xlu1 %499  ;;  %v7247_v18 = vpop.permute.xlu0 %494 }
  0xb9   :  { %819 = vperm.xlu1 %5771, %v285_v47   ;;  %814 = vperm.xlu0 %5770, %v284_v48   ;;  %v302_v47 = vld [vmem:[%s8781_s3 + $0x370] sm:$0xff]  ;;  %v5844_v48 = vld [vmem:[%s8779_s1 + $0x1a8] sm:$0xff]  }
  0xba   :  { %5164 = vmatmul.mubr.msk.bf16.gmra.mrb[84].mxu1 %vm1567_vm2, %v5834_v49 }
  0xbb   :  { %5167 = vmatprep.mubr.msk.bf16.mxu1 %vm1567_vm2, %v5835_v50 }
  0xbc   :  { %v7261_v26 = vpop.permute.xlu1 %469  ;;  %v7270_v30 = vpop.permute.xlu0 %464 }
  0xbd   :  { %789 = vperm.xlu1 %5771, %v279_v52   ;;  %784 = vperm.xlu0 %5770, %v278_v53   ;;  %v5845_v53 = vld [vmem:[%s8779_s1 + $0x1b0] sm:$0xff]  }
  0xc0   :  { %v7285_v38 = vpop.permute.xlu1 %509  ;;  %v7287_v39 = vpop.permute.xlu0 %504 }
  0xc1   :  { %829 = vperm.xlu1 %5771, %v287_v57   ;;  %824 = vperm.xlu0 %5770, %v286_v58   ;;  %v305_v58 = vld [vmem:[%s8781_s3 + $0x388] sm:$0xff] }
  0xc2   :  { %5168 = vmatmul.mubr.msk.bf16.gmra.mrb[88].mxu1 %vm1567_vm2, %v5836_v59  ;;  %v304_v59 = vld [vmem:[%s8781_s3 + $0x380] sm:$0xff] }
  0xc3   :  { %5171 = vmatprep.mubr.msk.bf16.mxu1 %vm1567_vm2, %v5837_v60 }
  0xc4   :  { %v7297_v43 = vpop.permute.xlu1 %519  ;;  %v7308_v50 = vpop.permute.xlu0 %514 }
  0xc5   :  { %839 = vperm.xlu1 %5771, %v289_v3   ;;  %834 = vperm.xlu0 %5770, %v288_v4  }
  0xc8   :  { %v7321_v3 = vpop.permute.xlu1 %559  ;;  %v7323_v4 = vpop.permute.xlu0 %554 }
  0xc9   :  { %879 = vperm.xlu1 %5771, %v297_v6   ;;  %874 = vperm.xlu0 %5770, %v296_v10  }
  0xca   :  { %5172 = vmatmul.mubr.msk.bf16.gmra.mrb[92].mxu1 %vm1567_vm2, %v5838_v11 }
  0xcb   :  { %5175 = vmatprep.mubr.msk.bf16.mxu1 %vm1567_vm2, %v5839_v13  ;;  %v313_v13 = vld [vmem:[%s8781_s3 + $0x3c8] sm:$0xff] }
  0xcd   :  { %849 = vperm.xlu1 %5771, %v291_v14   ;;  %844 = vperm.xlu0 %5770, %v290_v16   ;;  %v312_v14 = vld [vmem:[%s8781_s3 + $0x3c0] sm:$0xff]  ;;  %v5846_v16 = vld [vmem:[%s8779_s1 + $0x1b8] sm:$0xff]  }
  0xd1   :  { %889 = vperm.xlu1 %5771, %v299_v21   ;;  %884 = vperm.xlu0 %5770, %v298_v22  }
  0xd2   :  { %5176 = vmatmul.mubr.msk.bf16.gmra.mrb[96].mxu1 %vm1567_vm2, %v5840_v23 }
  0xd3   :  { %5179 = vmatprep.mubr.msk.bf16.mxu1 %vm1567_vm2, %v5841_v24 }
  0xd5   :  { %859 = vperm.xlu1 %5771, %v293_v27   ;;  %854 = vperm.xlu0 %5770, %v292_v29  }
  0xd9   :  { %899 = vperm.xlu1 %5771, %v301_v31   ;;  %894 = vperm.xlu0 %5770, %v300_v32  }
  0xda   :  { %5180 = vmatmul.mubr.msk.bf16.gmra.mrb[100].mxu1 %vm1567_vm2, %v5842_v35 }
  0xdb   :  { %5183 = vmatprep.mubr.msk.bf16.mxu1 %vm1567_vm2, %v5843_v36 }
  0xdd   :  { %869 = vperm.xlu1 %5771, %v295_v40   ;;  %864 = vperm.xlu0 %5770, %v294_v42   ;;  %v5243_v49 = vpop.f32.mrb[0].mxu0 }
  0xde   :  { %v2680_v52 = vpop.f32.mrb[1].mxu0 }
  0xdf   :  { %v5244_v57 = vpop.f32.mrb[2].mxu0 }
  0xe0   :  { %v2683_v60 = vpop.f32.mrb[3].mxu0 }
  0xe1   :  { %909 = vperm.xlu1 %5771, %v303_v44   ;;  %904 = vperm.xlu0 %5770, %v302_v47   ;;  %v306_v44 = vld [vmem:[%s8781_s3 + $0x390] sm:$0xff] }
  0xe2   :  { %5184 = vmatmul.mubr.msk.bf16.gmra.mrb[104].mxu1 %vm1567_vm2, %v5844_v48  ;;  %v7349_v48 = vpop.permute.xlu1 %529 }
  0xe3   :  { %5187 = vmatprep.mubr.msk.bf16.mxu1 %vm1567_vm2, %v5845_v53 }
  0xe5   :  { %919 = vperm.xlu1 %5771, %v305_v58   ;;  %914 = vperm.xlu0 %5770, %v304_v59   ;;  %v5081_v6 = vpop.f32.mrb[0].mxu1  ;;  %v5247_v21 = vpop.f32.mrb[4].mxu0 }
  0xe6   :  { %v1855_v10 = vadd.f32 %v5081_v6, %v7043_v2  ;;  %v1846_v11 = vpop.f32.mrb[1].mxu1  ;;  %v2696_v24 = vpop.f32.mrb[5].mxu0  ;;  %v5847_v2 = vld [vmem:[%s8779_s1 + $0x1c0] sm:$0xff]  }
  0xe7   :  { %v1847_v22 = vadd.f32 %v1846_v11, %v7015_v56  ;;  %v5082_v23 = vpop.f32.mrb[2].mxu1  ;;  %v5248_v35 = vpop.f32.mrb[6].mxu0  ;;  %v307_v56 = vld [vmem:[%s8781_s3 + $0x398] sm:$0xff] }
  0xe8   :  { %v2689_v27 = vadd.f32 %v5243_v49, %v1855_v10  ;;  %v1858_v29 = vadd.f32 %v5082_v23, %v7041_v1  ;;  %v1849_v32 = vpop.f32.mrb[3].mxu1  ;;  %v2699_v1 = vpop.f32.mrb[7].mxu0  ;;  %v314_v10 = vld [vmem:[%s8781_s3 + $0x3d0] sm:$0xff] }
  0xe9   :  { %v2681_v31 = vadd.f32 %v2680_v52, %v1847_v22  ;;  %959 = vperm.xlu1 %5771, %v313_v13   ;;  %954 = vperm.xlu0 %5770, %v312_v14   ;;  %v1850_v42 = vadd.f32 %v1849_v32, %v7031_v62  ;;  %v7351_v62 = vpop.permute.xlu0 %524  ;;  %v5849_v22 = vld [vmem:[%s8779_s1 + $0x1d0] sm:$0xff]  }
  0xea   :  { %v4704_v36 = vmul.f32 -1.442695, %v2689_v27  ;;  %v2692_v40 = vadd.f32 %v5244_v57, %v1858_v29  ;;  %5188 = vmatmul.mubr.msk.bf16.gmra.mrb[108].mxu1 %vm1567_vm2, %v5846_v16  ;;  %v315_v57 = vld [vmem:[%s8781_s3 + $0x3d8] sm:$0xff] }
  0xeb   :  { %v4702_v47 = vmul.f32 -1.442695, %v2681_v31  ;;  %5191 = vmatprep.mubr.msk.bf16.mxu1 %vm1567_vm2, %v5847_v2  ;;  %v2684_v52 = vadd.f32 %v2683_v60, %v1850_v42  ;;  %v5848_v60 = vld [vmem:[%s8779_s1 + $0x1c8] sm:$0xff]  }
  0xec   :  { %5871 = vpow2.f32 %v4704_v36  ;;  %v4705_v49 = vmul.f32 -1.442695, %v2692_v40  ;;  %v7377_v40 = vpop.permute.xlu1 %569 }
  0xed   :  { %5873 = vpow2.f32 %v4702_v47  ;;  %929 = vperm.xlu1 %5771, %v307_v56   ;;  %924 = vperm.xlu0 %5770, %v306_v44   ;;  %v5085_v53 = vpop.f32.mrb[4].mxu1  ;;  %v4703_v58 = vmul.f32 -1.442695, %v2684_v52  ;;  %v5251_v11 = vpop.f32.mrb[8].mxu0  ;;  %v317_v44 = vld [vmem:[%s8781_s3 + $0x3e8] sm:$0xff] }
  0xee   :  { %5875 = vpow2.f32 %v4705_v49  ;;  %v1871_v59 = vadd.f32 %v5085_v53, %v7118_v28  ;;  %v1862_v6 = vpop.f32.mrb[5].mxu1  ;;  %v2712_v16 = vpop.f32.mrb[9].mxu0 }
  0xef   :  { %v1863_v13 = vadd.f32 %v1862_v6, %v7080_v15  ;;  %v5086_v14 = vpop.f32.mrb[6].mxu1  ;;  %5877 = vpow2.f32 %v4703_v58  ;;  %v5252_v29 = vpop.f32.mrb[10].mxu0  ;;  %v309_v15 = vld [vmem:[%s8781_s3 + $0x3a8] sm:$0xff] }
  0xf0   :  { %v2705_v28 = vadd.f32 %v5247_v21, %v1871_v59  ;;  %v1874_v23 = vadd.f32 %v5086_v14, %v7109_v25  ;;  %v1865_v27 = vpop.f32.mrb[7].mxu1  ;;  %v308_v21 = vld [vmem:[%s8781_s3 + $0x3a0] sm:$0xff]  ;;  %v2715_v25 = vpop.f32.mrb[11].mxu0 }
  0xf1   :  { %v2697_v2 = vadd.f32 %v2696_v24, %v1863_v13  ;;  %969 = vperm.xlu1 %5771, %v315_v57   ;;  %964 = vperm.xlu0 %5770, %v314_v10   ;;  %v1866_v36 = vadd.f32 %v1865_v27, %v7069_v9  ;;  %v7379_v9 = vpop.permute.xlu0 %564  ;;  %v5850_v57 = vld [vmem:[%s8779_s1 + $0x1d8] sm:$0xff]  }
  0xf2   :  { %v4708_v31 = vmul.f32 -1.442695, %v2705_v28  ;;  %v2708_v32 = vadd.f32 %v5248_v35, %v1874_v23  ;;  %5192 = vmatmul.mubr.msk.bf16.gmra.mrb[112].mxu1 %vm1567_vm2, %v5848_v60 }
  0xf3   :  { %v4706_v24 = vmul.f32 -1.442695, %v2697_v2  ;;  %5195 = vmatprep.mubr.msk.bf16.mxu1 %vm1567_vm2, %v5849_v22  ;;  %v2700_v42 = vadd.f32 %v2699_v1, %v1866_v36  ;;  %v316_v1 = vld [vmem:[%s8781_s3 + $0x3e0] sm:$0xff] }
  0xf4   :  { %5879 = vpow2.f32 %v4708_v31  ;;  %v4709_v35 = vmul.f32 -1.442695, %v2708_v32 }
  0xf5   :  { %5881 = vpow2.f32 %v4706_v24  ;;  %939 = vperm.xlu1 %5771, %v309_v15   ;;  %934 = vperm.xlu0 %5770, %v308_v21   ;;  %v5089_v56 = vpop.f32.mrb[8].mxu1  ;;  %v4707_v49 = vmul.f32 -1.442695, %v2700_v42  ;;  %v5255_v58 = vpop.f32.mrb[12].mxu0 }
  0xf6   :  { %v5872_v47 = vpop.eup %5871  ;;  %5883 = vpow2.f32 %v4709_v35  ;;  %v1887_v52 = vadd.f32 %v5089_v56, %v7059_v8  ;;  %v1878_v53 = vpop.f32.mrb[9].mxu1  ;;  %v5851_v8 = vld [vmem:[%s8779_s1 + $0x1e0] sm:$0xff]  }
  0xf7   :  { %v5874_v59 = vpop.eup %5873  ;;  %v2833_v6 = vadd.f32 1.0, %v5872_v47  ;;  %v1879_v10 = vadd.f32 %v1878_v53, %v7013_v55  ;;  %v5090_v60 = vpop.f32.mrb[10].mxu1  ;;  %5885 = vpow2.f32 %v4707_v49  ;;  %v5852_v47 = vld [vmem:[%s8779_s1 + $0x1e8] sm:$0xff]  }
  0xf8   :  { %v2728_v13 = vpop.f32.mrb[13].mxu0  ;;  %v5876_v14 = vpop.eup %5875  ;;  %v2831_v22 = vadd.f32 1.0, %v5874_v59  ;;  %v2721_v28 = vadd.f32 %v5251_v11, %v1887_v52  ;;  %v1890_v23 = vadd.f32 %v5090_v60, %v7057_v7  ;;  %v311_v11 = vld [vmem:[%s8781_s3 + $0x3b8] sm:$0xff]  ;;  %v310_v7 = vld [vmem:[%s8781_s3 + $0x3b0] sm:$0xff] }
  0xf9   :  { %5887 = vrcp.f32 %v2833_v6  ;;  %v2834_v2 = vadd.f32 1.0, %v5876_v14  ;;  %v2713_v27 = vadd.f32 %v2712_v16, %v1879_v10  ;;  %v1881_v31 = vpop.f32.mrb[11].mxu1  ;;  %979 = vperm.xlu1 %5771, %v317_v44   ;;  %974 = vperm.xlu0 %5770, %v316_v1   ;;  %v5256_v32 = vpop.f32.mrb[14].mxu0 }
  0xfa   :  { %v5878_v55 = vpop.eup %5877  ;;  %5889 = vrcp.f32 %v2831_v22  ;;  %v4712_v36 = vmul.f32 -1.442695, %v2721_v28  ;;  %v2724_v15 = vadd.f32 %v5252_v29, %v1890_v23  ;;  %v1882_v21 = vadd.f32 %v1881_v31, %v7029_v61  ;;  %5196 = vmatmul.mubr.msk.bf16.gmra.mrb[116].mxu1 %vm1567_vm2, %v5850_v57  ;;  %v2731_v16 = vpop.f32.mrb[15].mxu0  ;;  %v318_v57 = vld [vmem:[%s8781_s3 + $0x3f0] sm:$0xff] }
  0xfb   :  { %5891 = vrcp.f32 %v2834_v2  ;;  %v2832_v24 = vadd.f32 1.0, %v5878_v55  ;;  %v4710_v35 = vmul.f32 -1.442695, %v2713_v27  ;;  %5199 = vmatprep.mubr.msk.bf16.mxu1 %vm1567_vm2, %v5851_v8  ;;  %v7405_v42 = vpop.permute.xlu1 %539  ;;  %v7407_v56 = vpop.permute.xlu0 %534 }
  0xfc   :  { %5893 = vpow2.f32 %v4712_v36  ;;  %v4713_v61 = vmul.f32 -1.442695, %v2724_v15  ;;  %v2716_v29 = vadd.f32 %v2715_v25, %v1882_v21  ;;  %v319_v25 = vld [vmem:[%s8781_s3 + $0x3f8] sm:$0xff] }
  0xfd   :  { %5895 = vrcp.f32 %v2832_v24  ;;  %949 = vperm.xlu1 %5771, %v311_v11   ;;  %944 = vperm.xlu0 %5770, %v310_v7   ;;  %v5093_v44 = vpop.f32.mrb[12].mxu1  ;;  %v7419_v59 = vpop.f32.mrb[16].mxu0 }
  0xfe   :  { %v5880_v49 = vpop.eup %5879  ;;  %5897 = vpow2.f32 %v4710_v35  ;;  %v4711_v52 = vmul.f32 -1.442695, %v2716_v29  ;;  %v1903_v53 = vadd.f32 %v5093_v44, %v7135_v34  ;;  %v1894_v1 = vpop.f32.mrb[13].mxu1  ;;  %v5853_v34 = vld [vmem:[%s8779_s1 + $0x1f0] sm:$0xff]  }
  0xff   :  { %v5882_v6 = vpop.eup %5881  ;;  %v2837_v10 = vadd.f32 1.0, %v5880_v49  ;;  %5899 = vpow2.f32 %v4713_v61  ;;  %v1895_v60 = vadd.f32 %v1894_v1, %v7095_v20  ;;  %v5094_v8 = vpop.f32.mrb[14].mxu1 }
 0x100   :  { %v2744_v14 = vpop.f32.mrb[17].mxu0  ;;  %v5884_v22 = vpop.eup %5883  ;;  %v2835_v28 = vadd.f32 1.0, %v5882_v6  ;;  %5901 = vpow2.f32 %v4711_v52  ;;  %v2737_v23 = vadd.f32 %v5255_v58, %v1903_v53  ;;  %v1906_v2 = vadd.f32 %v5094_v8, %v7133_v33  ;;  %v321_v58 = vld [vmem:[%s8781_s3 + $0x408] sm:$0xff]  ;;  %v320_v33 = vld [vmem:[%s8781_s3 + $0x400] sm:$0xff]  ;;  %v5854_v52 = vld [vmem:[%s8779_s1 + $0x1f8] sm:$0xff]  }
 0x101   :  { %5903 = vrcp.f32 %v2837_v10  ;;  %v2838_v27 = vadd.f32 1.0, %v5884_v22  ;;  %v2729_v31 = vadd.f32 %v2728_v13, %v1895_v60  ;;  %v1897_v55 = vpop.f32.mrb[15].mxu1  ;;  %989 = vperm.xlu1 %5771, %v319_v25   ;;  %984 = vperm.xlu0 %5770, %v318_v57   ;;  %v5260_v36 = vpop.f32.mrb[18].mxu0  ;;  %v328_v6 = vld [vmem:[%s8781_s3 + $0x440] sm:$0xff] }
 0x102   :  { %v5886_v20 = vpop.eup %5885  ;;  %5905 = vrcp.f32 %v2835_v28  ;;  %v4716_v15 = vmul.f32 -1.442695, %v2737_v23  ;;  %v2740_v21 = vadd.f32 %v5256_v32, %v1906_v2  ;;  %v1898_v11 = vadd.f32 %v1897_v55, %v7093_v19  ;;  %5200 = vmatmul.mubr.msk.bf16.gmra.mrb[120].mxu1 %vm1567_vm2, %v5852_v47  ;;  %v2747_v13 = vpop.f32.mrb[19].mxu0 }
 0x103   :  { %v7434_v7 = vpop.eup %5887  ;;  %5907 = vrcp.f32 %v2838_v27  ;;  %v2836_v24 = vadd.f32 1.0, %v5886_v20  ;;  %v4714_v35 = vmul.f32 -1.442695, %v2729_v31  ;;  %5203 = vmatprep.mubr.msk.bf16.mxu1 %vm1567_vm2, %v5853_v34  ;;  %v7439_v19 = vpop.permute.xlu1 %579 }
 0x104   :  { %v7437_v32 = vpop.eup %5889  ;;  %5909 = vpow2.f32 %v4716_v15  ;;  %v4717_v61 = vmul.f32 -1.442695, %v2740_v21  ;;  %v2732_v29 = vadd.f32 %v2731_v16, %v1898_v11  ;;  %v7443_v47 = vpop.permute.xlu0 %574  ;;  %v329_v16 = vld [vmem:[%s8781_s3 + $0x448] sm:$0xff] }
 0x105   :  { %v7441_v44 = vpop.eup %5891  ;;  %5911 = vrcp.f32 %v2836_v24  ;;  %999 = vperm.xlu1 %5771, %v321_v58   ;;  %994 = vperm.xlu0 %5770, %v320_v33   ;;  %v5097_v49 = vpop.f32.mrb[16].mxu1 }
 0x106   :  { %v5894_v53 = vpop.eup %5893  ;;  %5913 = vpow2.f32 %v4714_v35  ;;  %v4715_v1 = vmul.f32 -1.442695, %v2732_v29  ;;  %v1919_v25 = vadd.f32 %v5097_v49, %v7194_v54  ;;  %v1910_v57 = vpop.f32.mrb[17].mxu1  ;;  %v5855_v54 = vld [vmem:[%s8779_s1 + $0x200] sm:$0xff]  }
 0x107   :  { %v5263_v10 = vpop.f32.mrb[20].mxu0  ;;  %v7455_v60 = vpop.eup %5895  ;;  %v2881_v8 = vadd.f32 1.0, %v5894_v53  ;;  %5915 = vpow2.f32 %v4717_v61  ;;  %v1911_v34 = vadd.f32 %v1910_v57, %v7156_v41  ;;  %v331_v57 = vld [vmem:[%s8781_s3 + $0x458] sm:$0xff] }
 0x108   :  { %v5098_v22 = vpop.f32.mrb[18].mxu1  ;;  %v2760_v28 = vpop.f32.mrb[21].mxu0  ;;  %5917 = vpow2.f32 %v4715_v1  ;;  %v2753_v2 = vadd.f32 %v7419_v59, %v1919_v25  ;;  %v322_v59 = vld [vmem:[%s8781_s3 + $0x410] sm:$0xff] }
 0x109   :  { %v5898_v23 = vpop.eup %5897  ;;  %v1922_v27 = vadd.f32 %v5098_v22, %v7185_v51  ;;  %5919 = vrcp.f32 %v2881_v8  ;;  %v2745_v20 = vadd.f32 %v2744_v14, %v1911_v34  ;;  %v1913_v15 = vpop.f32.mrb[19].mxu1  ;;  %1039 = vperm.xlu1 %5771, %v329_v16   ;;  %1034 = vperm.xlu0 %5770, %v328_v6   ;;  %v323_v51 = vld [vmem:[%s8781_s3 + $0x418] sm:$0xff]  ;;  %v5856_v16 = vld [vmem:[%s8779_s1 + $0x208] sm:$0xff]  }
 0x10a   :  { %v5900_v31 = vpop.eup %5899  ;;  %v2879_v55 = vadd.f32 1.0, %v5898_v23  ;;  %v5264_v41 = vpop.f32.mrb[22].mxu0  ;;  %5921 = vtanh.f32 %v2753_v2  ;;  %v1914_v33 = vadd.f32 %v1913_v15, %v7145_v37  ;;  %5204 = vmatmul.mubr.msk.bf16.gmra.mrb[124].mxu1 %vm1567_vm2, %v5854_v52  ;;  %v5857_v23 = vld [vmem:[%s8779_s1 + $0x210] sm:$0xff]  }
 0x10b   :  { %v5902_v21 = vpop.eup %5901  ;;  %v2882_v11 = vadd.f32 1.0, %v5900_v31  ;;  %v2756_v58 = vadd.f32 %v5260_v36, %v1922_v27  ;;  %v2763_v14 = vpop.f32.mrb[23].mxu0  ;;  %5207 = vmatprep.mubr.msk.bf16.mxu1 %vm1567_vm2, %v5855_v54 }
 0x10c   :  { %v7471_v24 = vpop.eup %5903  ;;  %5923 = vrcp.f32 %v2879_v55  ;;  %v2880_v35 = vadd.f32 1.0, %v5902_v21  ;;  %v7476_v37 = vpop.permute.xlu1 %549  ;;  %v2748_v61 = vadd.f32 %v2747_v13, %v1914_v33  ;;  %v330_v13 = vld [vmem:[%s8781_s3 + $0x450] sm:$0xff] }
 0x10d   :  { %v7474_v36 = vpop.eup %5905  ;;  %5925 = vrcp.f32 %v2882_v11  ;;  %v7480_v49 = vpop.permute.xlu0 %544  ;;  %1009 = vperm.xlu1 %5771, %v323_v51   ;;  %1004 = vperm.xlu0 %5770, %v322_v59  }
 0x10e   :  { %v7478_v29 = vpop.eup %5907  ;;  %5927 = vrcp.f32 %v2880_v35  ;;  %v5101_v52 = vpop.f32.mrb[20].mxu1 }
 0x10f   :  { %v5910_v53 = vpop.eup %5909  ;;  %5929 = vtanh.f32 %v2745_v20  ;;  %v1935_v1 = vadd.f32 %v5101_v52, %v7270_v30  ;;  %v1926_v25 = vpop.f32.mrb[21].mxu1 }
 0x110   :  { %v7492_v6 = vpop.f32.mrb[24].mxu0  ;;  %v7494_v8 = vpop.eup %5911  ;;  %v2885_v34 = vadd.f32 1.0, %v5910_v53  ;;  %5931 = vtanh.f32 %v2756_v58  ;;  %v1927_v30 = vadd.f32 %v1926_v25, %v7232_v12 }
 0x111   :  { %v5102_v22 = vpop.f32.mrb[22].mxu1  ;;  %v7497_v54 = vpop.f32.mrb[25].mxu0  ;;  %5933 = vtanh.f32 %v2748_v61  ;;  %v2769_v27 = vadd.f32 %v5263_v10, %v1935_v1  ;;  %1049 = vperm.xlu1 %5771, %v331_v57   ;;  %1044 = vperm.xlu0 %5770, %v330_v13   ;;  %v324_v10 = vld [vmem:[%s8781_s3 + $0x420] sm:$0xff] }
 0x112   :  { %v5914_v2 = vpop.eup %5913  ;;  %v1938_v31 = vadd.f32 %v5102_v22, %v7261_v26  ;;  %5935 = vrcp.f32 %v2885_v34  ;;  %v2761_v15 = vadd.f32 %v2760_v28, %v1927_v30  ;;  %v1929_v21 = vpop.f32.mrb[23].mxu1  ;;  %5208 = vmatmul.mubr.msk.bf16.gmra.mrb[128].mxu1 %vm1567_vm2, %v5856_v16  ;;  %v325_v26 = vld [vmem:[%s8781_s3 + $0x428] sm:$0xff] }
 0x113   :  { %v5916_v55 = vpop.eup %5915  ;;  %v2883_v20 = vadd.f32 1.0, %v5914_v2  ;;  %v5268_v12 = vpop.f32.mrb[26].mxu0  ;;  %5937 = vtanh.f32 %v2769_v27  ;;  %v1930_v51 = vadd.f32 %v1929_v21, %v7221_v5  ;;  %5211 = vmatprep.mubr.msk.bf16.mxu1 %vm1567_vm2, %v5857_v23  ;;  %v333_v30 = vld [vmem:[%s8781_s3 + $0x468] sm:$0xff] }
 0x114   :  { %v5918_v11 = vpop.eup %5917  ;;  %v2886_v58 = vadd.f32 1.0, %v5916_v55  ;;  %v2772_v33 = vadd.f32 %v5264_v41, %v1938_v31  ;;  %v7511_v28 = vpop.f32.mrb[27].mxu0 }
 0x115   :  { %v5920_v59 = vpop.eup %5919  ;;  %5939 = vrcp.f32 %v2883_v20  ;;  %v2884_v35 = vadd.f32 1.0, %v5918_v11  ;;  %v7514_v61 = vpop.permute.xlu1 %589  ;;  %v2764_v52 = vadd.f32 %v2763_v14, %v1930_v51  ;;  %1019 = vperm.xlu1 %5771, %v325_v26   ;;  %1014 = vperm.xlu0 %5770, %v324_v10   ;;  %v332_v14 = vld [vmem:[%s8781_s3 + $0x460] sm:$0xff] }
 0x116   :  { %v5922_v41 = vpop.eup %5921  ;;  %v2961_v5 = vmul.f32 0.0, %v5920_v59  ;;  %5941 = vrcp.f32 %v2886_v58  ;;  %v7516_v1 = vpop.permute.xlu0 %584  ;;  %v5859_v20 = vld [vmem:[%s8779_s1 + $0x220] sm:$0xff]  }
 0x117   :  { %v5924_v53 = vpop.eup %5923  ;;  %5943 = vrcp.f32 %v2884_v35  ;;  %v2969_v25 = vmul.f32 %v5922_v41, %v7434_v7  ;;  %v5105_v57 = vpop.f32.mrb[24].mxu1  ;;  %v5858_v7 = vld [vmem:[%s8779_s1 + $0x218] sm:$0xff]  }
 0x118   :  { %v5926_v13 = vpop.eup %5925  ;;  %5945 = vtanh.f32 %v2761_v15  ;;  %v1951_v16 = vadd.f32 %v5105_v57, %v7211_v0  ;;  %v1942_v34 = vpop.f32.mrb[25].mxu1  ;;  %v2959_v2 = vmul.f32 0.0, %v5924_v53 }
 0x119   :  { %v7529_v22 = vpop.f32.mrb[28].mxu0  ;;  %v5928_v23 = vpop.eup %5927  ;;  %v7531_v27 = vadd.f32 %v2969_v25, %v2961_v5  ;;  %5947 = vtanh.f32 %v2772_v33  ;;  %v1943_v0 = vadd.f32 %v1942_v34, %v7171_v46  ;;  %v2962_v21 = vmul.f32 0.0, %v5926_v13  ;;  %1059 = vperm.xlu1 %5771, %v333_v30   ;;  %1054 = vperm.xlu0 %5770, %v332_v14  }
 0x11a   :  { %v5106_v31 = vpop.f32.mrb[26].mxu1  ;;  %v7534_v55 = vpop.f32.mrb[29].mxu0  ;;  %5949 = vtanh.f32 %v2764_v52  ;;  %v2785_v11 = vadd.f32 %v7492_v6, %v1951_v16  ;;  %v2960_v26 = vmul.f32 0.0, %v5928_v23  ;;  %5212 = vmatmul.mubr.msk.bf16.gmra.mrb[132].mxu1 %vm1567_vm2, %v5858_v7 }
 0x11b   :  { %8809 = vst [vmem:[#allocation6_spill] sm:$0xff] %v7531_v27  ;;  %v5930_v15 = vpop.eup %5929  ;;  %v1954_v58 = vadd.f32 %v5106_v31, %v7209_v63  ;;  %v2777_v46 = vadd.f32 %v7497_v54, %v1943_v0  ;;  %v1945_v10 = vpop.f32.mrb[27].mxu1  ;;  %v327_v63 = vld [vmem:[%s8781_s3 + $0x438] sm:$0xff]  ;;  %5215 = vmatprep.mubr.msk.bf16.mxu1 %vm1567_vm2, %v5859_v20 }
 0x11c   :  { %v5932_v51 = vpop.eup %5931  ;;  %v2967_v33 = vmul.f32 %v5930_v15, %v7437_v32  ;;  %v5272_v59 = vpop.f32.mrb[30].mxu0  ;;  %v4720_v5 = vmul.f32 -1.442695, %v2785_v11  ;;  %v1946_v52 = vadd.f32 %v1945_v10, %v7169_v45  ;;  %v326_v32 = vld [vmem:[%s8781_s3 + $0x430] sm:$0xff]  ;;  %v335_v15 = vld [vmem:[%s8781_s3 + $0x478] sm:$0xff] }
 0x11d   :  { %v5934_v35 = vpop.eup %5933  ;;  %v2970_v41 = vmul.f32 %v5932_v51, %v7441_v44  ;;  %v2788_v53 = vadd.f32 %v5268_v12, %v1954_v58  ;;  %v7552_v6 = vpop.f32.mrb[31].mxu0  ;;  %v4718_v12 = vmul.f32 -1.442695, %v2777_v46  ;;  %1029 = vperm.xlu1 %5771, %v327_v63   ;;  %1024 = vperm.xlu0 %5770, %v326_v32  }
 0x11e   :  { %v5936_v54 = vpop.eup %5935  ;;  %v7554_v25 = vadd.f32 %v2967_v33, %v2959_v2  ;;  %v2968_v44 = vmul.f32 %v5934_v35, %v7455_v60  ;;  %v7558_v57 = vpop.permute.xlu0 %594  ;;  %5951 = vpow2.f32 %v4720_v5  ;;  %v2780_v60 = vadd.f32 %v7511_v28, %v1946_v52  ;;  %v5861_v33 = vld [vmem:[%s8779_s1 + $0x230] sm:$0xff]  }
 0x11f   :  { %v5938_v45 = vpop.eup %5937  ;;  %v2965_v13 = vmul.f32 0.0, %v5936_v54  ;;  %v7560_v16 = vadd.f32 %v2970_v41, %v2962_v21  ;;  %v4721_v34 = vmul.f32 -1.442695, %v2788_v53  ;;  %v7562_v14 = vpop.permute.xlu1 %599  ;;  %5953 = vpow2.f32 %v4718_v12  ;;  %v334_v21 = vld [vmem:[%s8781_s3 + $0x470] sm:$0xff] }
 0x120   :  { %8810 = vst [vmem:[#allocation7_spill] sm:$0xff] %v7554_v25  ;;  %v5940_v30 = vpop.eup %5939  ;;  %v7564_v7 = vadd.f32 %v2968_v44, %v2960_v26  ;;  %v2973_v23 = vmul.f32 %v5938_v45, %v7471_v24  ;;  %v5109_v2 = vpop.f32.mrb[28].mxu1  ;;  %v5860_v24 = vld [vmem:[%s8779_s1 + $0x228] sm:$0xff]   ;;  %v4719_v51 = vmul.f32 -1.442695, %v2780_v60 }
 0x121   :  { %8811 = vst [vmem:[#allocation8_spill] sm:$0xff] %v7560_v16  ;;  %v5942_v0 = vpop.eup %5941  ;;  %5955 = vpow2.f32 %v4721_v34  ;;  %v1967_v31 = vadd.f32 %v5109_v2, %v7287_v39  ;;  %v1958_v20 = vpop.f32.mrb[29].mxu1  ;;  %v2963_v11 = vmul.f32 0.0, %v5940_v30  ;;  %1069 = vperm.xlu1 %5771, %v335_v15   ;;  %1064 = vperm.xlu0 %5770, %v334_v21  }
 0x122   :  { %8812 = vst [vmem:[#allocation9_spill] sm:$0xff] %v7564_v7  ;;  %v5944_v28 = vpop.eup %5943  ;;  %v7578_v58 = vadd.f32 %v2973_v23, %v2965_v13  ;;  %v1959_v39 = vadd.f32 %v1958_v20, %v7247_v18  ;;  %v5110_v26 = vpop.f32.mrb[30].mxu1  ;;  %v2966_v10 = vmul.f32 0.0, %v5942_v0  ;;  %5957 = vtanh.f32 %v7531_v27  ;;  %5216 = vmatmul.mubr.msk.bf16.gmra.mrb[136].mxu1 %vm1567_vm2, %v5860_v24  ;;  %v5862_v20 = vld [vmem:[%s8779_s1 + $0x238] sm:$0xff]  }
 0x123   :  { %v5946_v46 = vpop.eup %5945  ;;  %v2801_v35 = vadd.f32 %v7529_v22, %v1967_v31  ;;  %v1970_v41 = vadd.f32 %v5110_v26, %v7285_v38  ;;  %v2964_v53 = vmul.f32 0.0, %v5944_v28  ;;  %5959 = vpow2.f32 %v4719_v51  ;;  %v1961_v63 = vpop.f32.mrb[31].mxu1  ;;  %5219 = vmatprep.mubr.msk.bf16.mxu1 %vm1567_vm2, %v5861_v33  ;;  %v345_v31 = vld [vmem:[%s8781_s3 + $0x4c8] sm:$0xff]  ;;  %v5863_v28 = vld [vmem:[%s8779_s1 + $0x240] sm:$0xff]  }
 0x124   :  { %8813 = vst [vmem:[#allocation10_spill] sm:$0xff] %v7578_v58  ;;  %v5948_v5 = vpop.eup %5947  ;;  %v2971_v52 = vmul.f32 %v5946_v46, %v7474_v36  ;;  %v2793_v18 = vadd.f32 %v7534_v55, %v1959_v39  ;;  %v7589_v54 = vpop.permute.xlu0 %634  ;;  %v1962_v38 = vadd.f32 %v1961_v63, %v7245_v17  ;;  %v337_v36 = vld [vmem:[%s8781_s3 + $0x488] sm:$0xff]  ;;  %v336_v55 = vld [vmem:[%s8781_s3 + $0x480] sm:$0xff]  ;;  %5961 = vtanh.f32 %v7554_v25 }
 0x125   :  { %v5950_v32 = vpop.eup %5949  ;;  %v2974_v44 = vmul.f32 %v5948_v5, %v7478_v29  ;;  %v4724_v22 = vmul.f32 -1.442695, %v2801_v35  ;;  %v2804_v12 = vadd.f32 %v5272_v59, %v1970_v41  ;;  %v7600_v45 = vpop.permute.xlu1 %639  ;;  %1079 = vperm.xlu1 %5771, %v337_v36   ;;  %1074 = vperm.xlu0 %5770, %v336_v55   ;;  %v339_v35 = vld [vmem:[%s8781_s3 + $0x498] sm:$0xff]  ;;  %v338_v41 = vld [vmem:[%s8781_s3 + $0x490] sm:$0xff] }
 0x126   :  { %8814 = vst [vmem:[#allocation11_spill] sm:$0xff] %v7600_v45  ;;  %v7602_v13 = vadd.f32 %v2971_v52, %v2963_v11  ;;  %v2972_v29 = vmul.f32 %v5950_v32, %v7494_v8  ;;  %v4722_v34 = vmul.f32 -1.442695, %v2793_v18  ;;  %v2796_v30 = vadd.f32 %v7552_v6, %v1962_v38  ;;  %v7612_v60 = vpop.f32.mrb[32].mxu1  ;;  %v344_v6 = vld [vmem:[%s8781_s3 + $0x4c0] sm:$0xff]  ;;  %v5864_v38 = vld [vmem:[%s8779_s1 + $0x248] sm:$0xff]  }
 0x127   :  { %v7607_v17 = vadd.f32 %v2974_v44, %v2966_v10  ;;  %5963 = vpow2.f32 %v4724_v22  ;;  %v4725_v59 = vmul.f32 -1.442695, %v2804_v12  ;;  %v7614_v0 = vpop.f32.mrb[33].mxu1  ;;  %v347_v22 = vld [vmem:[%s8781_s3 + $0x4d8] sm:$0xff]  ;;  %v346_v12 = vld [vmem:[%s8781_s3 + $0x4d0] sm:$0xff] }
 0x128   :  { %8815 = vst [vmem:[#allocation12_spill] sm:$0xff] %v7602_v13  ;;  %v7610_v23 = vadd.f32 %v2972_v29, %v2964_v53  ;;  %5965 = vpow2.f32 %v4722_v34  ;;  %v5952_v2 = vpop.eup %5951  ;;  %v4723_v8 = vmul.f32 -1.442695, %v2796_v30  ;;  %v7625_v24 = vpop.f32.mrb[34].mxu1 }
 0x129   :  { %8816 = vst [vmem:[#allocation13_spill] sm:$0xff] %v7607_v17  ;;  %5967 = vpow2.f32 %v4725_v59  ;;  %v5954_v15 = vpop.eup %5953  ;;  %v2937_v21 = vadd.f32 1.0, %v5952_v2  ;;  %v7631_v51 = vpop.permute.xlu0 %604  ;;  %1119 = vperm.xlu1 %5771, %v345_v31   ;;  %1114 = vperm.xlu0 %5770, %v344_v6   ;;  %v5865_v59 = vld [vmem:[%s8779_s1 + $0x250] sm:$0xff]  }
 0x12a   :  { %8817 = vst [vmem:[#allocation14_spill] sm:$0xff] %v7610_v23  ;;  %5969 = vtanh.f32 %v7564_v7  ;;  %v2935_v39 = vadd.f32 1.0, %v5954_v15  ;;  %v7633_v26 = vpop.permute.xlu1 %609  ;;  %v7635_v46 = vpop.f32.mrb[35].mxu1  ;;  %5220 = vmatmul.mubr.msk.bf16.gmra.mrb[140].mxu1 %vm1567_vm2, %v5862_v20  ;;  %v341_v15 = vld [vmem:[%s8781_s3 + $0x4a8] sm:$0xff] }
 0x12b   :  { %v5956_v11 = vpop.eup %5955  ;;  %5971 = vpow2.f32 %v4723_v8  ;;  %5223 = vmatprep.mubr.msk.bf16.mxu1 %vm1567_vm2, %v5863_v28 }
 0x12c   :  { %5973 = vrcp.f32 %v2937_v21  ;;  %v2938_v33 = vadd.f32 1.0, %v5956_v11  ;;  %v5958_v10 = vpop.eup %5957  ;;  %v340_v21 = vld [vmem:[%s8781_s3 + $0x4a0] sm:$0xff] }
 0x12d   :  { %5975 = vtanh.f32 %v7560_v16  ;;  %v5960_v5 = vpop.eup %5959  ;;  %1089 = vperm.xlu1 %5771, %v339_v35   ;;  %1084 = vperm.xlu0 %5770, %v338_v41   ;;  %v7646_v18 = vpop.f32.mrb[36].mxu1 }
 0x12e   :  { %5977 = vrcp.f32 %v2938_v33  ;;  %v2936_v53 = vadd.f32 1.0, %v5960_v5  ;;  %v5962_v52 = vpop.eup %5961  ;;  %v7649_v32 = vpop.permute.xlu0 %644 }
 0x12f   :  { %5979 = vrcp.f32 %v2935_v39  ;;  %v7651_v44 = vpop.f32.mrb[37].mxu1  ;;  %v7662_v55 = vpop.permute.xlu1 %649 }
 0x130   :  { %5981 = vtanh.f32 %v7602_v13  ;;  %8818 = vst [vmem:[#allocation15_spill] sm:$0xff] %v7662_v55  ;;  %v7664_v34 = vpop.f32.mrb[38].mxu1 }
 0x131   :  { %v5964_v63 = vpop.eup %5963  ;;  %5983 = vrcp.f32 %v2936_v53  ;;  %v7671_v6 = vpop.f32.mrb[39].mxu1  ;;  %1129 = vperm.xlu1 %5771, %v347_v22   ;;  %1124 = vperm.xlu0 %5770, %v346_v12   ;;  %v349_v22 = vld [vmem:[%s8781_s3 + $0x4e8] sm:$0xff]  ;;  %v348_v12 = vld [vmem:[%s8781_s3 + $0x4e0] sm:$0xff] }
 0x132   :  { %v5966_v36 = vpop.eup %5965  ;;  %v2941_v29 = vadd.f32 1.0, %v5964_v63  ;;  %5985 = vtanh.f32 %v7578_v58  ;;  %5224 = vmatmul.mubr.msk.bf16.gmra.mrb[144].mxu1 %vm1567_vm2, %v5864_v38  ;;  %v7681_v33 = vpop.permute.xlu0 %614  ;;  %v5866_v38 = vld [vmem:[%s8779_s1 + $0x258] sm:$0xff]  }
 0x133   :  { %v5968_v30 = vpop.eup %5967  ;;  %v2939_v2 = vadd.f32 1.0, %v5966_v36  ;;  %5987 = vtanh.f32 %v7607_v17  ;;  %5227 = vmatprep.mubr.msk.bf16.mxu1 %vm1567_vm2, %v5865_v59  ;;  %v7684_v41 = vpop.permute.xlu1 %619 }
 0x134   :  { %v5970_v8 = vpop.eup %5969  ;;  %5989 = vrcp.f32 %v2941_v29  ;;  %v2942_v31 = vadd.f32 1.0, %v5968_v30 }
 0x135   :  { %v5972_v20 = vpop.eup %5971  ;;  %5991 = vrcp.f32 %v2939_v2  ;;  %1099 = vperm.xlu1 %5771, %v341_v15   ;;  %1094 = vperm.xlu0 %5770, %v340_v21   ;;  %v7686_v5 = vpop.f32.mrb[40].mxu1  ;;  %v5867_v2 = vld [vmem:[%s8779_s1 + $0x260] sm:$0xff]  }
 0x136   :  { %v5974_v28 = vpop.eup %5973  ;;  %5993 = vrcp.f32 %v2942_v31  ;;  %v2940_v11 = vadd.f32 1.0, %v5972_v20  ;;  %v7688_v63 = vpop.f32.mrb[41].mxu1 }
 0x137   :  { %v5976_v39 = vpop.eup %5975  ;;  %5995 = vtanh.f32 %v7610_v23  ;;  %v2993_v36 = vmul.f32 %v5974_v28, %v5958_v10  ;;  %v7699_v30 = vpop.f32.mrb[42].mxu1  ;;  %v343_v10 = vld [vmem:[%s8781_s3 + $0x4b8] sm:$0xff] }
 0x138   :  { %v5978_v35 = vpop.eup %5977  ;;  %5997 = vrcp.f32 %v2940_v11  ;;  %v7704_v21 = vpop.f32.mrb[43].mxu1 }
 0x139   :  { %v5980_v53 = vpop.eup %5979  ;;  %v2994_v29 = vmul.f32 %v5978_v35, %v5976_v39  ;;  %1139 = vperm.xlu1 %5771, %v349_v22   ;;  %1134 = vperm.xlu0 %5770, %v348_v12   ;;  %v7706_v13 = vpop.permute.xlu0 %654  ;;  %v342_v22 = vld [vmem:[%s8781_s3 + $0x4b0] sm:$0xff] }
 0x13a   :  { %v5982_v59 = vpop.eup %5981  ;;  %v2991_v11 = vmul.f32 %v5980_v53, %v5962_v52  ;;  %8819 = vst [vmem:[#allocation16_spill] sm:$0xff] %v7706_v13  ;;  %5228 = vmatmul.mubr.msk.bf16.gmra.mrb[148].mxu1 %vm1567_vm2, %v5866_v38  ;;  %v7712_v39 = vpop.permute.xlu1 %659  ;;  %v4432_v13 = vld [vmem:[#allocation2] sm:$0x1] }
 0x13b   :  { %v5984_v31 = vpop.eup %5983  ;;  %v3000_v20 = vpack.c.bf16 %v2994_v29, %v2993_v36  ;;  %8820 = vst [vmem:[#allocation17_spill] sm:$0xff] %v7712_v39  ;;  %5231 = vmatprep.mubr.msk.bf16.mxu1 %vm1567_vm2, %v5867_v2 }
 0x13c   :  { %v5986_v15 = vpop.eup %5985  ;;  %v2992_v23 = vmul.f32 %v5984_v31, %v5970_v8 }
 0x13d   :  { %v5988_v17 = vpop.eup %5987  ;;  %1109 = vperm.xlu1 %5771, %v343_v10   ;;  %v7718_v53 = vpop.f32.mrb[44].mxu1  ;;  %1104 = vperm.xlu0 %5770, %v342_v22   ;;  %v5868_v10 = vld [vmem:[%s8779_s1 + $0x268] sm:$0xff]  }
 0x13e   :  { %v5990_v28 = vpop.eup %5989  ;;  %v2999_v35 = vpack.c.bf16 %v2992_v23, %v2991_v11  ;;  %v7720_v38 = vpop.f32.mrb[45].mxu1  ;;  %v351_v23 = vld [vmem:[%s8781_s3 + $0x4f8] sm:$0xff]  ;;  %v350_v11 = vld [vmem:[%s8781_s3 + $0x4f0] sm:$0xff] }
 0x13f   :  { %v5992_v52 = vpop.eup %5991  ;;  %v2997_v36 = vmul.f32 %v5990_v28, %v5986_v15  ;;  %v7725_v2 = vpop.f32.mrb[46].mxu1 }
 0x140   :  { %v5994_v8 = vpop.eup %5993  ;;  %5273 = vmatprep.subr.bf16.mxu0 %v2999_v35  ;;  %v2995_v22 = vmul.f32 %v5992_v52, %v5982_v59  ;;  %v7738_v15 = vpop.permute.xlu1 %629 }
 0x141   :  { %v5996_v12 = vpop.eup %5995  ;;  %5274 = vmatpush3.bf16.msra.mxu0 %v2999_v35  ;;  %v2998_v29 = vmul.f32 %v5994_v8, %v5988_v17  ;;  %v7733_v35 = vpop.permute.xlu0 %624  ;;  %v5869_v17 = vld [vmem:[%s8779_s1 + $0x270] sm:$0xff]   ;;  %1149 = vperm.xlu1 %5771, %v351_v23   ;;  %v7761_v23 = vld [vmem:[%s8780_s2 + $0x8] sm:$0xff]  }
 0x142   :  { %v5998_v31 = vpop.eup %5997  ;;  %5275 = vmatprep.subr.bf16.mxu0 %v3000_v20  ;;  %v7740_v28 = vpop.f32.mrb[47].mxu1  ;;  %1144 = vperm.xlu0 %5770, %v350_v11   ;;  %8822 = vst [vmem:[#allocation19_spill] sm:$0xff] %v7761_v23 }
 0x143   :  { %v2996_v39 = vmul.f32 %v5998_v31, %v5996_v12  ;;  %v3002_v58 = vpack.c.bf16 %v2998_v29, %v2997_v36  ;;  %5232 = vmatmul.mubr.msk.bf16.gmra.mrb[152].mxu1 %vm1567_vm2, %v5868_v10  ;;  %v7772_v31 = vld [vmem:[%s8780_s2 + $0x10] sm:$0xff]   ;;  %v7783_v10 = vld [vmem:[%s8780_s2 + $0x18] sm:$0xff]  }
 0x144   :  { %5235 = vmatprep.mubr.msk.bf16.mxu1 %vm1567_vm2, %v5869_v17  ;;  %8823 = vst [vmem:[#allocation20_spill] sm:$0xff] %v7772_v31  ;;  %8824 = vst [vmem:[#allocation21_spill] sm:$0xff] %v7783_v10 }
 0x145   :  { %5276 = vmatpush3.bf16.msra.mxu0 %v3000_v20  ;;  %v3001_v8 = vpack.c.bf16 %v2996_v39, %v2995_v22  ;;  %v7744_v59 = vpop.f32.mrb[48].mxu1  ;;  %v7746_v52 = vpop.permute.xlu0 %664  ;;  %v5870_v20 = vld [vmem:[%s8779_s1 + $0x278] sm:$0xff]  }
 0x146   :  { %8821 = vst [vmem:[#allocation18_spill] sm:$0xff] %v7746_v52  ;;  %4435 = vperm.xlu0 %5770, %v4432_v13   ;;  %v7748_v12 = vpop.f32.mrb[49].mxu1 }
 0x147   :  { %5277 = vmatprep.subr.bf16.mxu0 %v3001_v8  ;;  %v7750_v36 = vpop.f32.mrb[50].mxu1 }
 0x148   :  { %v7755_v39 = vpop.f32.mrb[51].mxu1 }
 0x149   :  { %5278 = vmatpush3.bf16.msra.mxu0 %v3001_v8  ;;  %v7794_v8 = vld [vmem:[%s8780_s2 + $0x20] sm:$0xff]  }
 0x14a   :  { %5279 = vmatprep.subr.bf16.mxu0 %v3002_v58  ;;  %8826 = vst [vmem:[#allocation23_spill] sm:$0xff] %v7794_v8 }
 0x14b   :  { %5236 = vmatmul.mubr.msk.bf16.gmra.mrb[156].mxu1 %vm1567_vm2, %v5870_v20 }
 0x14d   :  { %5280 = vmatpush3.bf16.msra.mxu0 %v3002_v58  ;;  %v7765_v13 = vpop.f32.mrb[52].mxu1 }
 0x14e   :  { %v7767_v29 = vpop.f32.mrb[53].mxu1 }
 0x14f   :  { %v7776_v58 = vpop.f32.mrb[54].mxu1 }
 0x150   :  { %5282 = vmatmul.mubr.msk.bf16.vlgmr.msra.gmra.mrb[32].mxu0 %vm2597_vm0, %v7761_v23  ;;  %v7778_v11 = vpop.f32.mrb[55].mxu1 }
 0x151   :  { %5285 = vmatprep.mubr.msk.bf16.mxu0 %vm2597_vm0, %v7772_v31 }
 0x155   :  { %v7787_v22 = vpop.f32.mrb[56].mxu1 }
 0x156   :  { %v7789_v17 = vpop.f32.mrb[57].mxu1 }
 0x157   :  { %8825 = vst [vmem:[#allocation22_spill] sm:$0xff] %v7789_v17  ;;  %v7798_v20 = vpop.f32.mrb[58].mxu1 }
 0x158   :  { %5286 = vmatmul.mubr.msk.bf16.gmra.mrb[36].mxu0 %vm2597_vm0, %v7783_v10  ;;  %8827 = vst [vmem:[#allocation24_spill] sm:$0xff] %v7798_v20  ;;  %v7800_v31 = vpop.f32.mrb[59].mxu1  ;;  %v7805_v10 = vld [vmem:[%s8780_s2 + $0x28] sm:$0xff]  }
 0x159   :  { %5289 = vmatprep.mubr.msk.bf16.mxu0 %vm2597_vm0, %v7794_v8  ;;  %8828 = vst [vmem:[#allocation25_spill] sm:$0xff] %v7800_v31  ;;  %8829 = vst [vmem:[#allocation26_spill] sm:$0xff] %v7805_v10  ;;  %v7816_v8 = vld [vmem:[%s8780_s2 + $0x30] sm:$0xff]  }
 0x15a   :  { %8832 = vst [vmem:[#allocation29_spill] sm:$0xff] %v7816_v8 }
 0x15d   :  { %v7809_v23 = vpop.f32.mrb[60].mxu1 }
 0x15e   :  { %8830 = vst [vmem:[#allocation27_spill] sm:$0xff] %v7809_v23  ;;  %v7811_v52 = vpop.f32.mrb[61].mxu1 }
 0x15f   :  { %8831 = vst [vmem:[#allocation28_spill] sm:$0xff] %v7811_v52  ;;  %v7820_v7 = vpop.f32.mrb[62].mxu1 }
 0x160   :  { %5290 = vmatmul.mubr.msk.bf16.gmra.mrb[40].mxu0 %vm2597_vm0, %v7805_v10  ;;  %8833 = vst [vmem:[#allocation30_spill] sm:$0xff] %v7820_v7  ;;  %v7822_v16 = vpop.f32.mrb[63].mxu1  ;;  %v7827_v10 = vld [vmem:[%s8780_s2 + $0x38] sm:$0xff]  }
 0x161   :  { %5293 = vmatprep.mubr.msk.bf16.mxu0 %vm2597_vm0, %v7816_v8  ;;  %8834 = vst [vmem:[#allocation31_spill] sm:$0xff] %v7822_v16  ;;  %8835 = vst [vmem:[#allocation32_spill] sm:$0xff] %v7827_v10  ;;  %v7838_v8 = vld [vmem:[%s8780_s2 + $0x40] sm:$0xff]  }
 0x162   :  { %8838 = vst [vmem:[#allocation35_spill] sm:$0xff] %v7838_v8 }
 0x165   :  { %v7831_v52 = vpop.f32.mrb[64].mxu1 }
 0x166   :  { %8836 = vst [vmem:[#allocation33_spill] sm:$0xff] %v7831_v52  ;;  %v7833_v23 = vpop.f32.mrb[65].mxu1 }
 0x167   :  { %8837 = vst [vmem:[#allocation34_spill] sm:$0xff] %v7833_v23  ;;  %v7842_v16 = vpop.f32.mrb[66].mxu1 }
 0x168   :  { %5294 = vmatmul.mubr.msk.bf16.gmra.mrb[44].mxu0 %vm2597_vm0, %v7827_v10  ;;  %8839 = vst [vmem:[#allocation36_spill] sm:$0xff] %v7842_v16  ;;  %v7844_v7 = vpop.f32.mrb[67].mxu1  ;;  %v7849_v10 = vld [vmem:[%s8780_s2 + $0x48] sm:$0xff]  }
 0x169   :  { %5297 = vmatprep.mubr.msk.bf16.mxu0 %vm2597_vm0, %v7838_v8  ;;  %8840 = vst [vmem:[#allocation37_spill] sm:$0xff] %v7844_v7  ;;  %8841 = vst [vmem:[#allocation38_spill] sm:$0xff] %v7849_v10  ;;  %v7860_v8 = vld [vmem:[%s8780_s2 + $0x50] sm:$0xff]  }
 0x16a   :  { %8844 = vst [vmem:[#allocation41_spill] sm:$0xff] %v7860_v8 }
 0x16d   :  { %v7853_v23 = vpop.f32.mrb[68].mxu1 }
 0x16e   :  { %8842 = vst [vmem:[#allocation39_spill] sm:$0xff] %v7853_v23  ;;  %v7855_v52 = vpop.f32.mrb[69].mxu1 }
 0x16f   :  { %8843 = vst [vmem:[#allocation40_spill] sm:$0xff] %v7855_v52  ;;  %v7864_v7 = vpop.f32.mrb[70].mxu1 }
 0x170   :  { %5298 = vmatmul.mubr.msk.bf16.gmra.mrb[48].mxu0 %vm2597_vm0, %v7849_v10  ;;  %8845 = vst [vmem:[#allocation42_spill] sm:$0xff] %v7864_v7  ;;  %v7866_v16 = vpop.f32.mrb[71].mxu1  ;;  %v7871_v10 = vld [vmem:[%s8780_s2 + $0x58] sm:$0xff]  }
 0x171   :  { %5301 = vmatprep.mubr.msk.bf16.mxu0 %vm2597_vm0, %v7860_v8  ;;  %8846 = vst [vmem:[#allocation43_spill] sm:$0xff] %v7866_v16  ;;  %8847 = vst [vmem:[#allocation44_spill] sm:$0xff] %v7871_v10  ;;  %v7882_v8 = vld [vmem:[%s8780_s2 + $0x60] sm:$0xff]  }
 0x172   :  { %8850 = vst [vmem:[#allocation47_spill] sm:$0xff] %v7882_v8 }
 0x175   :  { %v7875_v52 = vpop.f32.mrb[72].mxu1 }
 0x176   :  { %8848 = vst [vmem:[#allocation45_spill] sm:$0xff] %v7875_v52  ;;  %v7877_v23 = vpop.f32.mrb[73].mxu1 }
 0x177   :  { %8849 = vst [vmem:[#allocation46_spill] sm:$0xff] %v7877_v23  ;;  %v7886_v16 = vpop.f32.mrb[74].mxu1 }
 0x178   :  { %5302 = vmatmul.mubr.msk.bf16.gmra.mrb[52].mxu0 %vm2597_vm0, %v7871_v10  ;;  %8851 = vst [vmem:[#allocation48_spill] sm:$0xff] %v7886_v16  ;;  %v7888_v7 = vpop.f32.mrb[75].mxu1  ;;  %v7893_v10 = vld [vmem:[%s8780_s2 + $0x68] sm:$0xff]  }
 0x179   :  { %5305 = vmatprep.mubr.msk.bf16.mxu0 %vm2597_vm0, %v7882_v8  ;;  %8852 = vst [vmem:[#allocation49_spill] sm:$0xff] %v7888_v7  ;;  %8853 = vst [vmem:[#allocation50_spill] sm:$0xff] %v7893_v10  ;;  %v7904_v8 = vld [vmem:[%s8780_s2 + $0x70] sm:$0xff]  }
 0x17a   :  { %8856 = vst [vmem:[#allocation53_spill] sm:$0xff] %v7904_v8 }
 0x17d   :  { %v7897_v23 = vpop.f32.mrb[76].mxu1 }
 0x17e   :  { %8854 = vst [vmem:[#allocation51_spill] sm:$0xff] %v7897_v23  ;;  %v7899_v52 = vpop.f32.mrb[77].mxu1 }
 0x17f   :  { %8855 = vst [vmem:[#allocation52_spill] sm:$0xff] %v7899_v52  ;;  %v7908_v7 = vpop.f32.mrb[78].mxu1 }
 0x180   :  { %5306 = vmatmul.mubr.msk.bf16.gmra.mrb[56].mxu0 %vm2597_vm0, %v7893_v10  ;;  %8857 = vst [vmem:[#allocation54_spill] sm:$0xff] %v7908_v7  ;;  %v7910_v16 = vpop.f32.mrb[79].mxu1  ;;  %v7915_v10 = vld [vmem:[%s8780_s2 + $0x78] sm:$0xff]  }
 0x181   :  { %5309 = vmatprep.mubr.msk.bf16.mxu0 %vm2597_vm0, %v7904_v8  ;;  %8858 = vst [vmem:[#allocation55_spill] sm:$0xff] %v7910_v16  ;;  %8859 = vst [vmem:[#allocation56_spill] sm:$0xff] %v7915_v10  ;;  %v7926_v8 = vld [vmem:[%s8780_s2] sm:$0xff]  }
 0x182   :  { %8862 = vst [vmem:[#allocation59_spill] sm:$0xff] %v7926_v8 }
 0x185   :  { %v7919_v52 = vpop.f32.mrb[80].mxu1 }
 0x186   :  { %8860 = vst [vmem:[#allocation57_spill] sm:$0xff] %v7919_v52  ;;  %v7921_v23 = vpop.f32.mrb[81].mxu1 }
 0x187   :  { %8861 = vst [vmem:[#allocation58_spill] sm:$0xff] %v7921_v23  ;;  %v7930_v16 = vpop.f32.mrb[82].mxu1 }
 0x188   :  { %5310 = vmatmul.mubr.msk.bf16.gmra.mrb[60].mxu0 %vm2597_vm0, %v7915_v10  ;;  %8863 = vst [vmem:[#allocation60_spill] sm:$0xff] %v7930_v16  ;;  %v7932_v7 = vpop.f32.mrb[83].mxu1 }
 0x189   :  { %5321 = vmatprep.mubr.msk.bf16.mxu0 %vm2597_vm0, %v7926_v8  ;;  %8864 = vst [vmem:[#allocation61_spill] sm:$0xff] %v7932_v7 }
 0x18d   :  { %v7934_v25 = vpop.f32.mrb[84].mxu1 }
 0x18e   :  { %8865 = vst [vmem:[#allocation62_spill] sm:$0xff] %v7934_v25  ;;  %v7936_v31 = vpop.f32.mrb[85].mxu1 }
 0x18f   :  { %8866 = vst [vmem:[#allocation63_spill] sm:$0xff] %v7936_v31  ;;  %v7938_v10 = vpop.f32.mrb[86].mxu1 }
 0x190   :  { %8867 = vst [vmem:[#allocation64_spill] sm:$0xff] %v7938_v10  ;;  %v7940_v52 = vpop.f32.mrb[87].mxu1 }
 0x191   :  { %8868 = vst [vmem:[#allocation65_spill] sm:$0xff] %v7940_v52 }
 0x195   :  { %v7942_v23 = vpop.f32.mrb[88].mxu1 }
 0x196   :  { %8869 = vst [vmem:[#allocation66_spill] sm:$0xff] %v7942_v23  ;;  %v7944_v45 = vpop.f32.mrb[89].mxu1 }
 0x197   :  { %8870 = vst [vmem:[#allocation67_spill] sm:$0xff] %v7944_v45  ;;  %v7946_v27 = vpop.f32.mrb[90].mxu1 }
 0x198   :  { %8871 = vst [vmem:[#allocation68_spill] sm:$0xff] %v7946_v27  ;;  %v7948_v20 = vpop.f32.mrb[91].mxu1 }
 0x199   :  { %8872 = vst [vmem:[#allocation69_spill] sm:$0xff] %v7948_v20 }
 0x19d   :  { %v7950_v8 = vpop.f32.mrb[92].mxu1 }
 0x19e   :  { %8873 = vst [vmem:[#allocation70_spill] sm:$0xff] %v7950_v8  ;;  %v7952_v16 = vpop.f32.mrb[93].mxu1 }
 0x19f   :  { %8874 = vst [vmem:[#allocation71_spill] sm:$0xff] %v7952_v16  ;;  %v7954_v7 = vpop.f32.mrb[94].mxu1 }
 0x1a0   :  { %8875 = vst [vmem:[#allocation72_spill] sm:$0xff] %v7954_v7  ;;  %v7956_v25 = vpop.f32.mrb[95].mxu1 }
 0x1a1   :  { %8876 = vst [vmem:[#allocation73_spill] sm:$0xff] %v7956_v25 }
 0x1a5   :  { %v7958_v31 = vpop.f32.mrb[96].mxu1 }
 0x1a6   :  { %8877 = vst [vmem:[#allocation74_spill] sm:$0xff] %v7958_v31  ;;  %v7960_v10 = vpop.f32.mrb[97].mxu1 }
 0x1a7   :  { %8878 = vst [vmem:[#allocation75_spill] sm:$0xff] %v7960_v10  ;;  %v7962_v52 = vpop.f32.mrb[98].mxu1 }
 0x1a8   :  { %8879 = vst [vmem:[#allocation76_spill] sm:$0xff] %v7962_v52  ;;  %v7964_v23 = vpop.f32.mrb[99].mxu1 }
 0x1a9   :  { %8880 = vst [vmem:[#allocation77_spill] sm:$0xff] %v7964_v23 }
 0x1ad   :  { %v7966_v45 = vpop.f32.mrb[100].mxu1 }
 0x1ae   :  { %8881 = vst [vmem:[#allocation78_spill] sm:$0xff] %v7966_v45  ;;  %v7968_v27 = vpop.f32.mrb[101].mxu1 }
 0x1af   :  { %8882 = vst [vmem:[#allocation79_spill] sm:$0xff] %v7968_v27  ;;  %v7970_v20 = vpop.f32.mrb[102].mxu1 }
 0x1b0   :  { %8883 = vst [vmem:[#allocation80_spill] sm:$0xff] %v7970_v20  ;;  %v7972_v8 = vpop.f32.mrb[103].mxu1 }
 0x1b1   :  { %8884 = vst [vmem:[#allocation81_spill] sm:$0xff] %v7972_v8 }
 0x1b5   :  { %v7974_v16 = vpop.f32.mrb[104].mxu1 }
 0x1b6   :  { %8885 = vst [vmem:[#allocation82_spill] sm:$0xff] %v7974_v16  ;;  %v7976_v7 = vpop.f32.mrb[105].mxu1 }
 0x1b7   :  { %8886 = vst [vmem:[#allocation83_spill] sm:$0xff] %v7976_v7  ;;  %v7978_v25 = vpop.f32.mrb[106].mxu1 }
 0x1b8   :  { %8887 = vst [vmem:[#allocation84_spill] sm:$0xff] %v7978_v25  ;;  %v7980_v31 = vpop.f32.mrb[107].mxu1 }
 0x1b9   :  { %8888 = vst [vmem:[#allocation85_spill] sm:$0xff] %v7980_v31 }
 0x1bd   :  { %v7982_v10 = vpop.f32.mrb[108].mxu1 }
 0x1be   :  { %8889 = vst [vmem:[#allocation86_spill] sm:$0xff] %v7982_v10  ;;  %v7984_v52 = vpop.f32.mrb[109].mxu1 }
 0x1bf   :  { %8890 = vst [vmem:[#allocation87_spill] sm:$0xff] %v7984_v52  ;;  %v7986_v23 = vpop.f32.mrb[110].mxu1 }
 0x1c0   :  { %8891 = vst [vmem:[#allocation88_spill] sm:$0xff] %v7986_v23  ;;  %v7988_v45 = vpop.f32.mrb[111].mxu1 }
 0x1c1   :  { %8892 = vst [vmem:[#allocation89_spill] sm:$0xff] %v7988_v45 }
 0x1c5   :  { %v7990_v27 = vpop.f32.mrb[112].mxu1 }
 0x1c6   :  { %8893 = vst [vmem:[#allocation90_spill] sm:$0xff] %v7990_v27  ;;  %v7992_v20 = vpop.f32.mrb[113].mxu1 }
 0x1c7   :  { %8894 = vst [vmem:[#allocation91_spill] sm:$0xff] %v7992_v20  ;;  %v7994_v8 = vpop.f32.mrb[114].mxu1 }
 0x1c8   :  { %8895 = vst [vmem:[#allocation92_spill] sm:$0xff] %v7994_v8  ;;  %v7996_v16 = vpop.f32.mrb[115].mxu1 }
 0x1c9   :  { %8896 = vst [vmem:[#allocation93_spill] sm:$0xff] %v7996_v16 }
 0x1cd   :  { %v7998_v7 = vpop.f32.mrb[116].mxu1 }
 0x1ce   :  { %8897 = vst [vmem:[#allocation94_spill] sm:$0xff] %v7998_v7  ;;  %v8000_v25 = vpop.f32.mrb[117].mxu1 }
 0x1cf   :  { %8898 = vst [vmem:[#allocation95_spill] sm:$0xff] %v8000_v25  ;;  %v8002_v31 = vpop.f32.mrb[118].mxu1 }
 0x1d0   :  { %8899 = vst [vmem:[#allocation96_spill] sm:$0xff] %v8002_v31  ;;  %v8004_v10 = vpop.f32.mrb[119].mxu1 }
 0x1d1   :  { %8900 = vst [vmem:[#allocation97_spill] sm:$0xff] %v8004_v10 }
 0x1d5   :  { %v8006_v52 = vpop.f32.mrb[120].mxu1 }
 0x1d6   :  { %8901 = vst [vmem:[#allocation98_spill] sm:$0xff] %v8006_v52  ;;  %v8008_v23 = vpop.f32.mrb[121].mxu1 }
 0x1d7   :  { %8902 = vst [vmem:[#allocation99_spill] sm:$0xff] %v8008_v23  ;;  %v8010_v45 = vpop.f32.mrb[122].mxu1 }
 0x1d8   :  { %8903 = vst [vmem:[#allocation100_spill] sm:$0xff] %v8010_v45  ;;  %v8012_v27 = vpop.f32.mrb[123].mxu1 }
 0x1d9   :  { %8904 = vst [vmem:[#allocation101_spill] sm:$0xff] %v8012_v27 }
 0x1dd   :  { %v8014_v20 = vpop.f32.mrb[124].mxu1 }
 0x1de   :  { %8905 = vst [vmem:[#allocation102_spill] sm:$0xff] %v8014_v20  ;;  %v8016_v8 = vpop.f32.mrb[125].mxu1 }
 0x1df   :  { %8906 = vst [vmem:[#allocation103_spill] sm:$0xff] %v8016_v8  ;;  %v8018_v16 = vpop.f32.mrb[126].mxu1 }
 0x1e0   :  { %8907 = vst [vmem:[#allocation104_spill] sm:$0xff] %v8018_v16  ;;  %v8020_v7 = vpop.f32.mrb[127].mxu1 }
 0x1e1   :  { %8908 = vst [vmem:[#allocation105_spill] sm:$0xff] %v8020_v7 }
 0x1e5   :  { %v8022_v25 = vpop.f32.mrb[128].mxu1 }
 0x1e6   :  { %8909 = vst [vmem:[#allocation106_spill] sm:$0xff] %v8022_v25  ;;  %v8024_v31 = vpop.f32.mrb[129].mxu1 }
 0x1e7   :  { %8910 = vst [vmem:[#allocation107_spill] sm:$0xff] %v8024_v31  ;;  %v8026_v10 = vpop.f32.mrb[130].mxu1 }
 0x1e8   :  { %8911 = vst [vmem:[#allocation108_spill] sm:$0xff] %v8026_v10  ;;  %v8028_v52 = vpop.f32.mrb[131].mxu1 }
 0x1e9   :  { %8912 = vst [vmem:[#allocation109_spill] sm:$0xff] %v8028_v52 }
 0x1ed   :  { %v8030_v23 = vpop.f32.mrb[132].mxu1 }
 0x1ee   :  { %8913 = vst [vmem:[#allocation110_spill] sm:$0xff] %v8030_v23  ;;  %v8032_v45 = vpop.f32.mrb[133].mxu1 }
 0x1ef   :  { %8914 = vst [vmem:[#allocation111_spill] sm:$0xff] %v8032_v45  ;;  %v8034_v27 = vpop.f32.mrb[134].mxu1 }
 0x1f0   :  { %8915 = vst [vmem:[#allocation112_spill] sm:$0xff] %v8034_v27  ;;  %v8036_v20 = vpop.f32.mrb[135].mxu1 }
 0x1f1   :  { %8916 = vst [vmem:[#allocation113_spill] sm:$0xff] %v8036_v20 }
 0x1f5   :  { %v8038_v8 = vpop.f32.mrb[136].mxu1 }
 0x1f6   :  { %8917 = vst [vmem:[#allocation114_spill] sm:$0xff] %v8038_v8  ;;  %v8040_v16 = vpop.f32.mrb[137].mxu1 }
 0x1f7   :  { %8918 = vst [vmem:[#allocation115_spill] sm:$0xff] %v8040_v16  ;;  %v8042_v7 = vpop.f32.mrb[138].mxu1 }
 0x1f8   :  { %8919 = vst [vmem:[#allocation116_spill] sm:$0xff] %v8042_v7  ;;  %v8044_v25 = vpop.f32.mrb[139].mxu1 }
 0x1f9   :  { %8920 = vst [vmem:[#allocation117_spill] sm:$0xff] %v8044_v25 }
 0x1fd   :  { %v8046_v31 = vpop.f32.mrb[140].mxu1 }
 0x1fe   :  { %8921 = vst [vmem:[#allocation118_spill] sm:$0xff] %v8046_v31  ;;  %v8048_v10 = vpop.f32.mrb[141].mxu1 }
 0x1ff   :  { %8922 = vst [vmem:[#allocation119_spill] sm:$0xff] %v8048_v10  ;;  %v8050_v52 = vpop.f32.mrb[142].mxu1 }
 0x200   :  { %8923 = vst [vmem:[#allocation120_spill] sm:$0xff] %v8050_v52  ;;  %v8052_v23 = vpop.f32.mrb[143].mxu1 }
 0x201   :  { %8924 = vst [vmem:[#allocation121_spill] sm:$0xff] %v8052_v23 }
 0x205   :  { %v8054_v45 = vpop.f32.mrb[144].mxu1 }
 0x206   :  { %8925 = vst [vmem:[#allocation122_spill] sm:$0xff] %v8054_v45  ;;  %v8056_v27 = vpop.f32.mrb[145].mxu1 }
 0x207   :  { %8926 = vst [vmem:[#allocation123_spill] sm:$0xff] %v8056_v27  ;;  %v8058_v20 = vpop.f32.mrb[146].mxu1 }
 0x208   :  { %8927 = vst [vmem:[#allocation124_spill] sm:$0xff] %v8058_v20  ;;  %v8060_v8 = vpop.f32.mrb[147].mxu1 }
 0x209   :  { %8928 = vst [vmem:[#allocation125_spill] sm:$0xff] %v8060_v8  ;;  %v1983_v8 = vadd.f32 %v7612_v60, %v7351_v62 }
 0x20d   :  { %v8062_v16 = vpop.f32.mrb[148].mxu1 }
 0x20e   :  { %8929 = vst [vmem:[#allocation126_spill] sm:$0xff] %v8062_v16  ;;  %v8064_v7 = vpop.f32.mrb[149].mxu1 }
 0x20f   :  { %8930 = vst [vmem:[#allocation127_spill] sm:$0xff] %v8064_v7  ;;  %v8066_v25 = vpop.f32.mrb[150].mxu1 }
 0x210   :  { %8931 = vst [vmem:[#allocation128_spill] sm:$0xff] %v8066_v25  ;;  %v8068_v31 = vpop.f32.mrb[151].mxu1  ;;  %v1975_v25 = vadd.f32 %v7614_v0, %v7308_v50 }
 0x211   :  { %8932 = vst [vmem:[#allocation129_spill] sm:$0xff] %v8068_v31 }
 0x216   :  { %v8070_v10 = vpop.f32.mrb[152].mxu1 }
 0x217   :  { %8933 = vst [vmem:[#allocation130_spill] sm:$0xff] %v8070_v10  ;;  %v8072_v52 = vpop.f32.mrb[153].mxu1 }
 0x218   :  { %8934 = vst [vmem:[#allocation131_spill] sm:$0xff] %v8072_v52  ;;  %v8074_v23 = vpop.f32.mrb[154].mxu1  ;;  %v1986_v52 = vadd.f32 %v7625_v24, %v7349_v48  ;;  %v1999_v48 = vadd.f32 %v7646_v18, %v7480_v49 }
 0x219   :  { %8935 = vst [vmem:[#allocation132_spill] sm:$0xff] %v8074_v23  ;;  %v8076_v45 = vpop.f32.mrb[155].mxu1 }
 0x21a   :  { %8936 = vst [vmem:[#allocation133_spill] sm:$0xff] %v8076_v45 }
 0x21e   :  { %v8078_v27 = vpop.f32.mrb[156].mxu1 }
 0x21f   :  { %8937 = vst [vmem:[#allocation134_spill] sm:$0xff] %v8078_v27  ;;  %v8082_v16 = vpop.f32.mrb[157].mxu1  ;;  %v1978_v27 = vadd.f32 %v7635_v46, %v7297_v43  ;;  %v2002_v43 = vadd.f32 %v7664_v34, %v7476_v37  ;;  %v2015_v37 = vadd.f32 %v7686_v5, %v7379_v9 }
 0x220   :  { %8938 = vst [vmem:[#allocation135_spill] sm:$0xff] %v8082_v16  ;;  %v8086_v31 = vpop.f32.mrb[158].mxu1 }
 0x221   :  { %8939 = vst [vmem:[#allocation136_spill] sm:$0xff] %v8086_v31  ;;  %v8090_v20 = vpop.f32.mrb[159].mxu1 }
 0x223   :  { %v5283_v7 = vpop.f32.mrb[32].mxu0 }
 0x224   :  { %v3046_v10 = vadd.f32 %v5283_v7, %v1983_v8  ;;  %v3037_v23 = vpop.f32.mrb[33].mxu0  ;;  %v1991_v7 = vadd.f32 %v7651_v44, %v7407_v56  ;;  %v2018_v8 = vadd.f32 %v7699_v30, %v7377_v40 }
 0x225   :  { %v3038_v45 = vadd.f32 %v3037_v23, %v1975_v25  ;;  %v5284_v62 = vpop.f32.mrb[34].mxu0 }
 0x226   :  { %v4744_v60 = vmul.f32 -1.442695, %v3046_v10  ;;  %v3049_v16 = vadd.f32 %v5284_v62, %v1986_v52  ;;  %v3040_v55 = vpop.f32.mrb[35].mxu0 }
 0x227   :  { %v4742_v17 = vmul.f32 -1.442695, %v3038_v45  ;;  %v3041_v50 = vadd.f32 %v3040_v55, %v1978_v27  ;;  %v1994_v27 = vadd.f32 %v7671_v6, %v7405_v42  ;;  %v2007_v42 = vadd.f32 %v7688_v63, %v7323_v4 }
 0x228   :  { %5999 = vpow2.f32 %v4744_v60  ;;  %v4745_v0 = vmul.f32 -1.442695, %v3049_v16 }
 0x229   :  { %6001 = vpow2.f32 %v4742_v17  ;;  %v4743_v31 = vmul.f32 -1.442695, %v3041_v50 }
 0x22a   :  { %6003 = vpow2.f32 %v4745_v0  ;;  %v2010_v0 = vadd.f32 %v7704_v21, %v7321_v3  ;;  %v2031_v3 = vadd.f32 %v7718_v53, %v7516_v1 }
 0x22b   :  { %v5287_v24 = vpop.f32.mrb[36].mxu0  ;;  %6005 = vpow2.f32 %v4743_v31 }
 0x22c   :  { %v3062_v25 = vadd.f32 %v5287_v24, %v1999_v48  ;;  %v3053_v46 = vpop.f32.mrb[37].mxu0 }
 0x22d   :  { %v3054_v16 = vadd.f32 %v3053_v46, %v1991_v7  ;;  %v5288_v45 = vpop.f32.mrb[38].mxu0 }
 0x22e   :  { %v4748_v55 = vmul.f32 -1.442695, %v3062_v25  ;;  %v3065_v52 = vadd.f32 %v5288_v45, %v2002_v43  ;;  %v3056_v23 = vpop.f32.mrb[39].mxu0 }
 0x22f   :  { %v4746_v49 = vmul.f32 -1.442695, %v3054_v16  ;;  %v3057_v18 = vadd.f32 %v3056_v23, %v1994_v27  ;;  %v2023_v16 = vadd.f32 %v7720_v38, %v7443_v47  ;;  %v2034_v23 = vadd.f32 %v7725_v2, %v7514_v61 }
 0x230   :  { %6007 = vpow2.f32 %v4748_v55  ;;  %v4749_v10 = vmul.f32 -1.442695, %v3065_v52 }
 0x231   :  { %6009 = vpow2.f32 %v4746_v49  ;;  %v4747_v56 = vmul.f32 -1.442695, %v3057_v18 }
 0x232   :  { %v6000_v44 = vpop.eup %5999  ;;  %6011 = vpow2.f32 %v4749_v10 }
 0x233   :  { %v6002_v34 = vpop.eup %6001  ;;  %v3190_v6 = vadd.f32 1.0, %v6000_v44  ;;  %v5291_v31 = vpop.f32.mrb[40].mxu0  ;;  %6013 = vpow2.f32 %v4747_v56  ;;  %v2026_v56 = vadd.f32 %v7740_v28, %v7439_v19 }
 0x234   :  { %v6004_v17 = vpop.eup %6003  ;;  %v3188_v62 = vadd.f32 1.0, %v6002_v34  ;;  %v3078_v60 = vadd.f32 %v5291_v31, %v2015_v37  ;;  %v3069_v50 = vpop.f32.mrb[41].mxu0 }
 0x235   :  { %v3191_v48 = vadd.f32 1.0, %v6004_v17  ;;  %v3070_v9 = vadd.f32 %v3069_v50, %v2007_v42  ;;  %v5292_v5 = vpop.f32.mrb[42].mxu0  ;;  %v6006_v7 = vpop.eup %6005  ;;  %6015 = vrcp.f32 %v3190_v6 }
 0x236   :  { %v4752_v24 = vmul.f32 -1.442695, %v3078_v60  ;;  %v3081_v4 = vadd.f32 %v5292_v5, %v2018_v8  ;;  %v3072_v63 = vpop.f32.mrb[43].mxu0  ;;  %6017 = vrcp.f32 %v3188_v62  ;;  %v3189_v30 = vadd.f32 1.0, %v6006_v7 }
 0x237   :  { %v4750_v43 = vmul.f32 -1.442695, %v3070_v9  ;;  %v3073_v25 = vadd.f32 %v3072_v63, %v2010_v0  ;;  %6019 = vrcp.f32 %v3191_v48  ;;  %v2047_v8 = vadd.f32 %v7744_v59, %v7631_v51 }
 0x238   :  { %v4753_v40 = vmul.f32 -1.442695, %v3081_v4  ;;  %6021 = vpow2.f32 %v4752_v24  ;;  %v2039_v60 = vadd.f32 %v7748_v12, %v7558_v57  ;;  %v2050_v48 = vadd.f32 %v7750_v36, %v7633_v26 }
 0x239   :  { %v4751_v46 = vmul.f32 -1.442695, %v3073_v25  ;;  %6023 = vpow2.f32 %v4750_v43  ;;  %v2042_v4 = vadd.f32 %v7755_v39, %v7562_v14  ;;  %v2063_v39 = vadd.f32 %v7765_v13, %v7733_v35 }
 0x23a   :  { %v6008_v27 = vpop.eup %6007  ;;  %6025 = vpow2.f32 %v4753_v40 }
 0x23b   :  { %v6010_v21 = vpop.eup %6009  ;;  %v3194_v45 = vadd.f32 1.0, %v6008_v27  ;;  %v5295_v55 = vpop.f32.mrb[44].mxu0  ;;  %6027 = vpow2.f32 %v4751_v46 }
 0x23c   :  { %v6012_v52 = vpop.eup %6011  ;;  %v3192_v49 = vadd.f32 1.0, %v6010_v21  ;;  %v3094_v18 = vadd.f32 %v5295_v55, %v2031_v3  ;;  %v3085_v10 = vpop.f32.mrb[45].mxu0  ;;  %6029 = vrcp.f32 %v3189_v30  ;;  %v2055_v3 = vadd.f32 %v7767_v29, %v7681_v33 }
 0x23d   :  { %v3195_v1 = vadd.f32 1.0, %v6012_v52  ;;  %v3086_v53 = vadd.f32 %v3085_v10, %v2023_v16  ;;  %v5296_v44 = vpop.f32.mrb[46].mxu0  ;;  %v6014_v37 = vpop.eup %6013  ;;  %6031 = vrcp.f32 %v3194_v45  ;;  %v2066_v45 = vadd.f32 %v7776_v58, %v7738_v15 }
 0x23e   :  { %v4756_v47 = vmul.f32 -1.442695, %v3094_v18  ;;  %v3097_v38 = vadd.f32 %v5296_v44, %v2034_v23  ;;  %v3088_v34 = vpop.f32.mrb[47].mxu0  ;;  %6033 = vrcp.f32 %v3192_v49  ;;  %v3193_v17 = vadd.f32 1.0, %v6014_v37 }
 0x23f   :  { %v4754_v42 = vmul.f32 -1.442695, %v3086_v53  ;;  %v3089_v6 = vadd.f32 %v3088_v34, %v2026_v56  ;;  %v8118_v61 = vpop.eup %6015  ;;  %6035 = vrcp.f32 %v3195_v1  ;;  %v2058_v18 = vadd.f32 %v7778_v11, %v7684_v41 }
 0x240   :  { %v4757_v2 = vmul.f32 -1.442695, %v3097_v38  ;;  %v8120_v31 = vpop.eup %6017  ;;  %6037 = vpow2.f32 %v4756_v47  ;;  %v2079_v41 = vadd.f32 %v7787_v22, %v7649_v32  ;;  %v8940_v38 = vld [vmem:[#allocation22_spill] sm:$0xff] }
 0x241   :  { %v4755_v19 = vmul.f32 -1.442695, %v3089_v6  ;;  %v8122_v28 = vpop.eup %6019  ;;  %6039 = vpow2.f32 %v4754_v42  ;;  %v2071_v34 = vadd.f32 %v8940_v38, %v7589_v54  ;;  %v8941_v42 = vld [vmem:[#allocation15_spill] sm:$0xff]  ;;  %v8942_v6 = vld [vmem:[#allocation24_spill] sm:$0xff]  ;;  %v8956_v38 = vld [vmem:[#allocation13_spill] sm:$0xff] }
 0x242   :  { %v6022_v62 = vpop.eup %6021  ;;  %6041 = vpow2.f32 %v4757_v2  ;;  %v2082_v2 = vadd.f32 %v8942_v6, %v8941_v42 }
 0x243   :  { %v5299_v50 = vpop.f32.mrb[48].mxu0  ;;  %v6024_v0 = vpop.eup %6023  ;;  %v3238_v9 = vadd.f32 1.0, %v6022_v62  ;;  %6043 = vpow2.f32 %v4755_v19 }
 0x244   :  { %v3110_v5 = vadd.f32 %v5299_v50, %v2047_v8  ;;  %v3101_v7 = vpop.f32.mrb[49].mxu0  ;;  %v6026_v24 = vpop.eup %6025  ;;  %6045 = vrcp.f32 %v3193_v17  ;;  %v3236_v51 = vadd.f32 1.0, %v6024_v0  ;;  %v8943_v17 = vld [vmem:[#allocation6_spill] sm:$0xff]  ;;  %v8945_v50 = vld [vmem:[#allocation25_spill] sm:$0xff] }
 0x245   :  { %v3102_v59 = vadd.f32 %v3101_v7, %v2039_v60  ;;  %v5300_v63 = vpop.f32.mrb[50].mxu0  ;;  %v6028_v43 = vpop.eup %6027  ;;  %6047 = vrcp.f32 %v3238_v9  ;;  %v3239_v57 = vadd.f32 1.0, %v6026_v24  ;;  %v8944_v60 = vld [vmem:[#allocation11_spill] sm:$0xff]  ;;  %v8947_v7 = vld [vmem:[#allocation8_spill] sm:$0xff] }
 0x246   :  { %v3113_v12 = vadd.f32 %v5300_v63, %v2050_v48  ;;  %v3104_v25 = vpop.f32.mrb[51].mxu0  ;;  %v8132_v40 = vpop.eup %6029  ;;  %6049 = vrcp.f32 %v3236_v51  ;;  %v3237_v26 = vadd.f32 1.0, %v6028_v43  ;;  %v2074_v0 = vadd.f32 %v8945_v50, %v8944_v60  ;;  %v8946_v48 = vld [vmem:[#allocation7_spill] sm:$0xff]  ;;  %v8948_v63 = vld [vmem:[#allocation9_spill] sm:$0xff] }
 0x247   :  { %v3105_v36 = vadd.f32 %v3104_v25, %v2042_v4  ;;  %v8134_v30 = vpop.eup %6031  ;;  %6051 = vrcp.f32 %v3239_v57 }
 0x248   :  { %v8136_v46 = vpop.eup %6033  ;;  %6053 = vrcp.f32 %v3237_v26 }
 0x249   :  { %v8138_v14 = vpop.eup %6035  ;;  %6055 = vtanh.f32 %v3110_v5 }
 0x24a   :  { %v6038_v27 = vpop.eup %6037  ;;  %6057 = vtanh.f32 %v3102_v59 }
 0x24b   :  { %v5303_v21 = vpop.f32.mrb[52].mxu0  ;;  %v6040_v16 = vpop.eup %6039  ;;  %v3242_v55 = vadd.f32 1.0, %v6038_v27  ;;  %6059 = vtanh.f32 %v3113_v12 }
 0x24c   :  { %v3126_v52 = vadd.f32 %v5303_v21, %v2063_v39  ;;  %v3117_v23 = vpop.f32.mrb[53].mxu0  ;;  %v6042_v49 = vpop.eup %6041  ;;  %v3240_v35 = vadd.f32 1.0, %v6040_v16  ;;  %6061 = vtanh.f32 %v3105_v36 }
 0x24d   :  { %v3118_v13 = vadd.f32 %v3117_v23, %v2055_v3  ;;  %v5304_v10 = vpop.f32.mrb[54].mxu0  ;;  %v6044_v56 = vpop.eup %6043  ;;  %6063 = vrcp.f32 %v3242_v55  ;;  %v3243_v33 = vadd.f32 1.0, %v6042_v49  ;;  %v8949_v23 = vld [vmem:[#allocation18_spill] sm:$0xff]  ;;  %v8950_v49 = vld [vmem:[#allocation27_spill] sm:$0xff] }
 0x24e   :  { %v3129_v29 = vadd.f32 %v5304_v10, %v2066_v45  ;;  %v3120_v1 = vpop.f32.mrb[55].mxu0  ;;  %v8148_v53 = vpop.eup %6045  ;;  %6065 = vrcp.f32 %v3240_v35  ;;  %v3241_v15 = vadd.f32 1.0, %v6044_v56  ;;  %v8951_v56 = vld [vmem:[#allocation16_spill] sm:$0xff] }
 0x24f   :  { %v3121_v58 = vadd.f32 %v3120_v1, %v2058_v18  ;;  %v6048_v44 = vpop.eup %6047  ;;  %6067 = vrcp.f32 %v3243_v33  ;;  %v2095_v18 = vadd.f32 %v8950_v49, %v8949_v23  ;;  %v8952_v33 = vld [vmem:[#allocation28_spill] sm:$0xff]  ;;  %v8953_v1 = vld [vmem:[#allocation10_spill] sm:$0xff] }
 0x250   :  { %v6050_v37 = vpop.eup %6049  ;;  %6069 = vrcp.f32 %v3241_v15  ;;  %v3318_v19 = vmul.f32 %v6048_v44, %v8943_v17  ;;  %v8957_v17 = vld [vmem:[#allocation14_spill] sm:$0xff] }
 0x251   :  { %v6052_v47 = vpop.eup %6051  ;;  %6071 = vtanh.f32 %v3126_v52  ;;  %v3316_v9 = vmul.f32 %v6050_v37, %v8946_v48  ;;  %v8954_v37 = vld [vmem:[#allocation30_spill] sm:$0xff] }
 0x252   :  { %v6054_v11 = vpop.eup %6053  ;;  %6073 = vtanh.f32 %v3118_v13  ;;  %v3319_v24 = vmul.f32 %v6052_v47, %v8947_v7  ;;  %v8959_v7 = vld [vmem:[#allocation31_spill] sm:$0xff] }
 0x253   :  { %v5307_v8 = vpop.f32.mrb[56].mxu0  ;;  %v6056_v62 = vpop.eup %6055  ;;  %6075 = vtanh.f32 %v3129_v29  ;;  %v3317_v43 = vmul.f32 %v6054_v11, %v8948_v63  ;;  %v2087_v29 = vadd.f32 %v8952_v33, %v8951_v56 }
 0x254   :  { %v3142_v32 = vadd.f32 %v5307_v8, %v2079_v41  ;;  %v3133_v22 = vpop.f32.mrb[57].mxu0  ;;  %v6058_v5 = vpop.eup %6057  ;;  %v3326_v54 = vmul.f32 %v6056_v62, %v8118_v61  ;;  %6077 = vtanh.f32 %v3121_v58  ;;  %v8955_v41 = vld [vmem:[#allocation12_spill] sm:$0xff] }
 0x255   :  { %v3134_v4 = vadd.f32 %v3133_v22, %v2071_v34  ;;  %v5308_v51 = vpop.f32.mrb[58].mxu0  ;;  %v6060_v59 = vpop.eup %6059  ;;  %v3324_v57 = vmul.f32 %v6058_v5, %v8120_v31  ;;  %v8958_v5 = vld [vmem:[#allocation17_spill] sm:$0xff] }
 0x256   :  { %v4760_v12 = vmul.f32 -1.442695, %v3142_v32  ;;  %v3145_v25 = vadd.f32 %v5308_v51, %v2082_v2  ;;  %v3136_v26 = vpop.f32.mrb[59].mxu0  ;;  %v6062_v36 = vpop.eup %6061  ;;  %v8164_v39 = vadd.f32 %v3326_v54, %v3318_v19  ;;  %v3327_v27 = vmul.f32 %v6060_v59, %v8122_v28 }
 0x257   :  { %v3137_v3 = vadd.f32 %v3136_v26, %v2074_v0  ;;  %v6064_v21 = vpop.eup %6063  ;;  %v8167_v16 = vadd.f32 %v3324_v57, %v3316_v9  ;;  %v3325_v61 = vmul.f32 %v6062_v36, %v8132_v40  ;;  %v4758_v52 = vmul.f32 -1.442695, %v3134_v4  ;;  %v670_v28 = vpop.permute.xlu1 %669 }
 0x258   :  { %6079 = vpow2.f32 %v4760_v12  ;;  %v6066_v45 = vpop.eup %6065  ;;  %v8170_v55 = vadd.f32 %v3327_v27, %v3319_v24  ;;  %v4761_v13 = vmul.f32 -1.442695, %v3145_v25  ;;  %v3322_v15 = vmul.f32 %v6064_v21, %v8953_v1 }
 0x259   :  { %v6068_v31 = vpop.eup %6067  ;;  %v8174_v35 = vadd.f32 %v3325_v61, %v3317_v43  ;;  %v4759_v40 = vmul.f32 -1.442695, %v3137_v3  ;;  %v2098_v47 = vadd.f32 %v8954_v37, %v670_v28  ;;  %v3320_v11 = vmul.f32 %v6066_v45, %v8955_v41 }
 0x25a   :  { %v6070_v10 = vpop.eup %6069  ;;  %v3323_v34 = vmul.f32 %v6068_v31, %v8956_v38  ;;  %6081 = vpow2.f32 %v4758_v52  ;;  %v2090_v24 = vadd.f32 %v8959_v7, %v8958_v5  ;;  %v8962_v5 = vld [vmem:[#allocation21_spill] sm:$0xff]  ;;  %v8963_v7 = vld [vmem:[#allocation23_spill] sm:$0xff] }
 0x25b   :  { %v5311_v58 = vpop.f32.mrb[60].mxu0  ;;  %v6072_v44 = vpop.eup %6071  ;;  %v3321_v19 = vmul.f32 %v6070_v10, %v8957_v17  ;;  %6083 = vpow2.f32 %v4761_v13 }
 0x25c   :  { %v3158_v42 = vadd.f32 %v5311_v58, %v2095_v18  ;;  %v3149_v6 = vpop.f32.mrb[61].mxu0  ;;  %v6074_v2 = vpop.eup %6073  ;;  %v3330_v8 = vmul.f32 %v6072_v44, %v8134_v30  ;;  %6085 = vpow2.f32 %v4759_v40 }
 0x25d   :  { %v3150_v62 = vadd.f32 %v3149_v6, %v2087_v29  ;;  %v5312_v60 = vpop.f32.mrb[62].mxu0  ;;  %v6076_v50 = vpop.eup %6075  ;;  %v3328_v0 = vmul.f32 %v6074_v2, %v8136_v46 }
 0x25e   :  { %v4764_v48 = vmul.f32 -1.442695, %v3158_v42  ;;  %v3161_v9 = vadd.f32 %v5312_v60, %v2098_v47  ;;  %v3152_v32 = vpop.f32.mrb[63].mxu0  ;;  %v6078_v22 = vpop.eup %6077  ;;  %v8187_v54 = vadd.f32 %v3330_v8, %v3322_v15  ;;  %v3331_v4 = vmul.f32 %v6076_v50, %v8138_v14 }
 0x25f   :  { %v8190_v30 = vadd.f32 %v3328_v0, %v3320_v11  ;;  %v3329_v51 = vmul.f32 %v6078_v22, %v8148_v53  ;;  %v3153_v46 = vadd.f32 %v3152_v32, %v2090_v24  ;;  %v4762_v57 = vmul.f32 -1.442695, %v3150_v62  ;;  %v8960_v32 = vld [vmem:[#allocation19_spill] sm:$0xff]  ;;  %v8961_v22 = vld [vmem:[#allocation20_spill] sm:$0xff]  ;;  %v8964_v24 = vld [vmem:[#allocation26_spill] sm:$0xff] }
 0x260   :  { %v8193_v59 = vadd.f32 %v3331_v4, %v3323_v34  ;;  %6087 = vpow2.f32 %v4764_v48  ;;  %v4765_v12 = vmul.f32 -1.442695, %v3161_v9  ;;  %v8965_v4 = vld [vmem:[#allocation29_spill] sm:$0xff] }
 0x261   :  { %6089 = vtanh.f32 %v8164_v39  ;;  %v8196_v43 = vadd.f32 %v3329_v51, %v3321_v19  ;;  %v4763_v14 = vmul.f32 -1.442695, %v3153_v46  ;;  %v8966_v51 = vld [vmem:[#allocation32_spill] sm:$0xff]  ;;  %v8967_v46 = vld [vmem:[#allocation35_spill] sm:$0xff] }
 0x262   :  { %v6080_v63 = vpop.eup %6079  ;;  %6091 = vtanh.f32 %v8167_v16 }
 0x263   :  { %6093 = vtanh.f32 %v8170_v55  ;;  %v3294_v25 = vadd.f32 1.0, %v6080_v63  ;;  %v8968_v63 = vld [vmem:[#allocation38_spill] sm:$0xff] }
 0x264   :  { %6095 = vtanh.f32 %v8174_v35  ;;  %v6082_v53 = vpop.eup %6081 }
 0x265   :  { %6097 = vpow2.f32 %v4762_v57  ;;  %v6084_v26 = vpop.eup %6083  ;;  %v3292_v36 = vadd.f32 1.0, %v6082_v53  ;;  %v8969_v57 = vld [vmem:[#allocation41_spill] sm:$0xff] }
 0x266   :  { %6099 = vpow2.f32 %v4765_v12  ;;  %v6086_v27 = vpop.eup %6085  ;;  %v3295_v3 = vadd.f32 1.0, %v6084_v26  ;;  %v8970_v12 = vld [vmem:[#allocation44_spill] sm:$0xff]  ;;  %v8973_v53 = vld [vmem:[#allocation53_spill] sm:$0xff] }
 0x267   :  { %6101 = vpow2.f32 %v4763_v14  ;;  %v3293_v21 = vadd.f32 1.0, %v6086_v27  ;;  %v8971_v14 = vld [vmem:[#allocation47_spill] sm:$0xff]  ;;  %v8974_v26 = vld [vmem:[#allocation56_spill] sm:$0xff]  ;;  %v675_v27 = vpop.permute.xlu0 %674 }
 0x268   :  { %6103 = vrcp.f32 %v3294_v25  ;;  %v8972_v25 = vld [vmem:[#allocation50_spill] sm:$0xff] }
 0x269   :  { %6105 = vrcp.f32 %v3292_v36  ;;  %v8975_v36 = vld [vmem:[#allocation59_spill] sm:$0xff] }
 0x26a   :  { %v6088_v61 = vpop.eup %6087  ;;  %6107 = vrcp.f32 %v3295_v3  ;;  %v680_v3 = vpop.permute.xlu1 %679 }
 0x26b   :  { %v6090_v45 = vpop.eup %6089  ;;  %6109 = vrcp.f32 %v3293_v21  ;;  %v3298_v23 = vadd.f32 1.0, %v6088_v61  ;;  %v715_v21 = vpop.permute.xlu0 %714 }
 0x26c   :  { %v6092_v52 = vpop.eup %6091  ;;  %6111 = vtanh.f32 %v8187_v54 }
 0x26d   :  { %v6094_v31 = vpop.eup %6093  ;;  %6113 = vtanh.f32 %v8190_v30 }
 0x26e   :  { %v6096_v49 = vpop.eup %6095  ;;  %6115 = vtanh.f32 %v8193_v59  ;;  %v8237_v61 = vpop.permute.xlu1 %719 }
 0x26f   :  { %v6098_v18 = vpop.eup %6097  ;;  %6117 = vtanh.f32 %v8196_v43 }
 0x270   :  { %v6100_v13 = vpop.eup %6099  ;;  %v3296_v10 = vadd.f32 1.0, %v6098_v18  ;;  %6119 = vrcp.f32 %v3298_v23 }
 0x271   :  { %v6102_v28 = vpop.eup %6101  ;;  %v3299_v56 = vadd.f32 1.0, %v6100_v13 }
 0x272   :  { %v6104_v33 = vpop.eup %6103  ;;  %6121 = vrcp.f32 %v3296_v10  ;;  %v3297_v29 = vadd.f32 1.0, %v6102_v28 }
 0x273   :  { %v6106_v1 = vpop.eup %6105  ;;  %6123 = vrcp.f32 %v3299_v56  ;;  %v3350_v58 = vmul.f32 %v6104_v33, %v6090_v45  ;;  %v685_v45 = vpop.permute.xlu0 %684 }
 0x274   :  { %v6108_v15 = vpop.eup %6107  ;;  %6125 = vrcp.f32 %v3297_v29  ;;  %v3348_v37 = vmul.f32 %v6106_v1, %v6092_v52  ;;  %v690_v52 = vpop.permute.xlu1 %689  ;;  %v8976_v1 = vld [vmem:[#allocation33_spill] sm:$0xff] }
 0x275   :  { %v6110_v40 = vpop.eup %6109  ;;  %v3351_v44 = vmul.f32 %v6108_v15, %v6094_v31  ;;  %v2111_v15 = vadd.f32 %v8976_v1, %v685_v45  ;;  %v8984_v1 = vld [vmem:[#allocation45_spill] sm:$0xff] }
 0x276   :  { %v3349_v47 = vmul.f32 %v6110_v40, %v6096_v49  ;;  %v6112_v41 = vpop.eup %6111  ;;  %v8977_v40 = vld [vmem:[#allocation34_spill] sm:$0xff] }
 0x277   :  { %v3357_v11 = vpack.c.bf16 %v3351_v44, %v3350_v58  ;;  %v6114_v38 = vpop.eup %6113  ;;  %v725_v31 = vpop.permute.xlu0 %724  ;;  %v2103_v58 = vadd.f32 %v8977_v40, %v675_v27 }
 0x278   :  { %v3356_v34 = vpack.c.bf16 %v3349_v47, %v3348_v37  ;;  %v6116_v42 = vpop.eup %6115  ;;  %v730_v23 = vpop.permute.xlu1 %729  ;;  %v8978_v37 = vld [vmem:[#allocation36_spill] sm:$0xff] }
 0x279   :  { %v6118_v6 = vpop.eup %6117  ;;  %v2114_v47 = vadd.f32 %v8978_v37, %v690_v52 }
 0x27a   :  { %5313 = vmatprep.subr.bf16.mxu0 %v3356_v34  ;;  %v6120_v2 = vpop.eup %6119 }
 0x27b   :  { %5314 = vmatpush3.bf16.msra.mxu0 %v3356_v34  ;;  %v3354_v62 = vmul.f32 %v6120_v2, %v6112_v41  ;;  %v695_v49 = vpop.permute.xlu0 %694  ;;  %v8979_v34 = vld [vmem:[#allocation37_spill] sm:$0xff] }
 0x27c   :  { %v6122_v17 = vpop.eup %6121  ;;  %5315 = vmatprep.subr.bf16.mxu0 %v3357_v11  ;;  %v700_v18 = vpop.permute.xlu1 %699 }
 0x27d   :  { %v6124_v19 = vpop.eup %6123  ;;  %v3352_v50 = vmul.f32 %v6122_v17, %v6114_v38 }
 0x27e   :  { %v6126_v8 = vpop.eup %6125  ;;  %v3355_v60 = vmul.f32 %v6124_v19, %v6116_v42  ;;  %v2106_v42 = vadd.f32 %v8979_v34, %v680_v3 }
 0x27f   :  { %5316 = vmatpush3.bf16.msra.mxu0 %v3357_v11  ;;  %v3353_v0 = vmul.f32 %v6126_v8, %v6118_v6  ;;  %v8239_v13 = vpop.permute.xlu0 %734 }
 0x280   :  { %v3359_v48 = vpack.c.bf16 %v3355_v60, %v3354_v62  ;;  %v8241_v10 = vpop.permute.xlu1 %739 }
 0x281   :  { %v3358_v9 = vpack.c.bf16 %v3353_v0, %v3352_v50 }
 0x283   :  { %5317 = vmatprep.subr.bf16.mxu0 %v3358_v9  ;;  %v705_v28 = vpop.permute.xlu0 %704 }
 0x284   :  { %5318 = vmatpush3.bf16.msra.mxu0 %v3358_v9  ;;  %v710_v56 = vpop.permute.xlu1 %709  ;;  %v8980_v9 = vld [vmem:[#allocation39_spill] sm:$0xff] }
 0x285   :  { %5319 = vmatprep.subr.bf16.mxu0 %v3359_v48 }
 0x287   :  { %v8243_v33 = vpop.permute.xlu0 %744 }
 0x288   :  { %5320 = vmatpush3.bf16.msra.mxu0 %v3359_v48  ;;  %v8245_v29 = vpop.permute.xlu1 %749 }
 0x28b   :  { %5322 = vmatmul.mubr.msk.bf16.vlgmr.msra.gmra.mrb[64].mxu0 %vm2597_vm0, %v8960_v32  ;;  %v8250_v38 = vpop.permute.xlu0 %754  ;;  %v2127_v32 = vadd.f32 %v8980_v9, %v705_v28 }
 0x28c   :  { %5325 = vmatprep.mubr.msk.bf16.mxu0 %vm2597_vm0, %v8961_v22  ;;  %v8253_v62 = vpop.permute.xlu1 %759 }
 0x28f   :  { %v8256_v22 = vpop.permute.xlu0 %794 }
 0x293   :  { %5326 = vmatmul.mubr.msk.bf16.gmra.mrb[68].mxu0 %vm2597_vm0, %v8962_v5  ;;  %v8981_v5 = vld [vmem:[#allocation40_spill] sm:$0xff] }
 0x294   :  { %5329 = vmatprep.mubr.msk.bf16.mxu0 %vm2597_vm0, %v8963_v7  ;;  %v2119_v7 = vadd.f32 %v8981_v5, %v695_v49  ;;  %v8263_v49 = vpop.permute.xlu0 %764 }
 0x298   :  { %v8272_v9 = vpop.permute.xlu0 %804 }
 0x29b   :  { %5330 = vmatmul.mubr.msk.bf16.gmra.mrb[72].mxu0 %vm2597_vm0, %v8964_v24 }
 0x29c   :  { %5333 = vmatprep.mubr.msk.bf16.mxu0 %vm2597_vm0, %v8965_v4  ;;  %v8982_v4 = vld [vmem:[#allocation42_spill] sm:$0xff] }
 0x2a3   :  { %5334 = vmatmul.mubr.msk.bf16.gmra.mrb[76].mxu0 %vm2597_vm0, %v8966_v51  ;;  %v2130_v51 = vadd.f32 %v8982_v4, %v710_v56 }
 0x2a4   :  { %5337 = vmatprep.mubr.msk.bf16.mxu0 %vm2597_vm0, %v8967_v46 }
 0x2ab   :  { %5338 = vmatmul.mubr.msk.bf16.gmra.mrb[80].mxu0 %vm2597_vm0, %v8968_v63 }
 0x2ac   :  { %5341 = vmatprep.mubr.msk.bf16.mxu0 %vm2597_vm0, %v8969_v57  ;;  %v8260_v57 = vpop.permute.xlu1 %799 }
 0x2b3   :  { %5342 = vmatmul.mubr.msk.bf16.gmra.mrb[84].mxu0 %vm2597_vm0, %v8970_v12  ;;  %v8983_v12 = vld [vmem:[#allocation43_spill] sm:$0xff] }
 0x2b4   :  { %5345 = vmatprep.mubr.msk.bf16.mxu0 %vm2597_vm0, %v8971_v14  ;;  %v2122_v14 = vadd.f32 %v8983_v12, %v700_v18  ;;  %v8985_v18 = vld [vmem:[#allocation46_spill] sm:$0xff]  ;;  %v8989_v12 = vld [vmem:[#allocation52_spill] sm:$0xff] }
 0x2bb   :  { %5346 = vmatmul.mubr.msk.bf16.gmra.mrb[88].mxu0 %vm2597_vm0, %v8972_v25 }
 0x2bc   :  { %5349 = vmatprep.mubr.msk.bf16.mxu0 %vm2597_vm0, %v8973_v53 }
 0x2c3   :  { %5350 = vmatmul.mubr.msk.bf16.gmra.mrb[92].mxu0 %vm2597_vm0, %v8974_v26 }
 0x2c4   :  { %5361 = vmatprep.mubr.msk.bf16.mxu0 %vm2597_vm0, %v8975_v36 }
 0x35e   :  { %v5323_v44 = vpop.f32.mrb[64].mxu0 }
 0x35f   :  { %v3403_v41 = vadd.f32 %v5323_v44, %v2111_v15  ;;  %v3394_v11 = vpop.f32.mrb[65].mxu0  ;;  %v2143_v15 = vadd.f32 %v8984_v1, %v725_v31  ;;  %v2135_v44 = vadd.f32 %v8985_v18, %v715_v21 }
 0x360   :  { %v3395_v6 = vadd.f32 %v3394_v11, %v2103_v58  ;;  %v5324_v2 = vpop.f32.mrb[66].mxu0  ;;  %v8266_v58 = vpop.permute.xlu1 %769  ;;  %v8986_v11 = vld [vmem:[#allocation48_spill] sm:$0xff] }
 0x361   :  { %v4784_v17 = vmul.f32 -1.442695, %v3403_v41  ;;  %v3406_v19 = vadd.f32 %v5324_v2, %v2114_v47  ;;  %v3397_v8 = vpop.f32.mrb[67].mxu0  ;;  %v2146_v34 = vadd.f32 %v8986_v11, %v730_v23 }
 0x362   :  { %v4782_v60 = vmul.f32 -1.442695, %v3395_v6  ;;  %v3398_v50 = vadd.f32 %v3397_v8, %v2106_v42 }
 0x363   :  { %6127 = vpow2.f32 %v4784_v17  ;;  %v4785_v0 = vmul.f32 -1.442695, %v3406_v19  ;;  %v8987_v17 = vld [vmem:[#allocation49_spill] sm:$0xff] }
 0x364   :  { %6129 = vpow2.f32 %v4782_v60  ;;  %v4783_v48 = vmul.f32 -1.442695, %v3398_v50  ;;  %v2138_v19 = vadd.f32 %v8987_v17, %v8237_v61  ;;  %v8992_v17 = vld [vmem:[#allocation57_spill] sm:$0xff] }
 0x365   :  { %6131 = vpow2.f32 %v4785_v0 }
 0x366   :  { %v5327_v24 = vpop.f32.mrb[68].mxu0  ;;  %6133 = vpow2.f32 %v4783_v48 }
 0x367   :  { %v3419_v46 = vadd.f32 %v5327_v24, %v2127_v32  ;;  %v3410_v63 = vpop.f32.mrb[69].mxu0 }
 0x368   :  { %v3411_v25 = vadd.f32 %v3410_v63, %v2119_v7  ;;  %v5328_v53 = vpop.f32.mrb[70].mxu0  ;;  %v8274_v7 = vpop.permute.xlu1 %809 }
 0x369   :  { %v4788_v26 = vmul.f32 -1.442695, %v3419_v46  ;;  %v3422_v36 = vadd.f32 %v5328_v53, %v2130_v51  ;;  %v3413_v27 = vpop.f32.mrb[71].mxu0  ;;  %v8988_v51 = vld [vmem:[#allocation51_spill] sm:$0xff] }
 0x36a   :  { %v4786_v3 = vmul.f32 -1.442695, %v3411_v25  ;;  %v3414_v45 = vadd.f32 %v3413_v27, %v2122_v14  ;;  %v2159_v46 = vadd.f32 %v8988_v51, %v8243_v33  ;;  %v2151_v14 = vadd.f32 %v8989_v12, %v8239_v13 }
 0x36b   :  { %6135 = vpow2.f32 %v4788_v26  ;;  %v4789_v52 = vmul.f32 -1.442695, %v3422_v36  ;;  %v8990_v36 = vld [vmem:[#allocation54_spill] sm:$0xff] }
 0x36c   :  { %6137 = vpow2.f32 %v4786_v3  ;;  %v4787_v28 = vmul.f32 -1.442695, %v3414_v45  ;;  %v2162_v27 = vadd.f32 %v8990_v36, %v8245_v29 }
 0x36d   :  { %v6128_v56 = vpop.eup %6127  ;;  %6139 = vpow2.f32 %v4789_v52 }
 0x36e   :  { %v6130_v40 = vpop.eup %6129  ;;  %v3547_v37 = vadd.f32 1.0, %v6128_v56  ;;  %v5331_v47 = vpop.f32.mrb[72].mxu0  ;;  %6141 = vpow2.f32 %v4787_v28  ;;  %v8991_v56 = vld [vmem:[#allocation55_spill] sm:$0xff] }
 0x36f   :  { %v6132_v41 = vpop.eup %6131  ;;  %v3545_v42 = vadd.f32 1.0, %v6130_v40  ;;  %v3435_v6 = vadd.f32 %v5331_v47, %v2143_v15  ;;  %v3426_v2 = vpop.f32.mrb[73].mxu0  ;;  %v2154_v33 = vadd.f32 %v8991_v56, %v8241_v10 }
 0x370   :  { %v3548_v8 = vadd.f32 1.0, %v6132_v41  ;;  %v3427_v31 = vadd.f32 %v3426_v2, %v2135_v44  ;;  %v5332_v60 = vpop.f32.mrb[74].mxu0  ;;  %v6134_v50 = vpop.eup %6133  ;;  %6143 = vrcp.f32 %v3547_v37 }
 0x371   :  { %v4792_v0 = vmul.f32 -1.442695, %v3435_v6  ;;  %v3438_v48 = vadd.f32 %v5332_v60, %v2146_v34  ;;  %v3429_v21 = vpop.f32.mrb[75].mxu0  ;;  %6145 = vrcp.f32 %v3545_v42  ;;  %v3546_v24 = vadd.f32 1.0, %v6134_v50  ;;  %v775_v28 = vpop.permute.xlu0 %774  ;;  %v8993_v60 = vld [vmem:[#allocation58_spill] sm:$0xff] }
 0x372   :  { %v4790_v32 = vmul.f32 -1.442695, %v3427_v31  ;;  %v3430_v23 = vadd.f32 %v3429_v21, %v2138_v19  ;;  %6147 = vrcp.f32 %v3548_v8  ;;  %v780_v47 = vpop.permute.xlu1 %779  ;;  %v2175_v19 = vadd.f32 %v8992_v17, %v8263_v49  ;;  %v8994_v21 = vld [vmem:[#allocation60_spill] sm:$0xff]  ;;  %v8995_v49 = vld [vmem:[#allocation61_spill] sm:$0xff] }
 0x373   :  { %v4793_v5 = vmul.f32 -1.442695, %v3438_v48  ;;  %6149 = vpow2.f32 %v4792_v0  ;;  %v2167_v50 = vadd.f32 %v8993_v60, %v8250_v38  ;;  %v2170_v51 = vadd.f32 %v8995_v49, %v8253_v62 }
 0x374   :  { %v4791_v61 = vmul.f32 -1.442695, %v3430_v23  ;;  %6151 = vpow2.f32 %v4790_v32  ;;  %v2178_v32 = vadd.f32 %v8994_v21, %v8266_v58 }
 0x375   :  { %v6136_v4 = vpop.eup %6135  ;;  %6153 = vpow2.f32 %v4793_v5  ;;  %v8292_v31 = vpop.permute.xlu0 %814 }
 0x376   :  { %v6138_v63 = vpop.eup %6137  ;;  %v3551_v25 = vadd.f32 1.0, %v6136_v4  ;;  %v5335_v53 = vpop.f32.mrb[76].mxu0  ;;  %6155 = vpow2.f32 %v4791_v61 }
 0x377   :  { %v6140_v26 = vpop.eup %6139  ;;  %v3549_v3 = vadd.f32 1.0, %v6138_v63  ;;  %v3451_v45 = vadd.f32 %v5335_v53, %v2159_v46  ;;  %v3442_v52 = vpop.f32.mrb[77].mxu0  ;;  %6157 = vrcp.f32 %v3546_v24 }
 0x378   :  { %v3552_v1 = vadd.f32 1.0, %v6140_v26  ;;  %v3443_v15 = vadd.f32 %v3442_v52, %v2151_v14  ;;  %v5336_v40 = vpop.f32.mrb[78].mxu0  ;;  %v6142_v13 = vpop.eup %6141  ;;  %6159 = vrcp.f32 %v3551_v25  ;;  %v8996_v52 = vld [vmem:[#allocation62_spill] sm:$0xff] }
 0x379   :  { %v4796_v18 = vmul.f32 -1.442695, %v3451_v45  ;;  %v3454_v44 = vadd.f32 %v5336_v40, %v2162_v27  ;;  %v3445_v37 = vpop.f32.mrb[79].mxu0  ;;  %6161 = vrcp.f32 %v3549_v3  ;;  %v3550_v10 = vadd.f32 1.0, %v6142_v13  ;;  %v8298_v4 = vpop.permute.xlu1 %819 }
 0x37a   :  { %v4794_v29 = vmul.f32 -1.442695, %v3443_v15  ;;  %v3446_v41 = vadd.f32 %v3445_v37, %v2154_v33  ;;  %v8284_v11 = vpop.eup %6143  ;;  %6163 = vrcp.f32 %v3552_v1  ;;  %v785_v62 = vpop.permute.xlu0 %784  ;;  %v8997_v15 = vld [vmem:[#allocation63_spill] sm:$0xff] }
 0x37b   :  { %v4797_v34 = vmul.f32 -1.442695, %v3454_v44  ;;  %v8286_v42 = vpop.eup %6145  ;;  %6165 = vpow2.f32 %v4796_v18  ;;  %v2191_v56 = vadd.f32 %v8996_v52, %v785_v62  ;;  %v2183_v40 = vadd.f32 %v8997_v15, %v775_v28  ;;  %v8998_v44 = vld [vmem:[#allocation64_spill] sm:$0xff] }
 0x37c   :  { %v4795_v6 = vmul.f32 -1.442695, %v3446_v41  ;;  %v8288_v2 = vpop.eup %6147  ;;  %6167 = vpow2.f32 %v4794_v29 }
 0x37d   :  { %v6150_v8 = vpop.eup %6149  ;;  %6169 = vpow2.f32 %v4797_v34  ;;  %v790_v1 = vpop.permute.xlu1 %789 }
 0x37e   :  { %v5339_v0 = vpop.f32.mrb[80].mxu0  ;;  %v6152_v48 = vpop.eup %6151  ;;  %v3595_v23 = vadd.f32 1.0, %v6150_v8  ;;  %6171 = vpow2.f32 %v4795_v6  ;;  %v2194_v37 = vadd.f32 %v8998_v44, %v790_v1  ;;  %v8999_v6 = vld [vmem:[#allocation65_spill] sm:$0xff] }
 0x37f   :  { %v3467_v5 = vadd.f32 %v5339_v0, %v2175_v19  ;;  %v3458_v24 = vpop.f32.mrb[81].mxu0  ;;  %v6154_v61 = vpop.eup %6153  ;;  %6173 = vrcp.f32 %v3550_v10  ;;  %v3593_v46 = vadd.f32 1.0, %v6152_v48  ;;  %v2186_v17 = vadd.f32 %v8999_v6, %v780_v47  ;;  %v9000_v47 = vld [vmem:[#allocation66_spill] sm:$0xff] }
 0x380   :  { %v3459_v63 = vadd.f32 %v3458_v24, %v2167_v50  ;;  %v5340_v38 = vpop.f32.mrb[82].mxu0  ;;  %v6156_v12 = vpop.eup %6155  ;;  %6175 = vrcp.f32 %v3595_v23  ;;  %v3596_v14 = vadd.f32 1.0, %v6154_v61  ;;  %v2207_v49 = vadd.f32 %v9000_v47, %v8272_v9 }
 0x381   :  { %v3470_v25 = vadd.f32 %v5340_v38, %v2178_v32  ;;  %v3461_v53 = vpop.f32.mrb[83].mxu0  ;;  %v8302_v58 = vpop.eup %6157  ;;  %6177 = vrcp.f32 %v3593_v46  ;;  %v3594_v26 = vadd.f32 1.0, %v6156_v12  ;;  %v9001_v46 = vld [vmem:[#allocation67_spill] sm:$0xff]  ;;  %v9002_v38 = vld [vmem:[#allocation68_spill] sm:$0xff] }
 0x382   :  { %v3462_v36 = vadd.f32 %v3461_v53, %v2170_v51  ;;  %v8304_v27 = vpop.eup %6159  ;;  %6179 = vrcp.f32 %v3596_v14  ;;  %v2210_v12 = vadd.f32 %v9002_v38, %v8274_v7 }
 0x383   :  { %v8306_v3 = vpop.eup %6161  ;;  %6181 = vrcp.f32 %v3594_v26  ;;  %v9003_v26 = vld [vmem:[#allocation69_spill] sm:$0xff] }
 0x384   :  { %v8308_v45 = vpop.eup %6163  ;;  %6183 = vtanh.f32 %v3467_v5 }
 0x385   :  { %v6166_v33 = vpop.eup %6165  ;;  %6185 = vtanh.f32 %v3459_v63  ;;  %v2199_v63 = vadd.f32 %v9001_v46, %v8256_v22 }
 0x386   :  { %v5343_v13 = vpop.f32.mrb[84].mxu0  ;;  %v6168_v18 = vpop.eup %6167  ;;  %v3599_v29 = vadd.f32 1.0, %v6166_v33  ;;  %6187 = vtanh.f32 %v3470_v25 }
 0x387   :  { %v3483_v41 = vadd.f32 %v5343_v13, %v2191_v56  ;;  %v3474_v34 = vpop.f32.mrb[85].mxu0  ;;  %v6170_v10 = vpop.eup %6169  ;;  %v3597_v19 = vadd.f32 1.0, %v6168_v18  ;;  %6189 = vtanh.f32 %v3462_v36  ;;  %v2202_v36 = vadd.f32 %v9003_v26, %v8260_v57 }
 0x388   :  { %v3475_v8 = vadd.f32 %v3474_v34, %v2183_v40  ;;  %v5344_v60 = vpop.f32.mrb[86].mxu0  ;;  %v6172_v50 = vpop.eup %6171  ;;  %6191 = vrcp.f32 %v3599_v29  ;;  %v3600_v0 = vadd.f32 1.0, %v6170_v10 }
 0x389   :  { %v3486_v28 = vadd.f32 %v5344_v60, %v2194_v37  ;;  %v3477_v48 = vpop.f32.mrb[87].mxu0  ;;  %v8314_v21 = vpop.eup %6173  ;;  %6193 = vrcp.f32 %v3597_v19  ;;  %v3598_v32 = vadd.f32 1.0, %v6172_v50 }
 0x38a   :  { %v3478_v23 = vadd.f32 %v3477_v48, %v2186_v17  ;;  %v6176_v5 = vpop.eup %6175  ;;  %6195 = vrcp.f32 %v3600_v0  ;;  %v825_v10 = vpop.permute.xlu0 %824  ;;  %v9004_v17 = vld [vmem:[#allocation70_spill] sm:$0xff]  ;;  %v9005_v0 = vld [vmem:[#allocation71_spill] sm:$0xff] }
 0x38b   :  { %v6178_v24 = vpop.eup %6177  ;;  %6197 = vrcp.f32 %v3598_v32  ;;  %v3675_v14 = vmul.f32 %v6176_v5, %v8164_v39  ;;  %v2223_v19 = vadd.f32 %v9004_v17, %v825_v10  ;;  %v9006_v5 = vld [vmem:[#allocation72_spill] sm:$0xff] }
 0x38c   :  { %v6180_v61 = vpop.eup %6179  ;;  %6199 = vtanh.f32 %v3483_v41  ;;  %v3673_v62 = vmul.f32 %v6178_v24, %v8167_v16 }
 0x38d   :  { %v6182_v51 = vpop.eup %6181  ;;  %6201 = vtanh.f32 %v3475_v8  ;;  %v3676_v33 = vmul.f32 %v6180_v61, %v8170_v55 }
 0x38e   :  { %v5347_v25 = vpop.f32.mrb[88].mxu0  ;;  %v6184_v53 = vpop.eup %6183  ;;  %6203 = vtanh.f32 %v3486_v28  ;;  %v3674_v15 = vmul.f32 %v6182_v51, %v8174_v35  ;;  %v2215_v28 = vadd.f32 %v9005_v0, %v8292_v31 }
 0x38f   :  { %v3499_v9 = vadd.f32 %v5347_v25, %v2207_v49  ;;  %v3490_v52 = vpop.f32.mrb[89].mxu0  ;;  %v6186_v56 = vpop.eup %6185  ;;  %v3683_v22 = vmul.f32 %v6184_v53, %v8284_v11  ;;  %6205 = vtanh.f32 %v3478_v23 }
 0x390   :  { %v3491_v7 = vadd.f32 %v3490_v52, %v2199_v63  ;;  %v5348_v1 = vpop.f32.mrb[90].mxu0  ;;  %v6188_v39 = vpop.eup %6187  ;;  %v3681_v40 = vmul.f32 %v6186_v56, %v8286_v42 }
 0x391   :  { %v4800_v13 = vmul.f32 -1.442695, %v3499_v9  ;;  %v3502_v57 = vadd.f32 %v5348_v1, %v2210_v12  ;;  %v3493_v18 = vpop.f32.mrb[91].mxu0  ;;  %v6190_v16 = vpop.eup %6189  ;;  %v8330_v44 = vadd.f32 %v3683_v22, %v3675_v14  ;;  %v3684_v37 = vmul.f32 %v6188_v39, %v8288_v2 }
 0x392   :  { %v3494_v29 = vadd.f32 %v3493_v18, %v2202_v36  ;;  %v6192_v55 = vpop.eup %6191  ;;  %v8333_v41 = vadd.f32 %v3681_v40, %v3673_v62  ;;  %v3682_v11 = vmul.f32 %v6190_v16, %v8302_v58  ;;  %v4798_v42 = vmul.f32 -1.442695, %v3491_v7  ;;  %v830_v2 = vpop.permute.xlu1 %829 }
 0x393   :  { %6207 = vpow2.f32 %v4800_v13  ;;  %v6194_v34 = vpop.eup %6193  ;;  %v8336_v35 = vadd.f32 %v3684_v37, %v3676_v33  ;;  %v4801_v60 = vmul.f32 -1.442695, %v3502_v57  ;;  %v3679_v48 = vmul.f32 %v6192_v55, %v8187_v54 }
 0x394   :  { %v6196_v6 = vpop.eup %6195  ;;  %v8339_v8 = vadd.f32 %v3682_v11, %v3674_v15  ;;  %v4799_v58 = vmul.f32 -1.442695, %v3494_v29  ;;  %v2226_v24 = vadd.f32 %v9006_v5, %v830_v2  ;;  %v3677_v61 = vmul.f32 %v6194_v34, %v8190_v30 }
 0x395   :  { %v6198_v50 = vpop.eup %6197  ;;  %v3680_v47 = vmul.f32 %v6196_v6, %v8193_v59  ;;  %6209 = vpow2.f32 %v4798_v42  ;;  %v9007_v59 = vld [vmem:[#allocation73_spill] sm:$0xff] }
 0x396   :  { %v5351_v32 = vpop.f32.mrb[92].mxu0  ;;  %v6200_v23 = vpop.eup %6199  ;;  %v3678_v63 = vmul.f32 %v6198_v50, %v8196_v43  ;;  %6211 = vpow2.f32 %v4801_v60  ;;  %v2218_v36 = vadd.f32 %v9007_v59, %v8298_v4  ;;  %v8394_v59 = vld [vmem:[%s8780_s2 + $0x20] sm:$0xff]  }
 0x397   :  { %v3515_v49 = vadd.f32 %v5351_v32, %v2223_v19  ;;  %v3506_v51 = vpop.f32.mrb[93].mxu0  ;;  %v6202_v46 = vpop.eup %6201  ;;  %v3687_v38 = vmul.f32 %v6200_v23, %v8304_v27  ;;  %6213 = vpow2.f32 %v4799_v58 }
 0x398   :  { %v3507_v31 = vadd.f32 %v3506_v51, %v2215_v28  ;;  %v5352_v12 = vpop.f32.mrb[94].mxu0  ;;  %v6204_v54 = vpop.eup %6203  ;;  %v3685_v14 = vmul.f32 %v6202_v46, %v8306_v3 }
 0x399   :  { %v4804_v25 = vmul.f32 -1.442695, %v3515_v49  ;;  %v3518_v53 = vadd.f32 %v5352_v12, %v2226_v24  ;;  %v3509_v26 = vpop.f32.mrb[95].mxu0  ;;  %v6206_v30 = vpop.eup %6205  ;;  %v8352_v62 = vadd.f32 %v3687_v38, %v3679_v48  ;;  %v3688_v43 = vmul.f32 %v6204_v54, %v8308_v45 }
 0x39a   :  { %v8355_v27 = vadd.f32 %v3685_v14, %v3677_v61  ;;  %v3686_v9 = vmul.f32 %v6206_v30, %v8314_v21  ;;  %v3510_v3 = vadd.f32 %v3509_v26, %v2218_v36  ;;  %v4802_v22 = vmul.f32 -1.442695, %v3507_v31  ;;  %v8380_v26 = vld [vmem:[%s8780_s2 + $0x10] sm:$0xff]   ;;  %v8387_v30 = vld [vmem:[%s8780_s2 + $0x18] sm:$0xff]   ;;  %v8401_v36 = vld [vmem:[%s8780_s2 + $0x28] sm:$0xff]  }
 0x39b   :  { %v8358_v52 = vadd.f32 %v3688_v43, %v3680_v47  ;;  %6215 = vpow2.f32 %v4804_v25  ;;  %v4805_v4 = vmul.f32 -1.442695, %v3518_v53  ;;  %v8373_v53 = vld [vmem:[%s8780_s2 + $0x8] sm:$0xff]   ;;  %v8408_v43 = vld [vmem:[%s8780_s2 + $0x30] sm:$0xff]  }
 0x39c   :  { %6217 = vtanh.f32 %v8330_v44  ;;  %v8361_v33 = vadd.f32 %v3686_v9, %v3678_v63  ;;  %v4803_v45 = vmul.f32 -1.442695, %v3510_v3  ;;  %v8415_v9 = vld [vmem:[%s8780_s2 + $0x38] sm:$0xff]   ;;  %v8422_v3 = vld [vmem:[%s8780_s2 + $0x40] sm:$0xff]  }
 0x39d   :  { %v6208_v56 = vpop.eup %6207  ;;  %6219 = vtanh.f32 %v8333_v41 }
 0x39e   :  { %6221 = vtanh.f32 %v8336_v35  ;;  %v3651_v7 = vadd.f32 1.0, %v6208_v56  ;;  %v8429_v56 = vld [vmem:[%s8780_s2 + $0x48] sm:$0xff]  }
 0x39f   :  { %6223 = vtanh.f32 %v8339_v8  ;;  %v6210_v21 = vpop.eup %6209 }
 0x3a0   :  { %6225 = vpow2.f32 %v4802_v22  ;;  %v6212_v1 = vpop.eup %6211  ;;  %v3649_v39 = vadd.f32 1.0, %v6210_v21  ;;  %v8436_v22 = vld [vmem:[%s8780_s2 + $0x50] sm:$0xff]  }
 0x3a1   :  { %6227 = vpow2.f32 %v4805_v4  ;;  %v6214_v15 = vpop.eup %6213  ;;  %v3652_v40 = vadd.f32 1.0, %v6212_v1  ;;  %v8443_v4 = vld [vmem:[%s8780_s2 + $0x58] sm:$0xff]   ;;  %v8464_v21 = vld [vmem:[%s8780_s2 + $0x70] sm:$0xff]  }
 0x3a2   :  { %6229 = vpow2.f32 %v4803_v45  ;;  %v3650_v13 = vadd.f32 1.0, %v6214_v15  ;;  %v8450_v45 = vld [vmem:[%s8780_s2 + $0x60] sm:$0xff]   ;;  %v8471_v1 = vld [vmem:[%s8780_s2 + $0x78] sm:$0xff]   ;;  %v835_v15 = vpop.permute.xlu0 %834 }
 0x3a3   :  { %6231 = vrcp.f32 %v3651_v7  ;;  %v8457_v7 = vld [vmem:[%s8780_s2 + $0x68] sm:$0xff]  }
 0x3a4   :  { %6233 = vrcp.f32 %v3649_v39  ;;  %v6546_v39 = vld [vmem:[%s8780_s2] sm:$0xff]  }
 0x3a5   :  { %v6216_v57 = vpop.eup %6215  ;;  %6235 = vrcp.f32 %v3652_v40  ;;  %v840_v40 = vpop.permute.xlu1 %839 }
 0x3a6   :  { %v6218_v18 = vpop.eup %6217  ;;  %6237 = vrcp.f32 %v3650_v13  ;;  %v3655_v29 = vadd.f32 1.0, %v6216_v57  ;;  %v875_v13 = vpop.permute.xlu0 %874 }
 0x3a7   :  { %v6220_v16 = vpop.eup %6219  ;;  %6239 = vtanh.f32 %v8352_v62 }
 0x3a8   :  { %v6222_v37 = vpop.eup %6221  ;;  %6241 = vtanh.f32 %v8355_v27 }
 0x3a9   :  { %v6224_v55 = vpop.eup %6223  ;;  %6243 = vtanh.f32 %v8358_v52  ;;  %v8479_v57 = vpop.permute.xlu1 %879 }
 0x3aa   :  { %v6226_v11 = vpop.eup %6225  ;;  %6245 = vtanh.f32 %v8361_v33 }
 0x3ab   :  { %v6228_v34 = vpop.eup %6227  ;;  %v3653_v10 = vadd.f32 1.0, %v6226_v11  ;;  %6247 = vrcp.f32 %v3655_v29 }
 0x3ac   :  { %v6230_v42 = vpop.eup %6229  ;;  %v3656_v6 = vadd.f32 1.0, %v6228_v34 }
 0x3ad   :  { %v6232_v17 = vpop.eup %6231  ;;  %6249 = vrcp.f32 %v3653_v10  ;;  %v3654_v19 = vadd.f32 1.0, %v6230_v42 }
 0x3ae   :  { %v6234_v60 = vpop.eup %6233  ;;  %6251 = vrcp.f32 %v3656_v6  ;;  %v3707_v0 = vmul.f32 %v6232_v17, %v6218_v18  ;;  %v845_v18 = vpop.permute.xlu0 %844 }
 0x3af   :  { %v6236_v50 = vpop.eup %6235  ;;  %6253 = vrcp.f32 %v3654_v19  ;;  %v3705_v48 = vmul.f32 %v6234_v60, %v6220_v16  ;;  %v850_v16 = vpop.permute.xlu1 %849  ;;  %v9008_v60 = vld [vmem:[#allocation74_spill] sm:$0xff] }
 0x3b0   :  { %v6238_v2 = vpop.eup %6237  ;;  %v3708_v28 = vmul.f32 %v6236_v50, %v6222_v37  ;;  %v2239_v50 = vadd.f32 %v9008_v60, %v845_v18  ;;  %v9013_v18 = vld [vmem:[#allocation79_spill] sm:$0xff]  ;;  %v9014_v60 = vld [vmem:[#allocation80_spill] sm:$0xff] }
 0x3b1   :  { %v3706_v58 = vmul.f32 %v6238_v2, %v6224_v55  ;;  %v6240_v32 = vpop.eup %6239  ;;  %v9009_v2 = vld [vmem:[#allocation75_spill] sm:$0xff] }
 0x3b2   :  { %v3714_v23 = vpack.c.bf16 %v3708_v28, %v3707_v0  ;;  %v6242_v5 = vpop.eup %6241  ;;  %v885_v37 = vpop.permute.xlu0 %884  ;;  %v2231_v0 = vadd.f32 %v9009_v2, %v835_v15 }
 0x3b3   :  { %v3713_v24 = vpack.c.bf16 %v3706_v58, %v3705_v48  ;;  %v6244_v61 = vpop.eup %6243  ;;  %v890_v29 = vpop.permute.xlu1 %889  ;;  %v9010_v48 = vld [vmem:[#allocation76_spill] sm:$0xff] }
 0x3b4   :  { %v6246_v47 = vpop.eup %6245  ;;  %v2242_v58 = vadd.f32 %v9010_v48, %v850_v16  ;;  %v9015_v48 = vld [vmem:[#allocation81_spill] sm:$0xff] }
 0x3b5   :  { %5353 = vmatprep.subr.bf16.mxu0 %v3713_v24  ;;  %v6248_v49 = vpop.eup %6247 }
 0x3b6   :  { %5354 = vmatpush3.bf16.msra.mxu0 %v3713_v24  ;;  %v3711_v38 = vmul.f32 %v6248_v49, %v6240_v32  ;;  %v855_v55 = vpop.permute.xlu0 %854  ;;  %v9011_v24 = vld [vmem:[#allocation77_spill] sm:$0xff] }
 0x3b7   :  { %v6250_v51 = vpop.eup %6249  ;;  %5355 = vmatprep.subr.bf16.mxu0 %v3714_v23  ;;  %v860_v11 = vpop.permute.xlu1 %859 }
 0x3b8   :  { %v6252_v46 = vpop.eup %6251  ;;  %v3709_v12 = vmul.f32 %v6250_v51, %v6242_v5 }
 0x3b9   :  { %v6254_v63 = vpop.eup %6253  ;;  %v3712_v31 = vmul.f32 %v6252_v46, %v6244_v61  ;;  %v2234_v61 = vadd.f32 %v9011_v24, %v840_v40  ;;  %v2247_v40 = vadd.f32 %v9013_v18, %v855_v55 }
 0x3ba   :  { %5356 = vmatpush3.bf16.msra.mxu0 %v3714_v23  ;;  %v3710_v54 = vmul.f32 %v6254_v63, %v6246_v47  ;;  %v8481_v34 = vpop.permute.xlu0 %894 }
 0x3bb   :  { %v3716_v14 = vpack.c.bf16 %v3712_v31, %v3711_v38  ;;  %v8483_v10 = vpop.permute.xlu1 %899 }
 0x3bc   :  { %v3715_v25 = vpack.c.bf16 %v3710_v54, %v3709_v12 }
 0x3be   :  { %5357 = vmatprep.subr.bf16.mxu0 %v3715_v25  ;;  %v865_v42 = vpop.permute.xlu0 %864 }
 0x3bf   :  { %5358 = vmatpush3.bf16.msra.mxu0 %v3715_v25  ;;  %v870_v6 = vpop.permute.xlu1 %869  ;;  %v9012_v25 = vld [vmem:[#allocation78_spill] sm:$0xff] }
 0x3c0   :  { %5359 = vmatprep.subr.bf16.mxu0 %v3716_v14 }
 0x3c2   :  { %v8485_v17 = vpop.permute.xlu0 %904 }
 0x3c3   :  { %5360 = vmatpush3.bf16.msra.mxu0 %v3716_v14  ;;  %v8487_v19 = vpop.permute.xlu1 %909 }
 0x3c6   :  { %5362 = vmatmul.mubr.msk.bf16.vlgmr.msra.gmra.mrb[96].mxu0 %vm2597_vm0, %v8373_v53  ;;  %v8492_v5 = vpop.permute.xlu0 %914 }
 0x3c7   :  { %5365 = vmatprep.mubr.msk.bf16.mxu0 %vm2597_vm0, %v8380_v26  ;;  %v8495_v38 = vpop.permute.xlu1 %919 }
 0x3ca   :  { %v8498_v15 = vpop.permute.xlu0 %954 }
 0x3ce   :  { %5366 = vmatmul.mubr.msk.bf16.gmra.mrb[100].mxu0 %vm2597_vm0, %v8387_v30  ;;  %v8505_v55 = vpop.permute.xlu0 %924 }
 0x3cf   :  { %5369 = vmatprep.mubr.msk.bf16.mxu0 %vm2597_vm0, %v8394_v59 }
 0x3d6   :  { %5370 = vmatmul.mubr.msk.bf16.gmra.mrb[104].mxu0 %vm2597_vm0, %v8401_v36 }
 0x3d7   :  { %5373 = vmatprep.mubr.msk.bf16.mxu0 %vm2597_vm0, %v8408_v43 }
 0x3de   :  { %5374 = vmatmul.mubr.msk.bf16.gmra.mrb[108].mxu0 %vm2597_vm0, %v8415_v9 }
 0x3df   :  { %5377 = vmatprep.mubr.msk.bf16.mxu0 %vm2597_vm0, %v8422_v3 }
 0x3e6   :  { %5378 = vmatmul.mubr.msk.bf16.gmra.mrb[112].mxu0 %vm2597_vm0, %v8429_v56 }
 0x3e7   :  { %5381 = vmatprep.mubr.msk.bf16.mxu0 %vm2597_vm0, %v8436_v22 }
 0x3ee   :  { %5382 = vmatmul.mubr.msk.bf16.gmra.mrb[116].mxu0 %vm2597_vm0, %v8443_v4 }
 0x3ef   :  { %5385 = vmatprep.mubr.msk.bf16.mxu0 %vm2597_vm0, %v8450_v45 }
 0x3f6   :  { %5386 = vmatmul.mubr.msk.bf16.gmra.mrb[120].mxu0 %vm2597_vm0, %v8457_v7 }
 0x3f7   :  { %5389 = vmatprep.mubr.msk.bf16.mxu0 %vm2597_vm0, %v8464_v21 }
 0x3fe   :  { %5390 = vmatmul.mubr.msk.bf16.gmra.mrb[124].mxu0 %vm2597_vm0, %v8471_v1 }
 0x3ff   :  { %5401 = vmatprep.mubr.msk.bf16.mxu0 %vm2597_vm0, %v6546_v39  ;;  %v2255_v39 = vadd.f32 %v9012_v25, %v865_v42 }
 0x499   :  { %v5363_v28 = vpop.f32.mrb[96].mxu0 }
 0x49a   :  { %v3760_v32 = vadd.f32 %v5363_v28, %v2239_v50  ;;  %v3751_v23 = vpop.f32.mrb[97].mxu0  ;;  %v2258_v50 = vadd.f32 %v9014_v60, %v870_v6  ;;  %v8502_v28 = vpop.permute.xlu1 %959 }
 0x49b   :  { %v3752_v47 = vadd.f32 %v3751_v23, %v2231_v0  ;;  %v5364_v49 = vpop.f32.mrb[98].mxu0 }
 0x49c   :  { %v4824_v51 = vmul.f32 -1.442695, %v3760_v32  ;;  %v3763_v46 = vadd.f32 %v5364_v49, %v2242_v58  ;;  %v3754_v63 = vpop.f32.mrb[99].mxu0  ;;  %v2250_v58 = vadd.f32 %v9015_v48, %v860_v11  ;;  %v9017_v11 = vld [vmem:[#allocation83_spill] sm:$0xff] }
 0x49d   :  { %v4822_v31 = vmul.f32 -1.442695, %v3752_v47  ;;  %v3755_v12 = vadd.f32 %v3754_v63, %v2234_v61  ;;  %v9016_v63 = vld [vmem:[#allocation82_spill] sm:$0xff] }
 0x49e   :  { %6255 = vpow2.f32 %v4824_v51  ;;  %v4825_v54 = vmul.f32 -1.442695, %v3763_v46 }
 0x49f   :  { %6257 = vpow2.f32 %v4822_v31  ;;  %v4823_v14 = vmul.f32 -1.442695, %v3755_v12  ;;  %v2271_v31 = vadd.f32 %v9016_v63, %v885_v37  ;;  %v9020_v63 = vld [vmem:[#allocation86_spill] sm:$0xff] }
 0x4a0   :  { %6259 = vpow2.f32 %v4825_v54  ;;  %v8508_v54 = vpop.permute.xlu1 %929 }
 0x4a1   :  { %v5367_v16 = vpop.f32.mrb[100].mxu0  ;;  %6261 = vpow2.f32 %v4823_v14  ;;  %v2263_v14 = vadd.f32 %v9017_v11, %v875_v13  ;;  %v9021_v11 = vld [vmem:[#allocation87_spill] sm:$0xff] }
 0x4a2   :  { %v3776_v2 = vadd.f32 %v5367_v16, %v2255_v39  ;;  %v3767_v0 = vpop.f32.mrb[101].mxu0 }
 0x4a3   :  { %v3768_v32 = vadd.f32 %v3767_v0, %v2247_v40  ;;  %v5368_v23 = vpop.f32.mrb[102].mxu0  ;;  %v9018_v40 = vld [vmem:[#allocation84_spill] sm:$0xff]  ;;  %v9019_v0 = vld [vmem:[#allocation85_spill] sm:$0xff] }
 0x4a4   :  { %v4828_v24 = vmul.f32 -1.442695, %v3776_v2  ;;  %v3779_v61 = vadd.f32 %v5368_v23, %v2258_v50  ;;  %v3770_v42 = vpop.f32.mrb[103].mxu0  ;;  %v2274_v16 = vadd.f32 %v9018_v40, %v890_v29  ;;  %v2266_v48 = vadd.f32 %v9019_v0, %v8479_v57  ;;  %v9022_v40 = vld [vmem:[#allocation88_spill] sm:$0xff] }
 0x4a5   :  { %v4826_v47 = vmul.f32 -1.442695, %v3768_v32  ;;  %v3771_v49 = vadd.f32 %v3770_v42, %v2250_v58  ;;  %v8514_v42 = vpop.permute.xlu0 %964 }
 0x4a6   :  { %6263 = vpow2.f32 %v4828_v24  ;;  %v4829_v51 = vmul.f32 -1.442695, %v3779_v61 }
 0x4a7   :  { %6265 = vpow2.f32 %v4826_v47  ;;  %v4827_v6 = vmul.f32 -1.442695, %v3771_v49 }
 0x4a8   :  { %v6256_v46 = vpop.eup %6255  ;;  %6267 = vpow2.f32 %v4829_v51  ;;  %v8516_v51 = vpop.permute.xlu1 %969 }
 0x4a9   :  { %v6258_v12 = vpop.eup %6257  ;;  %v3904_v25 = vadd.f32 1.0, %v6256_v46  ;;  %v5371_v39 = vpop.f32.mrb[104].mxu0  ;;  %6269 = vpow2.f32 %v4827_v6 }
 0x4aa   :  { %v6260_v18 = vpop.eup %6259  ;;  %v3902_v60 = vadd.f32 1.0, %v6258_v12  ;;  %v3792_v50 = vadd.f32 %v5371_v39, %v2271_v31  ;;  %v3783_v2 = vpop.f32.mrb[105].mxu0  ;;  %v2287_v31 = vadd.f32 %v9020_v63, %v8485_v17  ;;  %v9024_v63 = vld [vmem:[#allocation90_spill] sm:$0xff] }
 0x4ab   :  { %v3905_v58 = vadd.f32 1.0, %v6260_v18  ;;  %v3784_v37 = vadd.f32 %v3783_v2, %v2263_v14  ;;  %v5372_v32 = vpop.f32.mrb[106].mxu0  ;;  %v6262_v23 = vpop.eup %6261  ;;  %6271 = vrcp.f32 %v3904_v25  ;;  %v2279_v14 = vadd.f32 %v9021_v11, %v8481_v34 }
 0x4ac   :  { %v4832_v24 = vmul.f32 -1.442695, %v3792_v50  ;;  %v3795_v61 = vadd.f32 %v5372_v32, %v2274_v16  ;;  %v3786_v13 = vpop.f32.mrb[107].mxu0  ;;  %6273 = vrcp.f32 %v3902_v60  ;;  %v3903_v6 = vadd.f32 1.0, %v6262_v23  ;;  %v935_v0 = vpop.permute.xlu0 %934 }
 0x4ad   :  { %v4830_v47 = vmul.f32 -1.442695, %v3784_v37  ;;  %v3787_v29 = vadd.f32 %v3786_v13, %v2266_v48  ;;  %6275 = vrcp.f32 %v3905_v58  ;;  %v2290_v16 = vadd.f32 %v9022_v40, %v8487_v19  ;;  %v9023_v48 = vld [vmem:[#allocation89_spill] sm:$0xff]  ;;  %v940_v13 = vpop.permute.xlu1 %939  ;;  %v9026_v40 = vld [vmem:[#allocation92_spill] sm:$0xff] }
 0x4ae   :  { %v4833_v49 = vmul.f32 -1.442695, %v3795_v61  ;;  %6277 = vpow2.f32 %v4832_v24  ;;  %v2282_v17 = vadd.f32 %v9023_v48, %v8483_v10 }
 0x4af   :  { %v4831_v57 = vmul.f32 -1.442695, %v3787_v29  ;;  %6279 = vpow2.f32 %v4830_v47 }
 0x4b0   :  { %v6264_v46 = vpop.eup %6263  ;;  %6281 = vpow2.f32 %v4833_v49  ;;  %v8534_v11 = vpop.permute.xlu0 %974 }
 0x4b1   :  { %v6266_v12 = vpop.eup %6265  ;;  %v3908_v25 = vadd.f32 1.0, %v6264_v46  ;;  %v5375_v39 = vpop.f32.mrb[108].mxu0  ;;  %6283 = vpow2.f32 %v4831_v57 }
 0x4b2   :  { %v6268_v18 = vpop.eup %6267  ;;  %v3906_v60 = vadd.f32 1.0, %v6266_v12  ;;  %v3808_v50 = vadd.f32 %v5375_v39, %v2287_v31  ;;  %v3799_v2 = vpop.f32.mrb[109].mxu0  ;;  %6285 = vrcp.f32 %v3903_v6  ;;  %v2303_v31 = vadd.f32 %v9024_v63, %v8505_v55  ;;  %v9027_v55 = vld [vmem:[#allocation93_spill] sm:$0xff]  ;;  %v9028_v63 = vld [vmem:[#allocation94_spill] sm:$0xff] }
 0x4b3   :  { %v3909_v58 = vadd.f32 1.0, %v6268_v18  ;;  %v3800_v37 = vadd.f32 %v3799_v2, %v2279_v14  ;;  %v5376_v32 = vpop.f32.mrb[110].mxu0  ;;  %v6270_v34 = vpop.eup %6269  ;;  %6287 = vrcp.f32 %v3908_v25  ;;  %v9025_v14 = vld [vmem:[#allocation91_spill] sm:$0xff] }
 0x4b4   :  { %v4836_v23 = vmul.f32 -1.442695, %v3808_v50  ;;  %v3811_v24 = vadd.f32 %v5376_v32, %v2290_v16  ;;  %v3802_v61 = vpop.f32.mrb[111].mxu0  ;;  %6289 = vrcp.f32 %v3906_v60  ;;  %v3907_v10 = vadd.f32 1.0, %v6270_v34 }
 0x4b5   :  { %v4834_v19 = vmul.f32 -1.442695, %v3800_v37  ;;  %v3803_v47 = vadd.f32 %v3802_v61, %v2282_v17  ;;  %v8526_v29 = vpop.eup %6271  ;;  %6291 = vrcp.f32 %v3909_v58  ;;  %v2295_v25 = vadd.f32 %v9025_v14, %v8492_v5  ;;  %v8540_v17 = vpop.permute.xlu1 %979 }
 0x4b6   :  { %v4837_v49 = vmul.f32 -1.442695, %v3811_v24  ;;  %v8528_v57 = vpop.eup %6273  ;;  %6293 = vpow2.f32 %v4836_v23  ;;  %v2306_v16 = vadd.f32 %v9026_v40, %v8508_v54  ;;  %v2298_v58 = vadd.f32 %v9027_v55, %v8495_v38  ;;  %v945_v38 = vpop.permute.xlu0 %944 }
 0x4b7   :  { %v4835_v6 = vmul.f32 -1.442695, %v3803_v47  ;;  %v8530_v46 = vpop.eup %6275  ;;  %6295 = vpow2.f32 %v4834_v19 }
 0x4b8   :  { %v6278_v12 = vpop.eup %6277  ;;  %6297 = vpow2.f32 %v4837_v49 }
 0x4b9   :  { %v5379_v39 = vpop.f32.mrb[112].mxu0  ;;  %v6280_v18 = vpop.eup %6279  ;;  %v3952_v60 = vadd.f32 1.0, %v6278_v12  ;;  %6299 = vpow2.f32 %v4835_v6 }
 0x4ba   :  { %v3824_v50 = vadd.f32 %v5379_v39, %v2303_v31  ;;  %v3815_v2 = vpop.f32.mrb[113].mxu0  ;;  %v6282_v48 = vpop.eup %6281  ;;  %6301 = vrcp.f32 %v3907_v10  ;;  %v3950_v37 = vadd.f32 1.0, %v6280_v18  ;;  %v2319_v31 = vadd.f32 %v9028_v63, %v945_v38 }
 0x4bb   :  { %v3816_v32 = vadd.f32 %v3815_v2, %v2295_v25  ;;  %v5380_v5 = vpop.f32.mrb[114].mxu0  ;;  %v6284_v34 = vpop.eup %6283  ;;  %6303 = vrcp.f32 %v3952_v60  ;;  %v3953_v23 = vadd.f32 1.0, %v6282_v48  ;;  %v9029_v25 = vld [vmem:[#allocation95_spill] sm:$0xff] }
 0x4bc   :  { %v3827_v24 = vadd.f32 %v5380_v5, %v2306_v16  ;;  %v3818_v61 = vpop.f32.mrb[115].mxu0  ;;  %v8544_v54 = vpop.eup %6285  ;;  %6305 = vrcp.f32 %v3950_v37  ;;  %v3951_v19 = vadd.f32 1.0, %v6284_v34  ;;  %v2311_v39 = vadd.f32 %v9029_v25, %v935_v0  ;;  %v9030_v16 = vld [vmem:[#allocation96_spill] sm:$0xff]  ;;  %v9031_v37 = vld [vmem:[#allocation97_spill] sm:$0xff] }
 0x4bd   :  { %v3819_v47 = vadd.f32 %v3818_v61, %v2298_v58  ;;  %v8546_v49 = vpop.eup %6287  ;;  %6307 = vrcp.f32 %v3953_v23  ;;  %v950_v14 = vpop.permute.xlu1 %949  ;;  %v2314_v5 = vadd.f32 %v9031_v37, %v940_v13  ;;  %v9032_v13 = vld [vmem:[#allocation98_spill] sm:$0xff] }
 0x4be   :  { %v8548_v6 = vpop.eup %6289  ;;  %6309 = vrcp.f32 %v3951_v19  ;;  %v2322_v60 = vadd.f32 %v9030_v16, %v950_v14 }
 0x4bf   :  { %v8550_v10 = vpop.eup %6291  ;;  %6311 = vtanh.f32 %v3824_v50 }
 0x4c0   :  { %v6294_v12 = vpop.eup %6293  ;;  %6313 = vtanh.f32 %v3816_v32 }
 0x4c1   :  { %v5383_v18 = vpop.f32.mrb[116].mxu0  ;;  %v6296_v40 = vpop.eup %6295  ;;  %v3956_v2 = vadd.f32 1.0, %v6294_v12  ;;  %6315 = vtanh.f32 %v3827_v24 }
 0x4c2   :  { %v3840_v48 = vadd.f32 %v5383_v18, %v2319_v31  ;;  %v3831_v55 = vpop.f32.mrb[117].mxu0  ;;  %v6298_v58 = vpop.eup %6297  ;;  %v3954_v34 = vadd.f32 1.0, %v6296_v40  ;;  %6317 = vtanh.f32 %v3819_v47  ;;  %v2335_v47 = vadd.f32 %v9032_v13, %v8514_v42  ;;  %v9034_v40 = vld [vmem:[#allocation100_spill] sm:$0xff] }
 0x4c3   :  { %v3832_v23 = vadd.f32 %v3831_v55, %v2311_v39  ;;  %v5384_v50 = vpop.f32.mrb[118].mxu0  ;;  %v6300_v61 = vpop.eup %6299  ;;  %6319 = vrcp.f32 %v3956_v2  ;;  %v3957_v19 = vadd.f32 1.0, %v6298_v58  ;;  %v9033_v39 = vld [vmem:[#allocation99_spill] sm:$0xff]  ;;  %v2338_v16 = vadd.f32 %v9034_v40, %v8516_v51  ;;  %v9035_v58 = vld [vmem:[#allocation101_spill] sm:$0xff] }
 0x4c4   :  { %v3843_v0 = vadd.f32 %v5384_v50, %v2322_v60  ;;  %v3834_v32 = vpop.f32.mrb[119].mxu0  ;;  %v8556_v38 = vpop.eup %6301  ;;  %6321 = vrcp.f32 %v3954_v34  ;;  %v3955_v63 = vadd.f32 1.0, %v6300_v61  ;;  %v2327_v18 = vadd.f32 %v9033_v39, %v8498_v15 }
 0x4c5   :  { %v3835_v12 = vadd.f32 %v3834_v32, %v2314_v5  ;;  %v6304_v24 = vpop.eup %6303  ;;  %6323 = vrcp.f32 %v3957_v19  ;;  %v2330_v37 = vadd.f32 %v9035_v58, %v8502_v28  ;;  %v985_v13 = vpop.permute.xlu0 %984 }
 0x4c6   :  { %v6306_v31 = vpop.eup %6305  ;;  %6325 = vrcp.f32 %v3955_v63  ;;  %v4032_v60 = vmul.f32 %v6304_v24, %v8330_v44 }
 0x4c7   :  { %v6308_v14 = vpop.eup %6307  ;;  %6327 = vtanh.f32 %v3840_v48  ;;  %v4030_v5 = vmul.f32 %v6306_v31, %v8333_v41 }
 0x4c8   :  { %v6310_v25 = vpop.eup %6309  ;;  %6329 = vtanh.f32 %v3832_v23  ;;  %v4033_v50 = vmul.f32 %v6308_v14, %v8336_v35 }
 0x4c9   :  { %v5387_v2 = vpop.f32.mrb[120].mxu0  ;;  %v6312_v55 = vpop.eup %6311  ;;  %6331 = vtanh.f32 %v3843_v0  ;;  %v4031_v23 = vmul.f32 %v6310_v25, %v8339_v8  ;;  %v9036_v25 = vld [vmem:[#allocation102_spill] sm:$0xff] }
 0x4ca   :  { %v3856_v42 = vadd.f32 %v5387_v2, %v2335_v47  ;;  %v3847_v48 = vpop.f32.mrb[121].mxu0  ;;  %v6314_v34 = vpop.eup %6313  ;;  %v4040_v15 = vmul.f32 %v6312_v55, %v8526_v29  ;;  %6333 = vtanh.f32 %v3835_v12  ;;  %v2351_v39 = vadd.f32 %v9036_v25, %v985_v13 }
 0x4cb   :  { %v3848_v51 = vadd.f32 %v3847_v48, %v2327_v18  ;;  %v5388_v61 = vpop.f32.mrb[122].mxu0  ;;  %v6316_v44 = vpop.eup %6315  ;;  %v4038_v19 = vmul.f32 %v6314_v34, %v8528_v57 }
 0x4cc   :  { %v4840_v32 = vmul.f32 -1.442695, %v3856_v42  ;;  %v3859_v28 = vadd.f32 %v5388_v61, %v2338_v16  ;;  %v3850_v63 = vpop.f32.mrb[123].mxu0  ;;  %v6318_v41 = vpop.eup %6317  ;;  %v8572_v0 = vadd.f32 %v4040_v15, %v4032_v60  ;;  %v4041_v24 = vmul.f32 %v6316_v44, %v8530_v46  ;;  %v9037_v60 = vld [vmem:[#allocation103_spill] sm:$0xff] }
 0x4cd   :  { %v3851_v31 = vadd.f32 %v3850_v63, %v2330_v37  ;;  %v6320_v35 = vpop.eup %6319  ;;  %v8575_v14 = vadd.f32 %v4038_v19, %v4030_v5  ;;  %v4039_v29 = vmul.f32 %v6318_v41, %v8544_v54  ;;  %v4838_v57 = vmul.f32 -1.442695, %v3848_v51  ;;  %v990_v46 = vpop.permute.xlu1 %989  ;;  %v9038_v5 = vld [vmem:[#allocation104_spill] sm:$0xff] }
 0x4ce   :  { %6335 = vpow2.f32 %v4840_v32  ;;  %v6322_v12 = vpop.eup %6321  ;;  %v8578_v8 = vadd.f32 %v4041_v24, %v4033_v50  ;;  %v4841_v40 = vmul.f32 -1.442695, %v3859_v28  ;;  %v2343_v2 = vadd.f32 %v9037_v60, %v8534_v11 }
 0x4cf   :  { %v6324_v47 = vpop.eup %6323  ;;  %v8581_v18 = vadd.f32 %v4039_v29, %v4031_v23  ;;  %v4036_v55 = vmul.f32 %v6320_v35, %v8352_v62  ;;  %v4839_v54 = vmul.f32 -1.442695, %v3851_v31  ;;  %v2354_v42 = vadd.f32 %v9038_v5, %v990_v46 }
 0x4d0   :  { %v6326_v16 = vpop.eup %6325  ;;  %v4034_v48 = vmul.f32 %v6322_v12, %v8355_v27  ;;  %v4037_v34 = vmul.f32 %v6324_v47, %v8358_v52  ;;  %6337 = vpow2.f32 %v4838_v57  ;;  %v9039_v52 = vld [vmem:[#allocation105_spill] sm:$0xff] }
 0x4d1   :  { %v5391_v58 = vpop.f32.mrb[124].mxu0  ;;  %v6328_v37 = vpop.eup %6327  ;;  %v4035_v61 = vmul.f32 %v6326_v16, %v8361_v33  ;;  %6339 = vpow2.f32 %v4841_v40  ;;  %v2346_v41 = vadd.f32 %v9039_v52, %v8540_v17 }
 0x4d2   :  { %v3872_v50 = vadd.f32 %v5391_v58, %v2351_v39  ;;  %v3863_v15 = vpop.f32.mrb[125].mxu0  ;;  %v6330_v51 = vpop.eup %6329  ;;  %v4044_v44 = vmul.f32 %v6328_v37, %v8546_v49  ;;  %6341 = vpow2.f32 %v4839_v54 }
 0x4d3   :  { %v3864_v11 = vadd.f32 %v3863_v15, %v2343_v2  ;;  %v5392_v23 = vpop.f32.mrb[126].mxu0  ;;  %v6332_v62 = vpop.eup %6331  ;;  %v4042_v19 = vmul.f32 %v6330_v51, %v8548_v6 }
 0x4d4   :  { %v4844_v32 = vmul.f32 -1.442695, %v3872_v50  ;;  %v3875_v28 = vadd.f32 %v5392_v23, %v2354_v42  ;;  %v3866_v63 = vpop.f32.mrb[127].mxu0  ;;  %v6334_v27 = vpop.eup %6333  ;;  %v8594_v24 = vadd.f32 %v4044_v44, %v4036_v55  ;;  %v4045_v33 = vmul.f32 %v6332_v62, %v8550_v10 }
 0x4d5   :  { %v8597_v49 = vadd.f32 %v4042_v19, %v4034_v48  ;;  %v4043_v31 = vmul.f32 %v6334_v27, %v8556_v38  ;;  %v3867_v6 = vadd.f32 %v3866_v63, %v2346_v41  ;;  %v4842_v13 = vmul.f32 -1.442695, %v3864_v11 }
 0x4d6   :  { %v8600_v35 = vadd.f32 %v4045_v33, %v4037_v34  ;;  %6343 = vpow2.f32 %v4844_v32  ;;  %v4845_v17 = vmul.f32 -1.442695, %v3875_v28 }
 0x4d7   :  { %6345 = vtanh.f32 %v8572_v0  ;;  %v8603_v12 = vadd.f32 %v4043_v31, %v4035_v61  ;;  %v4843_v10 = vmul.f32 -1.442695, %v3867_v6 }
 0x4d8   :  { %v6336_v29 = vpop.eup %6335  ;;  %6347 = vtanh.f32 %v8575_v14 }
 0x4d9   :  { %6349 = vtanh.f32 %v8578_v8  ;;  %v4008_v57 = vadd.f32 1.0, %v6336_v29 }
 0x4da   :  { %6351 = vtanh.f32 %v8581_v18  ;;  %v6338_v38 = vpop.eup %6337 }
 0x4db   :  { %6353 = vpow2.f32 %v4842_v13  ;;  %v6340_v47 = vpop.eup %6339  ;;  %v4006_v25 = vadd.f32 1.0, %v6338_v38 }
 0x4dc   :  { %6355 = vpow2.f32 %v4845_v17  ;;  %v6342_v39 = vpop.eup %6341  ;;  %v4009_v40 = vadd.f32 1.0, %v6340_v47 }
 0x4dd   :  { %6357 = vpow2.f32 %v4843_v10  ;;  %v4007_v16 = vadd.f32 1.0, %v6342_v39 }
 0x4de   :  { %6359 = vrcp.f32 %v4008_v57 }
 0x4df   :  { %6361 = vrcp.f32 %v4006_v25 }
 0x4e0   :  { %v6344_v46 = vpop.eup %6343  ;;  %6363 = vrcp.f32 %v4009_v40  ;;  %v9040_v40 = vld [vmem:[#allocation106_spill] sm:$0xff] }
 0x4e1   :  { %v6346_v60 = vpop.eup %6345  ;;  %6365 = vrcp.f32 %v4007_v16  ;;  %v4012_v54 = vadd.f32 1.0, %v6344_v46  ;;  %v9041_v46 = vld [vmem:[#allocation107_spill] sm:$0xff] }
 0x4e2   :  { %v6348_v2 = vpop.eup %6347  ;;  %6367 = vtanh.f32 %v8594_v24 }
 0x4e3   :  { %v6350_v55 = vpop.eup %6349  ;;  %6369 = vtanh.f32 %v8597_v49 }
 0x4e4   :  { %v6352_v58 = vpop.eup %6351  ;;  %6371 = vtanh.f32 %v8600_v35 }
 0x4e5   :  { %v6354_v37 = vpop.eup %6353  ;;  %6373 = vtanh.f32 %v8603_v12 }
 0x4e6   :  { %v6356_v5 = vpop.eup %6355  ;;  %v4010_v42 = vadd.f32 1.0, %v6354_v37  ;;  %6375 = vrcp.f32 %v4012_v54 }
 0x4e7   :  { %v6358_v48 = vpop.eup %6357  ;;  %v4013_v34 = vadd.f32 1.0, %v6356_v5 }
 0x4e8   :  { %v6360_v50 = vpop.eup %6359  ;;  %6377 = vrcp.f32 %v4010_v42  ;;  %v4011_v15 = vadd.f32 1.0, %v6358_v48  ;;  %v9043_v42 = vld [vmem:[#allocation109_spill] sm:$0xff] }
 0x4e9   :  { %v6362_v51 = vpop.eup %6361  ;;  %6379 = vrcp.f32 %v4013_v34  ;;  %v4064_v11 = vmul.f32 %v6360_v50, %v6346_v60 }
 0x4ea   :  { %v6364_v61 = vpop.eup %6363  ;;  %6381 = vrcp.f32 %v4011_v15  ;;  %v4062_v62 = vmul.f32 %v6362_v51, %v6348_v2 }
 0x4eb   :  { %v6366_v44 = vpop.eup %6365  ;;  %v4065_v23 = vmul.f32 %v6364_v61, %v6350_v55  ;;  %v9042_v55 = vld [vmem:[#allocation108_spill] sm:$0xff] }
 0x4ec   :  { %v4063_v19 = vmul.f32 %v6366_v44, %v6352_v58  ;;  %v6368_v32 = vpop.eup %6367 }
 0x4ed   :  { %v4071_v28 = vpack.c.bf16 %v4065_v23, %v4064_v11  ;;  %v6370_v63 = vpop.eup %6369 }
 0x4ee   :  { %v4070_v27 = vpack.c.bf16 %v4063_v19, %v4062_v62  ;;  %v6372_v52 = vpop.eup %6371 }
 0x4ef   :  { %v6374_v41 = vpop.eup %6373 }
 0x4f0   :  { %5393 = vmatprep.subr.bf16.mxu0 %v4070_v27  ;;  %v6376_v33 = vpop.eup %6375 }
 0x4f1   :  { %5394 = vmatpush3.bf16.msra.mxu0 %v4070_v27  ;;  %v4068_v13 = vmul.f32 %v6376_v33, %v6368_v32  ;;  %v9044_v32 = vld [vmem:[#allocation110_spill] sm:$0xff]  ;;  %v9045_v27 = vld [vmem:[#allocation111_spill] sm:$0xff]  ;;  %v9046_v33 = vld [vmem:[#allocation112_spill] sm:$0xff] }
 0x4f2   :  { %v6378_v31 = vpop.eup %6377  ;;  %5395 = vmatprep.subr.bf16.mxu0 %v4071_v28 }
 0x4f3   :  { %v6380_v6 = vpop.eup %6379  ;;  %v4066_v10 = vmul.f32 %v6378_v31, %v6370_v63 }
 0x4f4   :  { %v6382_v29 = vpop.eup %6381  ;;  %v4069_v17 = vmul.f32 %v6380_v6, %v6372_v52 }
 0x4f5   :  { %5396 = vmatpush3.bf16.msra.mxu0 %v4071_v28  ;;  %v4067_v57 = vmul.f32 %v6382_v29, %v6374_v41 }
 0x4f6   :  { %v4073_v38 = vpack.c.bf16 %v4069_v17, %v4068_v13  ;;  %v9047_v17 = vld [vmem:[#allocation113_spill] sm:$0xff] }
 0x4f7   :  { %v4072_v47 = vpack.c.bf16 %v4067_v57, %v4066_v10 }
 0x4f9   :  { %5397 = vmatprep.subr.bf16.mxu0 %v4072_v47 }
 0x4fa   :  { %5398 = vmatpush3.bf16.msra.mxu0 %v4072_v47 }
 0x4fb   :  { %5399 = vmatprep.subr.bf16.mxu0 %v4073_v38 }
 0x4fe   :  { %5400 = vmatpush3.bf16.msra.mxu0 %v4073_v38 }
 0x501   :  { %5402 = vmatmul.mubr.msk.bf16.vlgmr.msra.gmra.mrb[128].mxu0 %vm2597_vm0, %v8373_v53  ;;  %v995_v53 = vpop.permute.xlu0 %994 }
 0x502   :  { %5405 = vmatprep.mubr.msk.bf16.mxu0 %vm2597_vm0, %v8380_v26  ;;  %v6572_v26 = vmov 0.0   ;;  %v2359_v60 = vadd.f32 %v9041_v46, %v995_v53 }
 0x503   :  { %5433 = vmatprep.subr.bf16.mxu0 %v6572_v26 }
 0x509   :  { %5406 = vmatmul.mubr.msk.bf16.gmra.mrb[132].mxu0 %vm2597_vm0, %v8387_v30  ;;  %v1000_v30 = vpop.permute.xlu1 %999 }
 0x50a   :  { %5409 = vmatprep.mubr.msk.bf16.mxu0 %vm2597_vm0, %v8394_v59  ;;  %v8643_v59 = vpop.permute.xlu0 %1034  ;;  %v2362_v48 = vadd.f32 %v9043_v42, %v1000_v30  ;;  %v9050_v42 = vld [vmem:[#allocation116_spill] sm:$0xff] }
 0x511   :  { %5410 = vmatmul.mubr.msk.bf16.gmra.mrb[136].mxu0 %vm2597_vm0, %v8401_v36  ;;  %v8645_v36 = vpop.permute.xlu1 %1039 }
 0x512   :  { %5413 = vmatprep.mubr.msk.bf16.mxu0 %vm2597_vm0, %v8408_v43  ;;  %v1005_v43 = vpop.permute.xlu0 %1004 }
 0x513   :  { %v2367_v16 = vadd.f32 %v9040_v40, %v1005_v43 }
 0x519   :  { %5414 = vmatmul.mubr.msk.bf16.gmra.mrb[140].mxu0 %vm2597_vm0, %v8415_v9  ;;  %v1010_v9 = vpop.permute.xlu1 %1009 }
 0x51a   :  { %5417 = vmatprep.mubr.msk.bf16.mxu0 %vm2597_vm0, %v8422_v3  ;;  %v1045_v3 = vpop.permute.xlu0 %1044  ;;  %v2370_v54 = vadd.f32 %v9042_v55, %v1010_v9 }
 0x521   :  { %5418 = vmatmul.mubr.msk.bf16.gmra.mrb[144].mxu0 %vm2597_vm0, %v8429_v56  ;;  %v8647_v56 = vpop.permute.xlu1 %1049 }
 0x522   :  { %5421 = vmatprep.mubr.msk.bf16.mxu0 %vm2597_vm0, %v8436_v22  ;;  %v1015_v22 = vpop.permute.xlu0 %1014 }
 0x523   :  { %v2375_v52 = vadd.f32 %v9045_v27, %v1015_v22 }
 0x529   :  { %5422 = vmatmul.mubr.msk.bf16.gmra.mrb[148].mxu0 %vm2597_vm0, %v8443_v4  ;;  %v1020_v4 = vpop.permute.xlu1 %1019 }
 0x52a   :  { %5425 = vmatprep.mubr.msk.bf16.mxu0 %vm2597_vm0, %v8450_v45  ;;  %v8650_v45 = vpop.permute.xlu0 %1054  ;;  %v2378_v10 = vadd.f32 %v9047_v17, %v1020_v4  ;;  %v9049_v4 = vld [vmem:[#allocation115_spill] sm:$0xff] }
 0x52b   :  { %v2391_v55 = vadd.f32 %v9049_v4, %v8643_v59 }
 0x531   :  { %5426 = vmatmul.mubr.msk.bf16.gmra.mrb[152].mxu0 %vm2597_vm0, %v8457_v7  ;;  %v8652_v7 = vpop.permute.xlu1 %1059 }
 0x532   :  { %5429 = vmatprep.mubr.msk.bf16.mxu0 %vm2597_vm0, %v8464_v21  ;;  %v1025_v21 = vpop.permute.xlu0 %1024 }
 0x533   :  { %v2383_v28 = vadd.f32 %v9044_v32, %v1025_v21 }
 0x536   :  { %v8654_v25 = vpop.permute.xlu0 %1064 }
 0x539   :  { %5430 = vmatmul.mubr.msk.bf16.gmra.mrb[156].mxu0 %vm2597_vm0, %v8471_v1  ;;  %v1030_v1 = vpop.permute.xlu1 %1029 }
 0x53a   :  { %5441 = vmatprep.mubr.msk.bf16.mxu0 %vm6573_vm3, %v6572_v26  ;;  %v8661_v5 = vpop.permute.xlu0 %1074  ;;  %v2386_v31 = vadd.f32 %v9046_v33, %v1030_v1 }
 0x53d   :  { %v8656_v39 = vpop.permute.xlu1 %1069 }
 0x53e   :  { %v8667_v63 = vpop.permute.xlu0 %1114 }
 0x541   :  { %v8664_v44 = vpop.permute.xlu1 %1079 }
 0x542   :  { %v8674_v22 = vpop.permute.xlu0 %1084 }
 0x545   :  { %v8671_v13 = vpop.permute.xlu1 %1119 }
 0x5d4   :  { %v5403_v2 = vpop.f32.mrb[128].mxu0 }
 0x5d5   :  { %v4117_v58 = vadd.f32 %v5403_v2, %v2367_v16  ;;  %v4108_v37 = vpop.f32.mrb[129].mxu0  ;;  %v9048_v16 = vld [vmem:[#allocation114_spill] sm:$0xff]  ;;  %v8677_v2 = vpop.permute.xlu1 %1089 }
 0x5d6   :  { %v4109_v34 = vadd.f32 %v4108_v37, %v2359_v60  ;;  %v5404_v50 = vpop.f32.mrb[130].mxu0  ;;  %v2399_v46 = vadd.f32 %v9048_v16, %v1045_v3  ;;  %v9055_v16 = vld [vmem:[#allocation121_spill] sm:$0xff] }
 0x5d7   :  { %v4864_v15 = vmul.f32 -1.442695, %v4117_v58  ;;  %v4120_v51 = vadd.f32 %v5404_v50, %v2370_v54  ;;  %v4111_v61 = vpop.f32.mrb[131].mxu0 }
 0x5d8   :  { %v4862_v11 = vmul.f32 -1.442695, %v4109_v34  ;;  %v4112_v23 = vadd.f32 %v4111_v61, %v2362_v48  ;;  %v2402_v48 = vadd.f32 %v9050_v42, %v8647_v56 }
 0x5d9   :  { %6383 = vpow2.f32 %v4864_v15  ;;  %v4865_v62 = vmul.f32 -1.442695, %v4120_v51  ;;  %v9051_v51 = vld [vmem:[#allocation117_spill] sm:$0xff] }
 0x5da   :  { %6385 = vpow2.f32 %v4862_v11  ;;  %v4863_v19 = vmul.f32 -1.442695, %v4112_v23  ;;  %v2394_v3 = vadd.f32 %v9051_v51, %v8645_v36 }
 0x5db   :  { %6387 = vpow2.f32 %v4865_v62 }
 0x5dc   :  { %v5407_v41 = vpop.f32.mrb[132].mxu0  ;;  %6389 = vpow2.f32 %v4863_v19 }
 0x5dd   :  { %v4133_v6 = vadd.f32 %v5407_v41, %v2383_v28  ;;  %v4124_v29 = vpop.f32.mrb[133].mxu0  ;;  %v8685_v28 = vpop.permute.xlu0 %1124 }
 0x5de   :  { %v4125_v57 = vadd.f32 %v4124_v29, %v2375_v52  ;;  %v5408_v38 = vpop.f32.mrb[134].mxu0  ;;  %v8687_v41 = vpop.permute.xlu1 %1129 }
 0x5df   :  { %v4868_v47 = vmul.f32 -1.442695, %v4133_v6  ;;  %v4136_v53 = vadd.f32 %v5408_v38, %v2386_v31  ;;  %v4127_v30 = vpop.f32.mrb[135].mxu0  ;;  %v9052_v6 = vld [vmem:[#allocation118_spill] sm:$0xff] }
 0x5e0   :  { %v4866_v43 = vmul.f32 -1.442695, %v4125_v57  ;;  %v4128_v9 = vadd.f32 %v4127_v30, %v2378_v10  ;;  %v2415_v29 = vadd.f32 %v9052_v6, %v8654_v25  ;;  %v9053_v10 = vld [vmem:[#allocation119_spill] sm:$0xff]  ;;  %v9054_v30 = vld [vmem:[#allocation120_spill] sm:$0xff]  ;;  %v2410_v25 = vadd.f32 %v9055_v16, %v8652_v7  ;;  %v9060_v16 = vld [vmem:[#allocation126_spill] sm:$0xff] }
 0x5e1   :  { %6391 = vpow2.f32 %v4868_v47  ;;  %v4869_v21 = vmul.f32 -1.442695, %v4136_v53  ;;  %v2407_v57 = vadd.f32 %v9053_v10, %v8650_v45 }
 0x5e2   :  { %6393 = vpow2.f32 %v4866_v43  ;;  %v4867_v1 = vmul.f32 -1.442695, %v4128_v9  ;;  %v2418_v43 = vadd.f32 %v9054_v30, %v8656_v39 }
 0x5e3   :  { %v6384_v40 = vpop.eup %6383  ;;  %6395 = vpow2.f32 %v4869_v21 }
 0x5e4   :  { %v6386_v60 = vpop.eup %6385  ;;  %v4261_v54 = vadd.f32 1.0, %v6384_v40  ;;  %v5411_v58 = vpop.f32.mrb[136].mxu0  ;;  %6397 = vpow2.f32 %v4867_v1 }
 0x5e5   :  { %v6388_v37 = vpop.eup %6387  ;;  %v4259_v34 = vadd.f32 1.0, %v6386_v60  ;;  %v4149_v50 = vadd.f32 %v5411_v58, %v2399_v46  ;;  %v4140_v15 = vpop.f32.mrb[137].mxu0 }
 0x5e6   :  { %v4262_v61 = vadd.f32 1.0, %v6388_v37  ;;  %v4141_v11 = vadd.f32 %v4140_v15, %v2391_v55  ;;  %v5412_v23 = vpop.f32.mrb[138].mxu0  ;;  %v6390_v62 = vpop.eup %6389  ;;  %6399 = vrcp.f32 %v4261_v54 }
 0x5e7   :  { %v4872_v19 = vmul.f32 -1.442695, %v4149_v50  ;;  %v4152_v59 = vadd.f32 %v5412_v23, %v2402_v48  ;;  %v4143_v32 = vpop.f32.mrb[139].mxu0  ;;  %6401 = vrcp.f32 %v4259_v34  ;;  %v4260_v33 = vadd.f32 1.0, %v6390_v62  ;;  %v1095_v40 = vpop.permute.xlu0 %1094  ;;  %v9057_v62 = vld [vmem:[#allocation123_spill] sm:$0xff] }
 0x5e8   :  { %v4870_v27 = vmul.f32 -1.442695, %v4141_v11  ;;  %v4144_v56 = vadd.f32 %v4143_v32, %v2394_v3  ;;  %6403 = vrcp.f32 %v4262_v61  ;;  %v1100_v37 = vpop.permute.xlu1 %1099  ;;  %v9056_v3 = vld [vmem:[#allocation122_spill] sm:$0xff] }
 0x5e9   :  { %v4873_v52 = vmul.f32 -1.442695, %v4152_v59  ;;  %6405 = vpow2.f32 %v4872_v19  ;;  %v2431_v61 = vadd.f32 %v9056_v3, %v8674_v22  ;;  %v2423_v19 = vadd.f32 %v9057_v62, %v8661_v5  ;;  %v9059_v22 = vld [vmem:[#allocation125_spill] sm:$0xff] }
 0x5ea   :  { %v4871_v36 = vmul.f32 -1.442695, %v4144_v56  ;;  %6407 = vpow2.f32 %v4870_v27  ;;  %v9058_v27 = vld [vmem:[#allocation124_spill] sm:$0xff]  ;;  %v9063_v3 = vld [vmem:[#allocation129_spill] sm:$0xff] }
 0x5eb   :  { %v6392_v31 = vpop.eup %6391  ;;  %6409 = vpow2.f32 %v4873_v52  ;;  %v8705_v23 = vpop.permute.xlu0 %1134  ;;  %v2434_v56 = vadd.f32 %v9058_v27, %v8677_v2 }
 0x5ec   :  { %v6394_v17 = vpop.eup %6393  ;;  %v4265_v38 = vadd.f32 1.0, %v6392_v31  ;;  %v5415_v47 = vpop.f32.mrb[140].mxu0  ;;  %6411 = vpow2.f32 %v4871_v36 }
 0x5ed   :  { %v6396_v53 = vpop.eup %6395  ;;  %v4263_v9 = vadd.f32 1.0, %v6394_v17  ;;  %v4165_v21 = vadd.f32 %v5415_v47, %v2415_v29  ;;  %v4156_v1 = vpop.f32.mrb[141].mxu0  ;;  %6413 = vrcp.f32 %v4260_v33  ;;  %v2426_v29 = vadd.f32 %v9059_v22, %v8664_v44 }
 0x5ee   :  { %v4266_v46 = vadd.f32 1.0, %v6396_v53  ;;  %v4157_v60 = vadd.f32 %v4156_v1, %v2407_v57  ;;  %v5416_v4 = vpop.f32.mrb[142].mxu0  ;;  %v6398_v45 = vpop.eup %6397  ;;  %6415 = vrcp.f32 %v4265_v38 }
 0x5ef   :  { %v4876_v55 = vmul.f32 -1.442695, %v4165_v21  ;;  %v4168_v54 = vadd.f32 %v5416_v4, %v2418_v43  ;;  %v4159_v58 = vpop.f32.mrb[143].mxu0  ;;  %6417 = vrcp.f32 %v4263_v9  ;;  %v4264_v7 = vadd.f32 1.0, %v6398_v45  ;;  %v8711_v6 = vpop.permute.xlu1 %1139  ;;  %v9061_v4 = vld [vmem:[#allocation127_spill] sm:$0xff] }
 0x5f0   :  { %v4874_v39 = vmul.f32 -1.442695, %v4157_v60  ;;  %v4160_v42 = vadd.f32 %v4159_v58, %v2410_v25  ;;  %v8697_v48 = vpop.eup %6399  ;;  %6419 = vrcp.f32 %v4266_v46  ;;  %v1105_v44 = vpop.permute.xlu0 %1104  ;;  %v2439_v45 = vadd.f32 %v9061_v4, %v1095_v40  ;;  %v9062_v58 = vld [vmem:[#allocation128_spill] sm:$0xff] }
 0x5f1   :  { %v4877_v34 = vmul.f32 -1.442695, %v4168_v54  ;;  %v8699_v50 = vpop.eup %6401  ;;  %6421 = vpow2.f32 %v4876_v55  ;;  %v2447_v25 = vadd.f32 %v9060_v16, %v1105_v44 }
 0x5f2   :  { %v4875_v15 = vmul.f32 -1.442695, %v4160_v42  ;;  %v8701_v51 = vpop.eup %6403  ;;  %6423 = vpow2.f32 %v4874_v39 }
 0x5f3   :  { %v6406_v11 = vpop.eup %6405  ;;  %6425 = vpow2.f32 %v4877_v34  ;;  %v1110_v60 = vpop.permute.xlu1 %1109 }
 0x5f4   :  { %v5419_v59 = vpop.f32.mrb[144].mxu0  ;;  %v6408_v32 = vpop.eup %6407  ;;  %v4309_v52 = vadd.f32 1.0, %v6406_v11  ;;  %6427 = vpow2.f32 %v4875_v15  ;;  %v2450_v39 = vadd.f32 %v9062_v58, %v1110_v60 }
 0x5f5   :  { %v4181_v33 = vadd.f32 %v5419_v59, %v2431_v61  ;;  %v4172_v36 = vpop.f32.mrb[145].mxu0  ;;  %v6410_v31 = vpop.eup %6409  ;;  %6429 = vrcp.f32 %v4264_v7  ;;  %v4307_v17 = vadd.f32 1.0, %v6408_v32  ;;  %v2442_v61 = vadd.f32 %v9063_v3, %v1100_v37  ;;  %v9064_v37 = vld [vmem:[#allocation130_spill] sm:$0xff] }
 0x5f6   :  { %v4173_v10 = vadd.f32 %v4172_v36, %v2423_v19  ;;  %v5420_v5 = vpop.f32.mrb[146].mxu0  ;;  %v6412_v57 = vpop.eup %6411  ;;  %6431 = vrcp.f32 %v4309_v52  ;;  %v4310_v38 = vadd.f32 1.0, %v6410_v31 }
 0x5f7   :  { %v4184_v47 = vadd.f32 %v5420_v5, %v2434_v56  ;;  %v4175_v53 = vpop.f32.mrb[147].mxu0  ;;  %v8715_v2 = vpop.eup %6413  ;;  %6433 = vrcp.f32 %v4307_v17  ;;  %v4308_v30 = vadd.f32 1.0, %v6412_v57  ;;  %v9066_v57 = vld [vmem:[#allocation132_spill] sm:$0xff] }
 0x5f8   :  { %v4176_v43 = vadd.f32 %v4175_v53, %v2426_v29  ;;  %v8717_v9 = vpop.eup %6415  ;;  %6435 = vrcp.f32 %v4310_v38  ;;  %v2463_v29 = vadd.f32 %v9064_v37, %v8685_v28  ;;  %v2466_v38 = vadd.f32 %v9066_v57, %v8687_v41  ;;  %v1145_v3 = vpop.permute.xlu0 %1144 }
 0x5f9   :  { %v8719_v21 = vpop.eup %6417  ;;  %6437 = vrcp.f32 %v4308_v30 }
 0x5fa   :  { %v8721_v1 = vpop.eup %6419  ;;  %6439 = vtanh.f32 %v4181_v33 }
 0x5fb   :  { %v6422_v46 = vpop.eup %6421  ;;  %6441 = vtanh.f32 %v4173_v10  ;;  %v9065_v10 = vld [vmem:[#allocation131_spill] sm:$0xff] }
 0x5fc   :  { %v5423_v55 = vpop.f32.mrb[148].mxu0  ;;  %v6424_v54 = vpop.eup %6423  ;;  %v4313_v42 = vadd.f32 1.0, %v6422_v46  ;;  %6443 = vtanh.f32 %v4184_v47  ;;  %v2455_v5 = vadd.f32 %v9065_v10, %v8667_v63 }
 0x5fd   :  { %v4197_v34 = vadd.f32 %v5423_v55, %v2447_v25  ;;  %v4188_v7 = vpop.f32.mrb[149].mxu0  ;;  %v6426_v15 = vpop.eup %6425  ;;  %v4311_v11 = vadd.f32 1.0, %v6424_v54  ;;  %6445 = vtanh.f32 %v4176_v43  ;;  %v9067_v43 = vld [vmem:[#allocation133_spill] sm:$0xff] }
 0x5fe   :  { %v4189_v62 = vadd.f32 %v4188_v7, %v2439_v45  ;;  %v5424_v19 = vpop.f32.mrb[150].mxu0  ;;  %v6428_v59 = vpop.eup %6427  ;;  %6447 = vrcp.f32 %v4313_v42  ;;  %v4314_v32 = vadd.f32 1.0, %v6426_v15  ;;  %v2458_v44 = vadd.f32 %v9067_v43, %v8671_v13 }
 0x5ff   :  { %v4200_v40 = vadd.f32 %v5424_v19, %v2450_v39  ;;  %v4191_v27 = vpop.f32.mrb[151].mxu0  ;;  %v8727_v56 = vpop.eup %6429  ;;  %6449 = vrcp.f32 %v4311_v11  ;;  %v4312_v52 = vadd.f32 1.0, %v6428_v59 }
 0x600   :  { %v4192_v33 = vadd.f32 %v4191_v27, %v2442_v61  ;;  %v6432_v36 = vpop.eup %6431  ;;  %6451 = vrcp.f32 %v4314_v32  ;;  %v9069_v27 = vld [vmem:[#allocation135_spill] sm:$0xff] }
 0x601   :  { %v6434_v31 = vpop.eup %6433  ;;  %6453 = vrcp.f32 %v4312_v52  ;;  %v4389_v47 = vmul.f32 %v6432_v36, %v8572_v0 }
 0x602   :  { %v6436_v22 = vpop.eup %6435  ;;  %6455 = vtanh.f32 %v4197_v34  ;;  %v4387_v16 = vmul.f32 %v6434_v31, %v8575_v14  ;;  %v9070_v31 = vld [vmem:[#allocation136_spill] sm:$0xff] }
 0x603   :  { %v6438_v17 = vpop.eup %6437  ;;  %6457 = vtanh.f32 %v4189_v62  ;;  %v4390_v60 = vmul.f32 %v6436_v22, %v8578_v8  ;;  %v9068_v62 = vld [vmem:[#allocation134_spill] sm:$0xff] }
 0x604   :  { %v5427_v53 = vpop.f32.mrb[152].mxu0  ;;  %v6440_v30 = vpop.eup %6439  ;;  %6459 = vtanh.f32 %v4200_v40  ;;  %v4388_v45 = vmul.f32 %v6438_v17, %v8581_v18 }
 0x605   :  { %v4213_v28 = vadd.f32 %v5427_v53, %v2463_v29  ;;  %v4204_v25 = vpop.f32.mrb[153].mxu0  ;;  %v6442_v46 = vpop.eup %6441  ;;  %v4397_v63 = vmul.f32 %v6440_v30, %v8697_v48  ;;  %6461 = vtanh.f32 %v4192_v33 }
 0x606   :  { %v4205_v41 = vadd.f32 %v4204_v25, %v2455_v5  ;;  %v5428_v4 = vpop.f32.mrb[154].mxu0  ;;  %v6444_v0 = vpop.eup %6443  ;;  %v4395_v55 = vmul.f32 %v6442_v46, %v8699_v50  ;;  %v2479_v50 = vadd.f32 %v9068_v62, %v1145_v3 }
 0x607   :  { %v4880_v54 = vmul.f32 -1.442695, %v4213_v28  ;;  %v4216_v13 = vadd.f32 %v5428_v4, %v2466_v38  ;;  %v4207_v58 = vpop.f32.mrb[155].mxu0  ;;  %v6446_v14 = vpop.eup %6445  ;;  %v4405_v39 = vadd.f32 %v4397_v63, %v4389_v47  ;;  %v4398_v42 = vmul.f32 %v6444_v0, %v8701_v51 }
 0x608   :  { %v4208_v34 = vadd.f32 %v4207_v58, %v2458_v44  ;;  %v6448_v7 = vpop.eup %6447  ;;  %v4403_v8 = vadd.f32 %v4395_v55, %v4387_v16  ;;  %v4396_v48 = vmul.f32 %v6446_v14, %v8715_v2  ;;  %v4878_v11 = vmul.f32 -1.442695, %v4205_v41  ;;  %v1150_v40 = vpop.permute.xlu1 %1149 }
 0x609   :  { %6463 = vpow2.f32 %v4880_v54  ;;  %v6450_v15 = vpop.eup %6449  ;;  %v4406_v61 = vadd.f32 %v4398_v42, %v4390_v60  ;;  %v4881_v59 = vmul.f32 -1.442695, %v4216_v13  ;;  %v2471_v51 = vadd.f32 %v9069_v27, %v8705_v23 }
 0x60a   :  { %v6452_v18 = vpop.eup %6451  ;;  %v4404_v19 = vadd.f32 %v4396_v48, %v4388_v45  ;;  %v4393_v52 = vmul.f32 %v6448_v7, %v8594_v24  ;;  %v4879_v33 = vmul.f32 -1.442695, %v4208_v34  ;;  %v2482_v22 = vadd.f32 %v9070_v31, %v1150_v40 }
 0x60b   :  { %v6454_v32 = vpop.eup %6453  ;;  %v4391_v37 = vmul.f32 %v6450_v15, %v8597_v49  ;;  %v4394_v29 = vmul.f32 %v6452_v18, %v8600_v35  ;;  %6465 = vpow2.f32 %v4878_v11  ;;  %v2474_v35 = vadd.f32 %v8090_v20, %v8711_v6 }
 0x60c   :  { %v5431_v36 = vpop.f32.mrb[156].mxu0  ;;  %v6456_v2 = vpop.eup %6455  ;;  %v4392_v57 = vmul.f32 %v6454_v32, %v8603_v12  ;;  %6467 = vpow2.f32 %v4881_v59 }
 0x60d   :  { %v4229_v17 = vadd.f32 %v5431_v36, %v2479_v50  ;;  %v4220_v10 = vpop.f32.mrb[157].mxu0  ;;  %v6458_v5 = vpop.eup %6457  ;;  %v4401_v38 = vmul.f32 %v6456_v2, %v8717_v9  ;;  %6469 = vpow2.f32 %v4879_v33 }
 0x60e   :  { %v4221_v23 = vadd.f32 %v4220_v10, %v2471_v51  ;;  %v5432_v47 = vpop.f32.mrb[158].mxu0  ;;  %v6460_v24 = vpop.eup %6459  ;;  %v4399_v53 = vmul.f32 %v6458_v5, %v8719_v21 }
 0x60f   :  { %v4884_v30 = vmul.f32 -1.442695, %v4229_v17  ;;  %v4232_v43 = vadd.f32 %v5432_v47, %v2482_v22  ;;  %v4223_v44 = vpop.f32.mrb[159].mxu0  ;;  %v6462_v49 = vpop.eup %6461  ;;  %v4409_v16 = vadd.f32 %v4401_v38, %v4393_v52  ;;  %v4402_v28 = vmul.f32 %v6460_v24, %v8721_v1 }
 0x610   :  { %v4407_v12 = vadd.f32 %v4399_v53, %v4391_v37  ;;  %v4400_v9 = vmul.f32 %v6462_v49, %v8727_v56  ;;  %v4224_v46 = vadd.f32 %v4223_v44, %v2474_v35  ;;  %v4882_v63 = vmul.f32 -1.442695, %v4221_v23  ;;  %v4427_v23 = vld [vmem:[%s8782_s4] sm:$0x1]  ;;  %s6547_s4 = scalar_lea.vmem %s4500_s5, 16 }
 0x611   :  { %6471 = vpow2.f32 %v4884_v30  ;;  %v4410_v25 = vadd.f32 %v4402_v28, %v4394_v29  ;;  %v4885_v4 = vmul.f32 -1.442695, %v4232_v43  ;;  %v4438_v47 = vlaneseq  ;;  %v4436_v30 = vpop.permute.xlu0 %4435  ;;  %p6548_p0 = scmp.ne.s32.totalorder %s4500_s5, %s6547_s4  ;;  %p6553_p2 = scmp.lt.s32.totalorder %s6551_s29, %s6547_s4 }
 0x612   :  { %6473 = vtanh.f32 %v4405_v39  ;;  %v4408_v60 = vadd.f32 %v4400_v9, %v4392_v57  ;;  %v4883_v20 = vmul.f32 -1.442695, %v4224_v46 }
 0x613   :  { %v6464_v21 = vpop.eup %6463  ;;  %6475 = vtanh.f32 %v4403_v8  ;;  %v4439_v24 = vshrl.u32 %v4438_v47, 7  ;;  %p6554_p3 = por %p6553_p2, %p6552_p1 }
 0x614   :  { %6477 = vtanh.f32 %v4406_v61  ;;  %v4365_v41 = vadd.f32 1.0, %v6464_v21 }
 0x615   :  { %6479 = vtanh.f32 %v4404_v19  ;;  %v6466_v6 = vpop.eup %6465  ;;  %v4440_v53 = vsub.s32 0, %v4439_v24  ;;  %p6555_p4 = pnand %p6554_p3, %p6548_p0 }
 0x616   :  { %6481 = vrcp.f32 %v4365_v41  ;;  %v6468_v1 = vpop.eup %6467  ;;  %v4363_v0 = vadd.f32 1.0, %v6466_v6 }
 0x617   :  { %6483 = vpow2.f32 %v4882_v63  ;;  %v6470_v56 = vpop.eup %6469  ;;  %v4366_v45 = vadd.f32 1.0, %v6468_v1  ;;  %v4441_v43 = vrot.slane %v4436_v30, %v4440_v53 }
 0x618   :  { %6485 = vpow2.f32 %v4885_v4  ;;  %v4364_v54 = vadd.f32 1.0, %v6470_v56 }
 0x619   :  { %6487 = vpow2.f32 %v4883_v20 }
 0x61a   :  { %6489 = vtanh.f32 %v4409_v16 }
 0x61b   :  { %v6472_v55 = vpop.eup %6471  ;;  %6491 = vrcp.f32 %v4363_v0 }
 0x61c   :  { %v6474_v13 = vpop.eup %6473  ;;  %6493 = vrcp.f32 %v4366_v45  ;;  %v4369_v58 = vadd.f32 1.0, %v6472_v55 }
 0x61d   :  { %v6476_v14 = vpop.eup %6475  ;;  %6495 = vrcp.f32 %v4364_v54 }
 0x61e   :  { %v6478_v39 = vpop.eup %6477  ;;  %6497 = vrcp.f32 %v4369_v58 }
 0x61f   :  { %v6480_v42 = vpop.eup %6479  ;;  %6499 = vtanh.f32 %v4407_v12 }
 0x620   :  { %v6482_v34 = vpop.eup %6481  ;;  %6501 = vtanh.f32 %v4410_v25 }
 0x621   :  { %v6484_v7 = vpop.eup %6483  ;;  %v4421_v8 = vmul.f32 %v6482_v34, %v6474_v13  ;;  %6503 = vtanh.f32 %v4408_v60 }
 0x622   :  { %v6486_v48 = vpop.eup %6485  ;;  %v4367_v15 = vadd.f32 1.0, %v6484_v7 }
 0x623   :  { %v6488_v3 = vpop.eup %6487  ;;  %v4370_v61 = vadd.f32 1.0, %v6486_v48 }
 0x624   :  { %v6490_v11 = vpop.eup %6489  ;;  %6505 = vrcp.f32 %v4367_v15  ;;  %v4368_v18 = vadd.f32 1.0, %v6488_v3 }
 0x625   :  { %v6492_v62 = vpop.eup %6491  ;;  %6507 = vrcp.f32 %v4370_v61 }
 0x626   :  { %v6494_v50 = vpop.eup %6493  ;;  %6509 = vrcp.f32 %v4368_v18  ;;  %v4419_v19 = vmul.f32 %v6492_v62, %v6476_v14 }
 0x627   :  { %v6496_v59 = vpop.eup %6495  ;;  %v4422_v32 = vmul.f32 %v6494_v50, %v6478_v39 }
 0x628   :  { %v6498_v40 = vpop.eup %6497  ;;  %v4420_v27 = vmul.f32 %v6496_v59, %v6480_v42 }
 0x629   :  { %v4429_v51 = vpack.c.bf16 %v4422_v32, %v4421_v8  ;;  %v4425_v52 = vmul.f32 %v6498_v40, %v6490_v11  ;;  %v6500_v36 = vpop.eup %6499 }
 0x62a   :  { %v4428_v33 = vpack.c.bf16 %v4420_v27, %v4419_v19  ;;  %v6502_v2 = vpop.eup %6501 }
 0x62b   :  { %v6504_v31 = vpop.eup %6503 }
 0x62c   :  { %5434 = vmatpush3.bf16.msra.mxu0 %v4428_v33 }
 0x62d   :  { %5435 = vmatprep.subr.bf16.mxu0 %v6572_v26 }
 0x62e   :  { %v6506_v22 = vpop.eup %6505 }
 0x62f   :  { %v6508_v37 = vpop.eup %6507  ;;  %v4423_v29 = vmul.f32 %v6506_v22, %v6500_v36 }
 0x630   :  { %v6510_v17 = vpop.eup %6509  ;;  %5436 = vmatpush3.bf16.msra.mxu0 %v4429_v51  ;;  %v4426_v10 = vmul.f32 %v6508_v37, %v6502_v2 }
 0x631   :  { %5437 = vmatprep.subr.bf16.mxu0 %v6572_v26  ;;  %v4424_v5 = vmul.f32 %v6510_v17, %v6504_v31 }
 0x632   :  { %v4431_v57 = vpack.c.bf16 %v4426_v10, %v4425_v52 }
 0x633   :  { %v4430_v38 = vpack.c.bf16 %v4424_v5, %v4423_v29 }
 0x635   :  { %5438 = vmatpush3.bf16.msra.mxu0 %v4430_v38 }
 0x636   :  { %5439 = vmatprep.subr.bf16.mxu0 %v6572_v26 }
 0x639   :  { %5440 = vmatpush3.bf16.msra.mxu0 %v4431_v57 }
 0x63c   :  { %5442 = vmatmul.mubr.msk.bf16.vlgmr.msra.gmra.mrb[160].mxu0 %vm2597_vm0, %v4427_v23 }
 0x70f   :  { %v4479_v44 = vpop.f32.mrb[160].mxu0 }
 0x710   :  { %v4480_v49 = vadd.f32 %v4479_v44, %v4441_v43  ;;  %v5443_v35 = vpop.f32.mrb[161].mxu0 }
 0x711   :  { %v4482_v16 = vpop.f32.mrb[162].mxu0 }
 0x712   :  { %v4887_v28 = vmul.f32 -1.442695, %v4480_v49  ;;  %v5444_v12 = vpop.f32.mrb[163].mxu0 }
 0x714   :  { %6511 = vpow2.f32 %v4887_v28 }
 0x71e   :  { %v6512_v26 = vpop.eup %6511 }
 0x71f   :  { %v4488_v9 = vadd.f32 1.0, %v6512_v26 }
 0x721   :  { %6513 = vrcp.f32 %v4488_v9 }
 0x72b   :  { %v6514_v25 = vpop.eup %6513 }
 0x72c   :  { %4492 = vst.msk [vmem:[#allocation3] sm:$0x1] %vm4491_vm4, %v6514_v25 }
 0x72d   :  { %6558 = shalt.err (!%p6555_p4)
}
 0x72e   :  { %s6559_s8 = scalar_lea.hbm %s8784_s6, 16 }
 0x72f   :  { %p6560_p5 = scmp.ne.s32.totalorder %s8784_s6, %s6559_s8  ;;  %p6563_p6 = scmp.lt.u32.totalorder %s6559_s8, %s8784_s6 }
 0x731   :  { %p6565_p7 = pnand %p6563_p6, %p6560_p5 }
 0x733   :  { %6568 = shalt.err (!%p6565_p7)
}
 0x734   :  { %4502 = dma.vmem_to_hbm [thread:$0]  %s4500_s5, 16, %s8784_s6, [#allocation4]  }
 0x735   :  { %6569 = dma.done.wait [#allocation4], 16  }
 0x736   :  { %6570 = vsyncadd [#allocation4], 4294967280 }
 0x737   :  { %4506 = vsyncpa [#allocation4], 1 }

</bundles_post_ra>
